<compile_context>
chip_gen: v5e
topology: v5e:2x2
jax: 0.10.0
libtpu: 0.0.40
codegen_flags: <defaults>
</compile_context>

<pallas_src>
import functools

import jax
import jax.numpy as jnp
from jax import lax
from jax.experimental import pallas as pl
from jax.experimental.pallas import tpu as pltpu

_BN_EPS = 1e-5


def _round_up(x, m):
    return (x + m - 1) // m * m


def _pick_tile_m(m):
    """Largest M tile (multiple of 8) giving >= 4 grid steps (>= 2 per v7x core),
    falling back to >= 2 steps, then to a single padded block for tiny M."""
    for t in (1024, 512, 256, 128, 64, 32, 16, 8):
        if m >= 4 * t:
            return t
    for t in (1024, 512, 256, 128, 64, 32, 16, 8):
        if m >= 2 * t:
            return t
    return _round_up(max(m, 1), 8)


def _vmem_limit(nbytes):
    # explicit scoped-VMEM request sized from the tiles, capped below v7x's 64 MiB
    return int(min(max(nbytes, 4 << 20) + (4 << 20), 48 << 20))


# ----------------------------------------------------------------------------- kernels


def _matmul_act_kernel(p_ref, w_ref, o_ref, *, act):
    """(patches @ W) -> activation.  f32 accumulate, bf16/f32 store."""
    y = jnp.dot(p_ref[...], w_ref[...], preferred_element_type=jnp.float32)
    if act == "lrelu":
        y = jnp.where(y >= 0, y, 0.2 * y)
    elif act == "sigmoid":
        # sigmoid(y) == 0.5*(tanh(y/2)+1): stable for large |y|, tanh uses the EUP slot.
        y = 0.5 * (jnp.tanh(0.5 * y) + 1.0)
    o_ref[...] = y.astype(o_ref.dtype)


def _matmul_stats_kernel(p_ref, w_ref, y_ref, stats_ref):
    """BN pass 1: raw conv output (bf16) + fused per-tile (sum, sum_sq) partials (f32)."""
    y = jnp.dot(p_ref[...], w_ref[...], preferred_element_type=jnp.float32)
    y_ref[...] = y.astype(y_ref.dtype)
    s = jnp.sum(y, axis=0, keepdims=True)        # (1, Cout)
    ss = jnp.sum(y * y, axis=0, keepdims=True)   # (1, Cout)
    stats_ref[...] = jnp.concatenate([s, ss], axis=0)[None]   # (1, 2, Cout)


def _bn_lrelu_kernel(y_ref, s_ref, t_ref, o_ref):
    """BN pass 2: per-channel affine (from batch stats) + LeakyReLU(0.2), bf16 in/out."""
    y = y_ref[...].astype(jnp.float32) * s_ref[...] + t_ref[...]
    o_ref[...] = jnp.where(y >= 0, y, 0.2 * y).astype(o_ref.dtype)


# ----------------------------------------------------------------------------- wrappers


def _conv_matmul(patches, w2d, *, act, out_dtype, with_stats, tile_m):
    """patches (Mp, K) bf16 @ w2d (K, Cout) bf16 -> (Mp, Cout); Mp % tile_m == 0."""
    Mp, K = patches.shape
    Cout = w2d.shape[1]
    grid = (Mp // tile_m,)

    vmem = 2 * (tile_m * K * 2 + tile_m * Cout * 4) + K * Cout * 2 + 4 * 2 * Cout * 4
    params = pltpu.CompilerParams(
        dimension_semantics=("parallel",),
        vmem_limit_bytes=_vmem_limit(vmem))

    p_spec = pl.BlockSpec((tile_m, K), lambda i: (i, 0))
    w_spec = pl.BlockSpec((K, Cout), lambda i: (0, 0))     # pinned across the grid
    y_spec = pl.BlockSpec((tile_m, Cout), lambda i: (i, 0))

    if with_stats:
        y, stats = pl.pallas_call(
            _matmul_stats_kernel,
            out_shape=(jax.ShapeDtypeStruct((Mp, Cout), out_dtype),
                       jax.ShapeDtypeStruct((grid[0], 2, Cout), jnp.float32)),
            grid=grid,
            in_specs=[p_spec, w_spec],
            out_specs=(y_spec, pl.BlockSpec((1, 2, Cout), lambda i: (i, 0, 0))),
            compiler_params=params,
        )(patches, w2d)
        return y, stats

    y = pl.pallas_call(
        functools.partial(_matmul_act_kernel, act=act),
        out_shape=jax.ShapeDtypeStruct((Mp, Cout), out_dtype),
        grid=grid,
        in_specs=[p_spec, w_spec],
        out_specs=y_spec,
        compiler_params=params,
    )(patches, w2d)
    return y, None


def _bn_lrelu_apply(y_pad, scale, shift, tile_m):
    """Tiled elementwise BN(batch stats) affine + LeakyReLU(0.2); bf16 in / bf16 out."""
    Mp, Cout = y_pad.shape
    s = scale.astype(jnp.float32).reshape(1, Cout)
    t = shift.astype(jnp.float32).reshape(1, Cout)

    vmem = 2 * (2 * tile_m * Cout * 2) + 2 * Cout * 4
    return pl.pallas_call(
        _bn_lrelu_kernel,
        out_shape=jax.ShapeDtypeStruct((Mp, Cout), jnp.bfloat16),
        grid=(Mp // tile_m,),
        in_specs=[
            pl.BlockSpec((tile_m, Cout), lambda i: (i, 0)),
            pl.BlockSpec((1, Cout), lambda i: (0, 0)),
            pl.BlockSpec((1, Cout), lambda i: (0, 0)),
        ],
        out_specs=pl.BlockSpec((tile_m, Cout), lambda i: (i, 0)),
        compiler_params=pltpu.CompilerParams(
            dimension_semantics=("parallel",),
            vmem_limit_bytes=_vmem_limit(vmem)),
    )(y_pad, s, t)


def _im2col(x_nhwc, k, stride, pad, tile_m):
    """(kh, kw, cin)-ordered patches (channels already padded by the caller so K is
    lane-dense).  Returns (Mp, K) with Mp % tile_m == 0, plus M, Ho, Wo.  (JAX glue)"""
    N, H, W, C = x_nhwc.shape
    xp = jnp.pad(x_nhwc, ((0, 0), (pad, pad), (pad, pad), (0, 0)))
    Ho = (H + 2 * pad - k) // stride + 1
    Wo = (W + 2 * pad - k) // stride + 1
    cols = []
    for i in range(k):
        for j in range(k):
            cols.append(xp[:, i:i + stride * Ho:stride, j:j + stride * Wo:stride, :])
    p = jnp.stack(cols, axis=3)                    # (N, Ho, Wo, k*k, C)
    M = N * Ho * Wo
    Mp = _round_up(M, tile_m)
    p = p.reshape(M, k * k * C)
    if Mp != M:
        p = jnp.pad(p, ((0, Mp - M), (0, 0)))      # only tiny tail layers hit this
    return p, M, Ho, Wo


def _conv_block(x_nhwc, w_oihw, gamma, beta, *, stride, pad, use_bn, act, out_dtype):
    N, H, W, _ = x_nhwc.shape
    Cout, Cin, kh, kw = w_oihw.shape
    assert kh == kw

    # Fold K padding into the patch construction: pad Cin to a multiple of 8 so
    # K = kh*kw*Cin_p is a multiple of 128 for 4x4 kernels (no (M,K) pad pass).
    cin_p = _round_up(Cin, 8)
    x = x_nhwc.astype(jnp.bfloat16)
    w = w_oihw
    if cin_p != Cin:
        x = jnp.pad(x, ((0, 0), (0, 0), (0, 0), (0, cin_p - Cin)))
        w = jnp.pad(w, ((0, 0), (0, cin_p - Cin), (0, 0), (0, 0)))

    Ho = (H + 2 * pad - kh) // stride + 1
    Wo = (W + 2 * pad - kw) // stride + 1
    tile_m = _pick_tile_m(N * Ho * Wo)

    patches, M, Ho, Wo = _im2col(x, kh, stride, pad, tile_m)
    # (Cout, Cin_p, kh, kw) -> (kh, kw, Cin_p, Cout) -> (K, Cout), matching patch order.
    w2d = jnp.transpose(w, (2, 3, 1, 0)).reshape(kh * kw * cin_p, Cout).astype(jnp.bfloat16)

    if use_bn:
        # Pass 1: tiled matmul with fused per-tile (sum, sum_sq) partials.
        y_pad, stats = _conv_matmul(patches, w2d, act="none", out_dtype=jnp.bfloat16,
                                    with_stats=True, tile_m=tile_m)
        # Padded rows are all-zero patches -> contribute 0 to both sums; divide by true M.
        sums = jnp.sum(stats, axis=0)                       # (2, Cout) f32
        mean = sums[0] / M
        var = jnp.maximum(sums[1] / M - mean * mean, 0.0)   # biased var (training-mode BN)
        scale = gamma * lax.rsqrt(var + _BN_EPS)
        shift = beta - mean * scale
        # Pass 2: tiled elementwise normalize + LeakyReLU (bf16 in/out).
        y_pad = _bn_lrelu_apply(y_pad, scale, shift, tile_m)
    else:
        y_pad, _ = _conv_matmul(patches, w2d, act=act, out_dtype=out_dtype,
                                with_stats=False, tile_m=tile_m)

    return y_pad[:M].reshape(N, Ho, Wo, Cout)


@jax.jit
def discriminator_forward(x_nchw, weights, bn_params):
    """weights: 5 conv weights (Cout, Cin, 4, 4); bn_params: (gamma, beta) for layers 2-4."""
    x = jnp.transpose(x_nchw, (0, 2, 3, 1))  # NCHW -> NHWC

    w1, w2, w3, w4, w5 = weights
    (g2, b2), (g3, b3), (g4, b4) = bn_params

    x = _conv_block(x, w1, None, None, stride=2, pad=1, use_bn=False, act="lrelu",
                    out_dtype=jnp.bfloat16)
    x = _conv_block(x, w2, g2, b2, stride=2, pad=1, use_bn=True, act="lrelu",
                    out_dtype=jnp.bfloat16)
    x = _conv_block(x, w3, g3, b3, stride=2, pad=1, use_bn=True, act="lrelu",
                    out_dtype=jnp.bfloat16)
    x = _conv_block(x, w4, g4, b4, stride=2, pad=1, use_bn=True, act="lrelu",
                    out_dtype=jnp.bfloat16)
    x = _conv_block(x, w5, None, None, stride=1, pad=0, use_bn=False, act="sigmoid",
                    out_dtype=jnp.float32)

    # x is (N, 1, 1, 1) -> .view(-1)
    return x.reshape(-1)


if __name__ == "__main__":
    # DCGAN convention: 64x64 input so the final 4x4/s1/p0 conv sees a 4x4 map -> 1x1.
    nc, ndf, N, S = 3, 16, 2, 64

    key = jax.random.PRNGKey(0)
    k0, k1, k2, k3, k4, k5 = jax.random.split(key, 6)

    x = jax.random.normal(k0, (N, nc, S, S), dtype=jnp.float32)

    # Conv weights (bias=False in the reference module).
    w1 = 0.02 * jax.random.normal(k1, (ndf, nc, 4, 4), jnp.float32)
    w2 = 0.02 * jax.random.normal(k2, (ndf * 2, ndf, 4, 4), jnp.float32)
    w3 = 0.02 * jax.random.normal(k3, (ndf * 4, ndf * 2, 4, 4), jnp.float32)
    w4 = 0.02 * jax.random.normal(k4, (ndf * 8, ndf * 4, 4, 4), jnp.float32)
    w5 = 0.02 * jax.random.normal(k5, (1, ndf * 8, 4, 4), jnp.float32)
    weights = (w1, w2, w3, w4, w5)

    # BatchNorm affine params at default init (gamma=1, beta=0) for layers 2-4.
    def _bn(cout):
        return (jnp.ones((cout,), jnp.float32), jnp.zeros((cout,), jnp.float32))

    bn_params = (_bn(ndf * 2), _bn(ndf * 4), _bn(ndf * 8))

    out = jax.block_until_ready(discriminator_forward(x, weights, bn_params))

    assert out.shape == (N,), out.shape
    assert bool(jnp.all(jnp.isfinite(out)))
    assert bool(jnp.all((out >= 0.0) & (out <= 1.0)))  # sigmoid range
    print("KERNEL_OK")
</pallas_src>

<mosaic_0001>
module attributes {stable_mosaic.version = 11 : i64} {
  func.func @_matmul_act_kernel(%arg0: i32, %arg1: memref<512x128xbf16, #tpu.memory_space<vmem>>, %arg2: memref<128x16xbf16, #tpu.memory_space<vmem>>, %arg3: memref<512x16xbf16, #tpu.memory_space<vmem>>) attributes {dimension_semantics = [#tpu.dimension_semantics<parallel>], iteration_bounds = array<i64: 4>, scalar_prefetch = 0 : i64, scratch_operands = 0 : i64, tpu.core_type = #tpu.core_type<tc>, window_params = [{transform_indices = @transform_0, window_bounds = array<i64: 512, 128>}, {pipeline_mode = #tpu.pipeline_mode<synchronous>, transform_indices = @transform_1, window_bounds = array<i64: 128, 16>}, {transform_indices = @transform_2, window_bounds = array<i64: 512, 16>}]} {
    %c0 = arith.constant 0 : index
    %c0_0 = arith.constant 0 : index
    %0 = vector.load %arg1[%c0, %c0_0] : memref<512x128xbf16, #tpu.memory_space<vmem>>, vector<512x128xbf16>
    %c0_1 = arith.constant 0 : index
    %c0_2 = arith.constant 0 : index
    %1 = vector.load %arg2[%c0_1, %c0_2] : memref<128x16xbf16, #tpu.memory_space<vmem>>, vector<128x16xbf16>
    %cst = arith.constant dense<0.000000e+00> : vector<512x16xf32>
    %2 = tpu.matmul %0, %1, %cst {dimension_numbers = #tpu.dot_dimension_numbers<[1], [0], [0], [1], [0, 0, 1, 1], [], []>} : vector<512x128xbf16>, vector<128x16xbf16>, vector<512x16xf32> -> vector<512x16xf32>
    %cst_3 = arith.constant 0.000000e+00 : f32
    %3 = vector.broadcast %cst_3 : f32 to vector<512x16xf32>
    %4 = arith.cmpf oge, %2, %3 : vector<512x16xf32>
    %cst_4 = arith.constant 2.000000e-01 : f32
    %5 = vector.broadcast %cst_4 : f32 to vector<512x16xf32>
    %6 = arith.mulf %5, %2 : vector<512x16xf32>
    %7 = arith.select %4, %2, %6 : vector<512x16xi1>, vector<512x16xf32>
    %8 = arith.truncf %7 : vector<512x16xf32> to vector<512x16xbf16>
    %c0_5 = arith.constant 0 : index
    %c0_6 = arith.constant 0 : index
    %9 = vector.load %arg3[%c0_5, %c0_6] : memref<512x16xbf16, #tpu.memory_space<vmem>>, vector<512x16xbf16>
    tpu.vector_store %arg3[%c0_5, %c0_6], %8 {strides = array<i32>} : memref<512x16xbf16, #tpu.memory_space<vmem>>, vector<512x16xbf16>,
    return
  }
  func.func @transform_0(%arg0: i32) -> (i32, i32) {
    %c0_i32 = arith.constant 0 : i32
    %c0_i32_0 = arith.constant 0 : i32
    return %arg0, %c0_i32 : i32, i32
  }
  func.func @transform_1(%arg0: i32) -> (i32, i32) {
    %c0_i32 = arith.constant 0 : i32
    %c0_i32_0 = arith.constant 0 : i32
    %c0_i32_1 = arith.constant 0 : i32
    return %c0_i32, %c0_i32_0 : i32, i32
  }
  func.func @transform_2(%arg0: i32) -> (i32, i32) {
    %c0_i32 = arith.constant 0 : i32
    %c0_i32_0 = arith.constant 0 : i32
    return %arg0, %c0_i32 : i32, i32
  }
}

module attributes {stable_mosaic.version = 11 : i64} {
  func.func @_matmul_stats_kernel(%arg0: i32, %arg1: memref<128x256xbf16, #tpu.memory_space<vmem>>, %arg2: memref<256x32xbf16, #tpu.memory_space<vmem>>, %arg3: memref<128x32xbf16, #tpu.memory_space<vmem>>, %arg4: memref<1x2x32xf32, #tpu.memory_space<vmem>>) attributes {dimension_semantics = [#tpu.dimension_semantics<parallel>], iteration_bounds = array<i64: 4>, scalar_prefetch = 0 : i64, scratch_operands = 0 : i64, tpu.core_type = #tpu.core_type<tc>, window_params = [{transform_indices = @transform_0, window_bounds = array<i64: 128, 256>}, {pipeline_mode = #tpu.pipeline_mode<synchronous>, transform_indices = @transform_1, window_bounds = array<i64: 256, 32>}, {transform_indices = @transform_2, window_bounds = array<i64: 128, 32>}, {transform_indices = @transform_3, window_bounds = array<i64: 1, 2, 32>}]} {
    %c0 = arith.constant 0 : index
    %c0_0 = arith.constant 0 : index
    %0 = vector.load %arg1[%c0, %c0_0] : memref<128x256xbf16, #tpu.memory_space<vmem>>, vector<128x256xbf16>
    %c0_1 = arith.constant 0 : index
    %c0_2 = arith.constant 0 : index
    %1 = vector.load %arg2[%c0_1, %c0_2] : memref<256x32xbf16, #tpu.memory_space<vmem>>, vector<256x32xbf16>
    %cst = arith.constant dense<0.000000e+00> : vector<128x32xf32>
    %2 = tpu.matmul %0, %1, %cst {dimension_numbers = #tpu.dot_dimension_numbers<[1], [0], [0], [1], [0, 0, 1, 1], [], []>} : vector<128x256xbf16>, vector<256x32xbf16>, vector<128x32xf32> -> vector<128x32xf32>
    %3 = arith.truncf %2 : vector<128x32xf32> to vector<128x32xbf16>
    %c0_3 = arith.constant 0 : index
    %c0_4 = arith.constant 0 : index
    %4 = vector.load %arg3[%c0_3, %c0_4] : memref<128x32xbf16, #tpu.memory_space<vmem>>, vector<128x32xbf16>
    tpu.vector_store %arg3[%c0_3, %c0_4], %3 {strides = array<i32>} : memref<128x32xbf16, #tpu.memory_space<vmem>>, vector<128x32xbf16>,
    %cst_5 = arith.constant dense<0.000000e+00> : vector<32xf32>
    %5 = vector.multi_reduction <add>, %2, %cst_5 [0] : vector<128x32xf32> to vector<32xf32>
    %6 = vector.shape_cast %5 : vector<32xf32> to vector<1x32xf32>
    %7 = arith.mulf %2, %2 : vector<128x32xf32>
    %cst_6 = arith.constant dense<0.000000e+00> : vector<32xf32>
    %8 = vector.multi_reduction <add>, %7, %cst_6 [0] : vector<128x32xf32> to vector<32xf32>
    %9 = vector.shape_cast %8 : vector<32xf32> to vector<1x32xf32>
    %10 = tpu.concatenate %6, %9 in 0 : vector<1x32xf32>, vector<1x32xf32> -> vector<2x32xf32>
    %11 = vector.shape_cast %10 : vector<2x32xf32> to vector<1x2x32xf32>
    %c0_7 = arith.constant 0 : index
    %c0_8 = arith.constant 0 : index
    %c0_9 = arith.constant 0 : index
    %12 = vector.load %arg4[%c0_7, %c0_8, %c0_9] : memref<1x2x32xf32, #tpu.memory_space<vmem>>, vector<1x2x32xf32>
    tpu.vector_store %arg4[%c0_7, %c0_8, %c0_9], %11 {strides = array<i32>} : memref<1x2x32xf32, #tpu.memory_space<vmem>>, vector<1x2x32xf32>,
    return
  }
  func.func @transform_0(%arg0: i32) -> (i32, i32) {
    %c0_i32 = arith.constant 0 : i32
    %c0_i32_0 = arith.constant 0 : i32
    return %arg0, %c0_i32 : i32, i32
  }
  func.func @transform_1(%arg0: i32) -> (i32, i32) {
    %c0_i32 = arith.constant 0 : i32
    %c0_i32_0 = arith.constant 0 : i32
    %c0_i32_1 = arith.constant 0 : i32
    return %c0_i32, %c0_i32_0 : i32, i32
  }
  func.func @transform_2(%arg0: i32) -> (i32, i32) {
    %c0_i32 = arith.constant 0 : i32
    %c0_i32_0 = arith.constant 0 : i32
    return %arg0, %c0_i32 : i32, i32
  }
  func.func @transform_3(%arg0: i32) -> (i32, i32, i32) {
    %c0_i32 = arith.constant 0 : i32
    %c0_i32_0 = arith.constant 0 : i32
    %c0_i32_1 = arith.constant 0 : i32
    return %arg0, %c0_i32, %c0_i32_0 : i32, i32, i32
  }
}

module attributes {stable_mosaic.version = 11 : i64} {
  func.func @_bn_lrelu_kernel(%arg0: i32, %arg1: memref<128x32xbf16, #tpu.memory_space<vmem>>, %arg2: memref<1x32xf32, #tpu.memory_space<vmem>>, %arg3: memref<1x32xf32, #tpu.memory_space<vmem>>, %arg4: memref<128x32xbf16, #tpu.memory_space<vmem>>) attributes {dimension_semantics = [#tpu.dimension_semantics<parallel>], iteration_bounds = array<i64: 4>, scalar_prefetch = 0 : i64, scratch_operands = 0 : i64, tpu.core_type = #tpu.core_type<tc>, window_params = [{transform_indices = @transform_0, window_bounds = array<i64: 128, 32>}, {pipeline_mode = #tpu.pipeline_mode<synchronous>, transform_indices = @transform_1, window_bounds = array<i64: 1, 32>}, {pipeline_mode = #tpu.pipeline_mode<synchronous>, transform_indices = @transform_2, window_bounds = array<i64: 1, 32>}, {transform_indices = @transform_3, window_bounds = array<i64: 128, 32>}]} {
    %c0 = arith.constant 0 : index
    %c0_0 = arith.constant 0 : index
    %0 = vector.load %arg1[%c0, %c0_0] : memref<128x32xbf16, #tpu.memory_space<vmem>>, vector<128x32xbf16>
    %1 = arith.extf %0 : vector<128x32xbf16> to vector<128x32xf32>
    %c0_1 = arith.constant 0 : index
    %c0_2 = arith.constant 0 : index
    %2 = vector.load %arg2[%c0_1, %c0_2] : memref<1x32xf32, #tpu.memory_space<vmem>>, vector<1x32xf32>
    %3 = vector.broadcast %2 : vector<1x32xf32> to vector<128x32xf32>
    %4 = arith.mulf %1, %3 : vector<128x32xf32>
    %c0_3 = arith.constant 0 : index
    %c0_4 = arith.constant 0 : index
    %5 = vector.load %arg3[%c0_3, %c0_4] : memref<1x32xf32, #tpu.memory_space<vmem>>, vector<1x32xf32>
    %6 = vector.broadcast %5 : vector<1x32xf32> to vector<128x32xf32>
    %7 = arith.addf %4, %6 : vector<128x32xf32>
    %cst = arith.constant 0.000000e+00 : f32
    %8 = vector.broadcast %cst : f32 to vector<128x32xf32>
    %9 = arith.cmpf oge, %7, %8 : vector<128x32xf32>
    %cst_5 = arith.constant 2.000000e-01 : f32
    %10 = vector.broadcast %cst_5 : f32 to vector<128x32xf32>
    %11 = arith.mulf %10, %7 : vector<128x32xf32>
    %12 = arith.select %9, %7, %11 : vector<128x32xi1>, vector<128x32xf32>
    %13 = arith.truncf %12 : vector<128x32xf32> to vector<128x32xbf16>
    %c0_6 = arith.constant 0 : index
    %c0_7 = arith.constant 0 : index
    %14 = vector.load %arg4[%c0_6, %c0_7] : memref<128x32xbf16, #tpu.memory_space<vmem>>, vector<128x32xbf16>
    tpu.vector_store %arg4[%c0_6, %c0_7], %13 {strides = array<i32>} : memref<128x32xbf16, #tpu.memory_space<vmem>>, vector<128x32xbf16>,
    return
  }
  func.func @transform_0(%arg0: i32) -> (i32, i32) {
    %c0_i32 = arith.constant 0 : i32
    %c0_i32_0 = arith.constant 0 : i32
    return %arg0, %c0_i32 : i32, i32
  }
  func.func @transform_1(%arg0: i32) -> (i32, i32) {
    %c0_i32 = arith.constant 0 : i32
    %c0_i32_0 = arith.constant 0 : i32
    %c0_i32_1 = arith.constant 0 : i32
    return %c0_i32, %c0_i32_0 : i32, i32
  }
  func.func @transform_2(%arg0: i32) -> (i32, i32) {
    %c0_i32 = arith.constant 0 : i32
    %c0_i32_0 = arith.constant 0 : i32
    %c0_i32_1 = arith.constant 0 : i32
    return %c0_i32, %c0_i32_0 : i32, i32
  }
  func.func @transform_3(%arg0: i32) -> (i32, i32) {
    %c0_i32 = arith.constant 0 : i32
    %c0_i32_0 = arith.constant 0 : i32
    return %arg0, %c0_i32 : i32, i32
  }
}

module attributes {stable_mosaic.version = 11 : i64} {
  func.func @_matmul_stats_kernel(%arg0: i32, %arg1: memref<32x512xbf16, #tpu.memory_space<vmem>>, %arg2: memref<512x64xbf16, #tpu.memory_space<vmem>>, %arg3: memref<32x64xbf16, #tpu.memory_space<vmem>>, %arg4: memref<1x2x64xf32, #tpu.memory_space<vmem>>) attributes {dimension_semantics = [#tpu.dimension_semantics<parallel>], iteration_bounds = array<i64: 4>, scalar_prefetch = 0 : i64, scratch_operands = 0 : i64, tpu.core_type = #tpu.core_type<tc>, window_params = [{transform_indices = @transform_0, window_bounds = array<i64: 32, 512>}, {pipeline_mode = #tpu.pipeline_mode<synchronous>, transform_indices = @transform_1, window_bounds = array<i64: 512, 64>}, {transform_indices = @transform_2, window_bounds = array<i64: 32, 64>}, {transform_indices = @transform_3, window_bounds = array<i64: 1, 2, 64>}]} {
    %c0 = arith.constant 0 : index
    %c0_0 = arith.constant 0 : index
    %0 = vector.load %arg1[%c0, %c0_0] : memref<32x512xbf16, #tpu.memory_space<vmem>>, vector<32x512xbf16>
    %c0_1 = arith.constant 0 : index
    %c0_2 = arith.constant 0 : index
    %1 = vector.load %arg2[%c0_1, %c0_2] : memref<512x64xbf16, #tpu.memory_space<vmem>>, vector<512x64xbf16>
    %cst = arith.constant dense<0.000000e+00> : vector<32x64xf32>
    %2 = tpu.matmul %0, %1, %cst {dimension_numbers = #tpu.dot_dimension_numbers<[1], [0], [0], [1], [0, 0, 1, 1], [], []>} : vector<32x512xbf16>, vector<512x64xbf16>, vector<32x64xf32> -> vector<32x64xf32>
    %3 = arith.truncf %2 : vector<32x64xf32> to vector<32x64xbf16>
    %c0_3 = arith.constant 0 : index
    %c0_4 = arith.constant 0 : index
    %4 = vector.load %arg3[%c0_3, %c0_4] : memref<32x64xbf16, #tpu.memory_space<vmem>>, vector<32x64xbf16>
    tpu.vector_store %arg3[%c0_3, %c0_4], %3 {strides = array<i32>} : memref<32x64xbf16, #tpu.memory_space<vmem>>, vector<32x64xbf16>,
    %cst_5 = arith.constant dense<0.000000e+00> : vector<64xf32>
    %5 = vector.multi_reduction <add>, %2, %cst_5 [0] : vector<32x64xf32> to vector<64xf32>
    %6 = vector.shape_cast %5 : vector<64xf32> to vector<1x64xf32>
    %7 = arith.mulf %2, %2 : vector<32x64xf32>
    %cst_6 = arith.constant dense<0.000000e+00> : vector<64xf32>
    %8 = vector.multi_reduction <add>, %7, %cst_6 [0] : vector<32x64xf32> to vector<64xf32>
    %9 = vector.shape_cast %8 : vector<64xf32> to vector<1x64xf32>
    %10 = tpu.concatenate %6, %9 in 0 : vector<1x64xf32>, vector<1x64xf32> -> vector<2x64xf32>
    %11 = vector.shape_cast %10 : vector<2x64xf32> to vector<1x2x64xf32>
    %c0_7 = arith.constant 0 : index
    %c0_8 = arith.constant 0 : index
    %c0_9 = arith.constant 0 : index
    %12 = vector.load %arg4[%c0_7, %c0_8, %c0_9] : memref<1x2x64xf32, #tpu.memory_space<vmem>>, vector<1x2x64xf32>
    tpu.vector_store %arg4[%c0_7, %c0_8, %c0_9], %11 {strides = array<i32>} : memref<1x2x64xf32, #tpu.memory_space<vmem>>, vector<1x2x64xf32>,
    return
  }
  func.func @transform_0(%arg0: i32) -> (i32, i32) {
    %c0_i32 = arith.constant 0 : i32
    %c0_i32_0 = arith.constant 0 : i32
    return %arg0, %c0_i32 : i32, i32
  }
  func.func @transform_1(%arg0: i32) -> (i32, i32) {
    %c0_i32 = arith.constant 0 : i32
    %c0_i32_0 = arith.constant 0 : i32
    %c0_i32_1 = arith.constant 0 : i32
    return %c0_i32, %c0_i32_0 : i32, i32
  }
  func.func @transform_2(%arg0: i32) -> (i32, i32) {
    %c0_i32 = arith.constant 0 : i32
    %c0_i32_0 = arith.constant 0 : i32
    return %arg0, %c0_i32 : i32, i32
  }
  func.func @transform_3(%arg0: i32) -> (i32, i32, i32) {
    %c0_i32 = arith.constant 0 : i32
    %c0_i32_0 = arith.constant 0 : i32
    %c0_i32_1 = arith.constant 0 : i32
    return %arg0, %c0_i32, %c0_i32_0 : i32, i32, i32
  }
}

module attributes {stable_mosaic.version = 11 : i64} {
  func.func @_bn_lrelu_kernel(%arg0: i32, %arg1: memref<32x64xbf16, #tpu.memory_space<vmem>>, %arg2: memref<1x64xf32, #tpu.memory_space<vmem>>, %arg3: memref<1x64xf32, #tpu.memory_space<vmem>>, %arg4: memref<32x64xbf16, #tpu.memory_space<vmem>>) attributes {dimension_semantics = [#tpu.dimension_semantics<parallel>], iteration_bounds = array<i64: 4>, scalar_prefetch = 0 : i64, scratch_operands = 0 : i64, tpu.core_type = #tpu.core_type<tc>, window_params = [{transform_indices = @transform_0, window_bounds = array<i64: 32, 64>}, {pipeline_mode = #tpu.pipeline_mode<synchronous>, transform_indices = @transform_1, window_bounds = array<i64: 1, 64>}, {pipeline_mode = #tpu.pipeline_mode<synchronous>, transform_indices = @transform_2, window_bounds = array<i64: 1, 64>}, {transform_indices = @transform_3, window_bounds = array<i64: 32, 64>}]} {
    %c0 = arith.constant 0 : index
    %c0_0 = arith.constant 0 : index
    %0 = vector.load %arg1[%c0, %c0_0] : memref<32x64xbf16, #tpu.memory_space<vmem>>, vector<32x64xbf16>
    %1 = arith.extf %0 : vector<32x64xbf16> to vector<32x64xf32>
    %c0_1 = arith.constant 0 : index
    %c0_2 = arith.constant 0 : index
    %2 = vector.load %arg2[%c0_1, %c0_2] : memref<1x64xf32, #tpu.memory_space<vmem>>, vector<1x64xf32>
    %3 = vector.broadcast %2 : vector<1x64xf32> to vector<32x64xf32>
    %4 = arith.mulf %1, %3 : vector<32x64xf32>
    %c0_3 = arith.constant 0 : index
    %c0_4 = arith.constant 0 : index
    %5 = vector.load %arg3[%c0_3, %c0_4] : memref<1x64xf32, #tpu.memory_space<vmem>>, vector<1x64xf32>
    %6 = vector.broadcast %5 : vector<1x64xf32> to vector<32x64xf32>
    %7 = arith.addf %4, %6 : vector<32x64xf32>
    %cst = arith.constant 0.000000e+00 : f32
    %8 = vector.broadcast %cst : f32 to vector<32x64xf32>
    %9 = arith.cmpf oge, %7, %8 : vector<32x64xf32>
    %cst_5 = arith.constant 2.000000e-01 : f32
    %10 = vector.broadcast %cst_5 : f32 to vector<32x64xf32>
    %11 = arith.mulf %10, %7 : vector<32x64xf32>
    %12 = arith.select %9, %7, %11 : vector<32x64xi1>, vector<32x64xf32>
    %13 = arith.truncf %12 : vector<32x64xf32> to vector<32x64xbf16>
    %c0_6 = arith.constant 0 : index
    %c0_7 = arith.constant 0 : index
    %14 = vector.load %arg4[%c0_6, %c0_7] : memref<32x64xbf16, #tpu.memory_space<vmem>>, vector<32x64xbf16>
    tpu.vector_store %arg4[%c0_6, %c0_7], %13 {strides = array<i32>} : memref<32x64xbf16, #tpu.memory_space<vmem>>, vector<32x64xbf16>,
    return
  }
  func.func @transform_0(%arg0: i32) -> (i32, i32) {
    %c0_i32 = arith.constant 0 : i32
    %c0_i32_0 = arith.constant 0 : i32
    return %arg0, %c0_i32 : i32, i32
  }
  func.func @transform_1(%arg0: i32) -> (i32, i32) {
    %c0_i32 = arith.constant 0 : i32
    %c0_i32_0 = arith.constant 0 : i32
    %c0_i32_1 = arith.constant 0 : i32
    return %c0_i32, %c0_i32_0 : i32, i32
  }
  func.func @transform_2(%arg0: i32) -> (i32, i32) {
    %c0_i32 = arith.constant 0 : i32
    %c0_i32_0 = arith.constant 0 : i32
    %c0_i32_1 = arith.constant 0 : i32
    return %c0_i32, %c0_i32_0 : i32, i32
  }
  func.func @transform_3(%arg0: i32) -> (i32, i32) {
    %c0_i32 = arith.constant 0 : i32
    %c0_i32_0 = arith.constant 0 : i32
    return %arg0, %c0_i32 : i32, i32
  }
}

module attributes {stable_mosaic.version = 11 : i64} {
  func.func @_matmul_stats_kernel(%arg0: i32, %arg1: memref<8x1024xbf16, #tpu.memory_space<vmem>>, %arg2: memref<1024x128xbf16, #tpu.memory_space<vmem>>, %arg3: memref<8x128xbf16, #tpu.memory_space<vmem>>, %arg4: memref<1x2x128xf32, #tpu.memory_space<vmem>>) attributes {dimension_semantics = [#tpu.dimension_semantics<parallel>], iteration_bounds = array<i64: 4>, scalar_prefetch = 0 : i64, scratch_operands = 0 : i64, tpu.core_type = #tpu.core_type<tc>, window_params = [{transform_indices = @transform_0, window_bounds = array<i64: 8, 1024>}, {pipeline_mode = #tpu.pipeline_mode<synchronous>, transform_indices = @transform_1, window_bounds = array<i64: 1024, 128>}, {transform_indices = @transform_2, window_bounds = array<i64: 8, 128>}, {transform_indices = @transform_3, window_bounds = array<i64: 1, 2, 128>}]} {
    %c0 = arith.constant 0 : index
    %c0_0 = arith.constant 0 : index
    %0 = vector.load %arg1[%c0, %c0_0] : memref<8x1024xbf16, #tpu.memory_space<vmem>>, vector<8x1024xbf16>
    %c0_1 = arith.constant 0 : index
    %c0_2 = arith.constant 0 : index
    %1 = vector.load %arg2[%c0_1, %c0_2] : memref<1024x128xbf16, #tpu.memory_space<vmem>>, vector<1024x128xbf16>
    %cst = arith.constant dense<0.000000e+00> : vector<8x128xf32>
    %2 = tpu.matmul %0, %1, %cst {dimension_numbers = #tpu.dot_dimension_numbers<[1], [0], [0], [1], [0, 0, 1, 1], [], []>} : vector<8x1024xbf16>, vector<1024x128xbf16>, vector<8x128xf32> -> vector<8x128xf32>
    %3 = arith.truncf %2 : vector<8x128xf32> to vector<8x128xbf16>
    %c0_3 = arith.constant 0 : index
    %c0_4 = arith.constant 0 : index
    %4 = vector.load %arg3[%c0_3, %c0_4] : memref<8x128xbf16, #tpu.memory_space<vmem>>, vector<8x128xbf16>
    tpu.vector_store %arg3[%c0_3, %c0_4], %3 {strides = array<i32>} : memref<8x128xbf16, #tpu.memory_space<vmem>>, vector<8x128xbf16>,
    %cst_5 = arith.constant dense<0.000000e+00> : vector<128xf32>
    %5 = vector.multi_reduction <add>, %2, %cst_5 [0] : vector<8x128xf32> to vector<128xf32>
    %6 = vector.shape_cast %5 : vector<128xf32> to vector<1x128xf32>
    %7 = arith.mulf %2, %2 : vector<8x128xf32>
    %cst_6 = arith.constant dense<0.000000e+00> : vector<128xf32>
    %8 = vector.multi_reduction <add>, %7, %cst_6 [0] : vector<8x128xf32> to vector<128xf32>
    %9 = vector.shape_cast %8 : vector<128xf32> to vector<1x128xf32>
    %10 = tpu.concatenate %6, %9 in 0 : vector<1x128xf32>, vector<1x128xf32> -> vector<2x128xf32>
    %11 = vector.shape_cast %10 : vector<2x128xf32> to vector<1x2x128xf32>
    %c0_7 = arith.constant 0 : index
    %c0_8 = arith.constant 0 : index
    %c0_9 = arith.constant 0 : index
    %12 = vector.load %arg4[%c0_7, %c0_8, %c0_9] : memref<1x2x128xf32, #tpu.memory_space<vmem>>, vector<1x2x128xf32>
    tpu.vector_store %arg4[%c0_7, %c0_8, %c0_9], %11 {strides = array<i32>} : memref<1x2x128xf32, #tpu.memory_space<vmem>>, vector<1x2x128xf32>,
    return
  }
  func.func @transform_0(%arg0: i32) -> (i32, i32) {
    %c0_i32 = arith.constant 0 : i32
    %c0_i32_0 = arith.constant 0 : i32
    return %arg0, %c0_i32 : i32, i32
  }
  func.func @transform_1(%arg0: i32) -> (i32, i32) {
    %c0_i32 = arith.constant 0 : i32
    %c0_i32_0 = arith.constant 0 : i32
    %c0_i32_1 = arith.constant 0 : i32
    return %c0_i32, %c0_i32_0 : i32, i32
  }
  func.func @transform_2(%arg0: i32) -> (i32, i32) {
    %c0_i32 = arith.constant 0 : i32
    %c0_i32_0 = arith.constant 0 : i32
    return %arg0, %c0_i32 : i32, i32
  }
  func.func @transform_3(%arg0: i32) -> (i32, i32, i32) {
    %c0_i32 = arith.constant 0 : i32
    %c0_i32_0 = arith.constant 0 : i32
    %c0_i32_1 = arith.constant 0 : i32
    return %arg0, %c0_i32, %c0_i32_0 : i32, i32, i32
  }
}

module attributes {stable_mosaic.version = 11 : i64} {
  func.func @_bn_lrelu_kernel(%arg0: i32, %arg1: memref<8x128xbf16, #tpu.memory_space<vmem>>, %arg2: memref<1x128xf32, #tpu.memory_space<vmem>>, %arg3: memref<1x128xf32, #tpu.memory_space<vmem>>, %arg4: memref<8x128xbf16, #tpu.memory_space<vmem>>) attributes {dimension_semantics = [#tpu.dimension_semantics<parallel>], iteration_bounds = array<i64: 4>, scalar_prefetch = 0 : i64, scratch_operands = 0 : i64, tpu.core_type = #tpu.core_type<tc>, window_params = [{transform_indices = @transform_0, window_bounds = array<i64: 8, 128>}, {pipeline_mode = #tpu.pipeline_mode<synchronous>, transform_indices = @transform_1, window_bounds = array<i64: 1, 128>}, {pipeline_mode = #tpu.pipeline_mode<synchronous>, transform_indices = @transform_2, window_bounds = array<i64: 1, 128>}, {transform_indices = @transform_3, window_bounds = array<i64: 8, 128>}]} {
    %c0 = arith.constant 0 : index
    %c0_0 = arith.constant 0 : index
    %0 = vector.load %arg1[%c0, %c0_0] : memref<8x128xbf16, #tpu.memory_space<vmem>>, vector<8x128xbf16>
    %1 = arith.extf %0 : vector<8x128xbf16> to vector<8x128xf32>
    %c0_1 = arith.constant 0 : index
    %c0_2 = arith.constant 0 : index
    %2 = vector.load %arg2[%c0_1, %c0_2] : memref<1x128xf32, #tpu.memory_space<vmem>>, vector<1x128xf32>
    %3 = vector.broadcast %2 : vector<1x128xf32> to vector<8x128xf32>
    %4 = arith.mulf %1, %3 : vector<8x128xf32>
    %c0_3 = arith.constant 0 : index
    %c0_4 = arith.constant 0 : index
    %5 = vector.load %arg3[%c0_3, %c0_4] : memref<1x128xf32, #tpu.memory_space<vmem>>, vector<1x128xf32>
    %6 = vector.broadcast %5 : vector<1x128xf32> to vector<8x128xf32>
    %7 = arith.addf %4, %6 : vector<8x128xf32>
    %cst = arith.constant 0.000000e+00 : f32
    %8 = vector.broadcast %cst : f32 to vector<8x128xf32>
    %9 = arith.cmpf oge, %7, %8 : vector<8x128xf32>
    %cst_5 = arith.constant 2.000000e-01 : f32
    %10 = vector.broadcast %cst_5 : f32 to vector<8x128xf32>
    %11 = arith.mulf %10, %7 : vector<8x128xf32>
    %12 = arith.select %9, %7, %11 : vector<8x128xi1>, vector<8x128xf32>
    %13 = arith.truncf %12 : vector<8x128xf32> to vector<8x128xbf16>
    %c0_6 = arith.constant 0 : index
    %c0_7 = arith.constant 0 : index
    %14 = vector.load %arg4[%c0_6, %c0_7] : memref<8x128xbf16, #tpu.memory_space<vmem>>, vector<8x128xbf16>
    tpu.vector_store %arg4[%c0_6, %c0_7], %13 {strides = array<i32>} : memref<8x128xbf16, #tpu.memory_space<vmem>>, vector<8x128xbf16>,
    return
  }
  func.func @transform_0(%arg0: i32) -> (i32, i32) {
    %c0_i32 = arith.constant 0 : i32
    %c0_i32_0 = arith.constant 0 : i32
    return %arg0, %c0_i32 : i32, i32
  }
  func.func @transform_1(%arg0: i32) -> (i32, i32) {
    %c0_i32 = arith.constant 0 : i32
    %c0_i32_0 = arith.constant 0 : i32
    %c0_i32_1 = arith.constant 0 : i32
    return %c0_i32, %c0_i32_0 : i32, i32
  }
  func.func @transform_2(%arg0: i32) -> (i32, i32) {
    %c0_i32 = arith.constant 0 : i32
    %c0_i32_0 = arith.constant 0 : i32
    %c0_i32_1 = arith.constant 0 : i32
    return %c0_i32, %c0_i32_0 : i32, i32
  }
  func.func @transform_3(%arg0: i32) -> (i32, i32) {
    %c0_i32 = arith.constant 0 : i32
    %c0_i32_0 = arith.constant 0 : i32
    return %arg0, %c0_i32 : i32, i32
  }
}

module attributes {stable_mosaic.version = 11 : i64} {
  func.func @_matmul_act_kernel(%arg0: i32, %arg1: memref<8x2048xbf16, #tpu.memory_space<vmem>>, %arg2: memref<2048x1xbf16, #tpu.memory_space<vmem>>, %arg3: memref<8x1xf32, #tpu.memory_space<vmem>>) attributes {dimension_semantics = [#tpu.dimension_semantics<parallel>], iteration_bounds = array<i64: 1>, scalar_prefetch = 0 : i64, scratch_operands = 0 : i64, tpu.core_type = #tpu.core_type<tc>, window_params = [{transform_indices = @transform_0, window_bounds = array<i64: 8, 2048>}, {pipeline_mode = #tpu.pipeline_mode<synchronous>, transform_indices = @transform_1, window_bounds = array<i64: 2048, 1>}, {transform_indices = @transform_2, window_bounds = array<i64: 8, 1>}]} {
    %c0 = arith.constant 0 : index
    %c0_0 = arith.constant 0 : index
    %0 = vector.load %arg1[%c0, %c0_0] : memref<8x2048xbf16, #tpu.memory_space<vmem>>, vector<8x2048xbf16>
    %c0_1 = arith.constant 0 : index
    %c0_2 = arith.constant 0 : index
    %1 = vector.load %arg2[%c0_1, %c0_2] : memref<2048x1xbf16, #tpu.memory_space<vmem>>, vector<2048x1xbf16>
    %cst = arith.constant dense<0.000000e+00> : vector<8x1xf32>
    %2 = tpu.matmul %0, %1, %cst {dimension_numbers = #tpu.dot_dimension_numbers<[1], [0], [0], [1], [0, 0, 1, 1], [], []>} : vector<8x2048xbf16>, vector<2048x1xbf16>, vector<8x1xf32> -> vector<8x1xf32>
    %cst_3 = arith.constant 5.000000e-01 : f32
    %3 = vector.broadcast %cst_3 : f32 to vector<8x1xf32>
    %4 = arith.mulf %3, %2 : vector<8x1xf32>
    %5 = math.tanh %4 : vector<8x1xf32>
    %cst_4 = arith.constant 1.000000e+00 : f32
    %6 = vector.broadcast %cst_4 : f32 to vector<8x1xf32>
    %7 = arith.addf %5, %6 : vector<8x1xf32>
    %cst_5 = arith.constant 5.000000e-01 : f32
    %8 = vector.broadcast %cst_5 : f32 to vector<8x1xf32>
    %9 = arith.mulf %8, %7 : vector<8x1xf32>
    %c0_6 = arith.constant 0 : index
    %c0_7 = arith.constant 0 : index
    %10 = vector.load %arg3[%c0_6, %c0_7] : memref<8x1xf32, #tpu.memory_space<vmem>>, vector<8x1xf32>
    tpu.vector_store %arg3[%c0_6, %c0_7], %9 {strides = array<i32>} : memref<8x1xf32, #tpu.memory_space<vmem>>, vector<8x1xf32>,
    return
  }
  func.func @transform_0(%arg0: i32) -> (i32, i32) {
    %c0_i32 = arith.constant 0 : i32
    %c0_i32_0 = arith.constant 0 : i32
    return %arg0, %c0_i32 : i32, i32
  }
  func.func @transform_1(%arg0: i32) -> (i32, i32) {
    %c0_i32 = arith.constant 0 : i32
    %c0_i32_0 = arith.constant 0 : i32
    %c0_i32_1 = arith.constant 0 : i32
    return %c0_i32, %c0_i32_0 : i32, i32
  }
  func.func @transform_2(%arg0: i32) -> (i32, i32) {
    %c0_i32 = arith.constant 0 : i32
    %c0_i32_0 = arith.constant 0 : i32
    return %arg0, %c0_i32 : i32, i32
  }
}

</mosaic_0001>

<bundles_post_ra>
// kernel: discriminator_forward.8
= control target key start
LH: loop header
LB: loop body
LE: loop exit
PB: predicated region body
PF: predicated region fallthrough
CT: control target
= control target key end

     0   :  { %s1279_s9 = smov 0   ;;  %s1491_s0 = inlined_call_operand.vmem [shape: bf16[2048,128], index: 0, kind: input, shape index: {}]   ;;  %s1492_s1 = inlined_call_operand.vmem [shape: bf16[128,16], index: 1, kind: input, shape index: {}]   ;;  %s1493_s2 = inlined_call_operand.vmem [shape: bf16[2048,16], index: 2, kind: output, shape index: {}]  }
   0x1 LB: > { %s1013_s10 = sadd.s32 4294967295, %s1262_s9   ;;  %p1017_p0 = scmp.ge.s32.totalorder %s1262_s9, 1  ;;  %s1262_s9 = sphi %s1279_s9, %s12_s9  }
   0x2   : > { %p113_p1 = scmp.lt.s32.totalorder %s1262_s9, 5 }
   0x4   : > { %p114_p2 = pnand %p1017_p0, %p113_p1 }
   0x5   : > { %s1018_s19 = sshll.u32 (!%p114_p2), %s1013_s10, 6 }
   0x6   : > { %117 = sbr.rel (%p114_p2) target bundleno = 303 (0x12f), region = 28  ;;  %p136_p3 = scmp.lt.s32.totalorder (!%p114_p2), %s1018_s19, 255 }
   0xb   : > { %v1223_v0 = vld [vmem:[%s1492_s1 + $0x38] sm:$0xff]  ;;  %v1222_v1 = vld [vmem:[%s1492_s1 + $0x30] sm:$0xff]  ;;  %v1221_v2 = vld [vmem:[%s1492_s1 + $0x28] sm:$0xff]  ;;  %s1495_s19 = smov (!%p136_p3, %s1018_s19), 255  ;;  %vm892_vm2 = vcmask 125952  }
   0xc   : > { %467 = vmatpush.bf16.msra.mxu0 %v1223_v0  ;;  %1224 = vmatpush.bf16.msra.mxu1 %v1223_v0  ;;  %v1220_v3 = vld [vmem:[%s1492_s1 + $0x20] sm:$0xff]  ;;  %v1219_v4 = vld [vmem:[%s1492_s1 + $0x18] sm:$0xff]  ;;  %v1218_v5 = vld [vmem:[%s1492_s1 + $0x10] sm:$0xff]  ;;  %s1019_s26 = sshll.u32 %s1495_s19, 2 }
   0xd   : > { %1225 = vmatpush.bf16.msra.mxu2 %v1223_v0  ;;  %1226 = vmatpush.bf16.msra.mxu3 %v1223_v0  ;;  %v1217_v6 = vld [vmem:[%s1492_s1 + $0x8] sm:$0xff]  ;;  %v1216_v7 = vld [vmem:[%s1492_s1] sm:$0xff]  ;;  %s1319_s3 = scalar_lea.vmem %s1491_s0, %s1019_s26  ;;  %s1358_s6 = scalar_lea.vmem %s1493_s2, %s1019_s26 }
   0xe   : > { %v1184_v8 = vld [vmem:[%s1319_s3] sm:$0xff]  ;;  %v1185_v12 = vld [vmem:[%s1319_s3 + $0x8] sm:$0xff]  ;;  %v1186_v16 = vld [vmem:[%s1319_s3 + $0x10] sm:$0xff] }
   0xf   : > { %v1192_v9 = vld [vmem:[%s1319_s3 + $0x40] sm:$0xff]  ;;  %v1193_v13 = vld [vmem:[%s1319_s3 + $0x48] sm:$0xff]  ;;  %v1194_v17 = vld [vmem:[%s1319_s3 + $0x50] sm:$0xff] }
  0x10   : > { %468 = vmatpush.bf16.msra.mxu0 %v1222_v1  ;;  %1227 = vmatpush.bf16.msra.mxu1 %v1222_v1  ;;  %v1200_v10 = vld [vmem:[%s1319_s3 + $0x80] sm:$0xff]  ;;  %v1201_v14 = vld [vmem:[%s1319_s3 + $0x88] sm:$0xff]  ;;  %v1202_v18 = vld [vmem:[%s1319_s3 + $0x90] sm:$0xff] }
  0x11   : > { %1228 = vmatpush.bf16.msra.mxu2 %v1222_v1  ;;  %1229 = vmatpush.bf16.msra.mxu3 %v1222_v1  ;;  %v1208_v11 = vld [vmem:[%s1319_s3 + $0xc0] sm:$0xff]  ;;  %v1209_v15 = vld [vmem:[%s1319_s3 + $0xc8] sm:$0xff]  ;;  %v1210_v19 = vld [vmem:[%s1319_s3 + $0xd0] sm:$0xff] }
  0x12   : > { %v1187_v20 = vld [vmem:[%s1319_s3 + $0x18] sm:$0xff]  ;;  %v1188_v24 = vld [vmem:[%s1319_s3 + $0x20] sm:$0xff]  ;;  %v1189_v28 = vld [vmem:[%s1319_s3 + $0x28] sm:$0xff] }
  0x13   : > { %v1195_v21 = vld [vmem:[%s1319_s3 + $0x58] sm:$0xff]  ;;  %v1196_v25 = vld [vmem:[%s1319_s3 + $0x60] sm:$0xff]  ;;  %v1197_v29 = vld [vmem:[%s1319_s3 + $0x68] sm:$0xff] }
  0x14   : > { %469 = vmatpush.bf16.msra.mxu0 %v1221_v2  ;;  %1230 = vmatpush.bf16.msra.mxu1 %v1221_v2  ;;  %v1203_v22 = vld [vmem:[%s1319_s3 + $0x98] sm:$0xff]  ;;  %v1204_v26 = vld [vmem:[%s1319_s3 + $0xa0] sm:$0xff]  ;;  %v1205_v30 = vld [vmem:[%s1319_s3 + $0xa8] sm:$0xff] }
  0x15   : > { %1231 = vmatpush.bf16.msra.mxu2 %v1221_v2  ;;  %1232 = vmatpush.bf16.msra.mxu3 %v1221_v2  ;;  %v1211_v23 = vld [vmem:[%s1319_s3 + $0xd8] sm:$0xff]  ;;  %v1212_v27 = vld [vmem:[%s1319_s3 + $0xe0] sm:$0xff]  ;;  %v1213_v31 = vld [vmem:[%s1319_s3 + $0xe8] sm:$0xff] }
  0x16   : > { %v1190_v32 = vld [vmem:[%s1319_s3 + $0x30] sm:$0xff]  ;;  %v1191_v36 = vld [vmem:[%s1319_s3 + $0x38] sm:$0xff] }
  0x17   : > { %v1198_v33 = vld [vmem:[%s1319_s3 + $0x70] sm:$0xff]  ;;  %v1199_v37 = vld [vmem:[%s1319_s3 + $0x78] sm:$0xff] }
  0x18   : > { %470 = vmatpush.bf16.msra.mxu0 %v1220_v3  ;;  %1233 = vmatpush.bf16.msra.mxu1 %v1220_v3  ;;  %v1206_v34 = vld [vmem:[%s1319_s3 + $0xb0] sm:$0xff]  ;;  %v1207_v38 = vld [vmem:[%s1319_s3 + $0xb8] sm:$0xff] }
  0x19   : > { %1234 = vmatpush.bf16.msra.mxu2 %v1220_v3  ;;  %1235 = vmatpush.bf16.msra.mxu3 %v1220_v3  ;;  %v1214_v35 = vld [vmem:[%s1319_s3 + $0xf0] sm:$0xff]  ;;  %v1215_v39 = vld [vmem:[%s1319_s3 + $0xf8] sm:$0xff] }
  0x1c   : > { %471 = vmatpush.bf16.msra.mxu0 %v1219_v4  ;;  %1236 = vmatpush.bf16.msra.mxu1 %v1219_v4 }
  0x1d   : > { %1237 = vmatpush.bf16.msra.mxu2 %v1219_v4  ;;  %1238 = vmatpush.bf16.msra.mxu3 %v1219_v4 }
  0x20   : > { %472 = vmatpush.bf16.msra.mxu0 %v1218_v5  ;;  %1239 = vmatpush.bf16.msra.mxu1 %v1218_v5 }
  0x21   : > { %1240 = vmatpush.bf16.msra.mxu2 %v1218_v5  ;;  %1241 = vmatpush.bf16.msra.mxu3 %v1218_v5 }
  0x24   : > { %473 = vmatpush.bf16.msra.mxu0 %v1217_v6  ;;  %1242 = vmatpush.bf16.msra.mxu1 %v1217_v6 }
  0x25   : > { %1243 = vmatpush.bf16.msra.mxu2 %v1217_v6  ;;  %1244 = vmatpush.bf16.msra.mxu3 %v1217_v6 }
  0x28   : > { %474 = vmatpush.bf16.msra.mxu0 %v1216_v7  ;;  %1245 = vmatpush.bf16.msra.mxu1 %v1216_v7 }
  0x29   : > { %1246 = vmatpush.bf16.msra.mxu2 %v1216_v7  ;;  %1247 = vmatpush.bf16.msra.mxu3 %v1216_v7 }
  0x2b   : > { %475 = vmatmul.bf16.vlgmr.msra.gmra.mxu0 %v1184_v8  ;;  %515 = vmatmul.bf16.vlgmr.msra.gmra.mxu1 %v1192_v9 }
  0x2c   : > { %555 = vmatmul.bf16.vlgmr.msra.gmra.mxu2 %v1200_v10  ;;  %595 = vmatmul.bf16.vlgmr.msra.gmra.mxu3 %v1208_v11 }
  0x3b   : > { %480 = vmatmul.bf16.gmra.mxu0 %v1185_v12  ;;  %520 = vmatmul.bf16.gmra.mxu1 %v1193_v13 }
  0x3c   : > { %560 = vmatmul.bf16.gmra.mxu2 %v1201_v14  ;;  %600 = vmatmul.bf16.gmra.mxu3 %v1209_v15 }
  0x4b   : > { %485 = vmatmul.bf16.gmra.mxu0 %v1186_v16  ;;  %525 = vmatmul.bf16.gmra.mxu1 %v1194_v17 }
  0x4c   : > { %565 = vmatmul.bf16.gmra.mxu2 %v1202_v18  ;;  %605 = vmatmul.bf16.gmra.mxu3 %v1210_v19 }
  0x5b   : > { %490 = vmatmul.bf16.gmra.mxu0 %v1187_v20  ;;  %530 = vmatmul.bf16.gmra.mxu1 %v1195_v21 }
  0x5c   : > { %570 = vmatmul.bf16.gmra.mxu2 %v1203_v22  ;;  %610 = vmatmul.bf16.gmra.mxu3 %v1211_v23 }
  0x6b   : > { %495 = vmatmul.bf16.gmra.mxu0 %v1188_v24  ;;  %535 = vmatmul.bf16.gmra.mxu1 %v1196_v25 }
  0x6c   : > { %575 = vmatmul.bf16.gmra.mxu2 %v1204_v26  ;;  %615 = vmatmul.bf16.gmra.mxu3 %v1212_v27 }
  0x7b   : > { %500 = vmatmul.bf16.gmra.mxu0 %v1189_v28  ;;  %540 = vmatmul.bf16.gmra.mxu1 %v1197_v29 }
  0x7c   : > { %580 = vmatmul.bf16.gmra.mxu2 %v1205_v30  ;;  %620 = vmatmul.bf16.gmra.mxu3 %v1213_v31 }
  0x8b   : > { %505 = vmatmul.bf16.gmra.mxu0 %v1190_v32  ;;  %545 = vmatmul.bf16.gmra.mxu1 %v1198_v33 }
  0x8c   : > { %585 = vmatmul.bf16.gmra.mxu2 %v1206_v34  ;;  %625 = vmatmul.bf16.gmra.mxu3 %v1214_v35 }
  0x9b   : > { %510 = vmatmul.bf16.gmra.mxu0 %v1191_v36  ;;  %550 = vmatmul.bf16.gmra.mxu1 %v1199_v37 }
  0x9c   : > { %590 = vmatmul.bf16.gmra.mxu2 %v1207_v38  ;;  %630 = vmatmul.bf16.gmra.mxu3 %v1215_v39 }
  0xa8   : > { %v476_v40 = vpop.f32.mrf.mxu0  ;;  %v516_v41 = vpop.f32.mrf.mxu1 }
  0xa9   : > { %vm636_vm0 = vcmp.ge.f32.partialorder %v476_v40, 0.0  ;;  %v700_v42 = vmul.f32 0.2, %v476_v40  ;;  %vm652_vm1 = vcmp.ge.f32.partialorder %v516_v41, 0.0  ;;  %v716_v43 = vmul.f32 0.2, %v516_v41 }
  0xab   : > { %v764_v44 = vsel %vm636_vm0, %v476_v40, %v700_v42  ;;  %v780_v45 = vsel %vm652_vm1, %v516_v41, %v716_v43 }
  0xac   : > { %v828_v46 = vpack.c.bf16 %v764_v44, %v764_v44  ;;  %v844_v47 = vpack.c.bf16 %v780_v45, %v780_v45 }
  0xae   : > { %893 = vst.msk [vmem:[%s1358_s6] sm:$0xf] %vm892_vm2, %v828_v46 }
  0xaf   : > { %909 = vst.msk [vmem:[%s1358_s6 + $0x40] sm:$0xf] %vm892_vm2, %v844_v47  ;;  %v556_v48 = vpop.f32.mrf.mxu2  ;;  %v596_v49 = vpop.f32.mrf.mxu3 }
  0xb0   : > { %vm668_vm3 = vcmp.ge.f32.partialorder %v556_v48, 0.0  ;;  %v732_v50 = vmul.f32 0.2, %v556_v48  ;;  %vm684_vm4 = vcmp.ge.f32.partialorder %v596_v49, 0.0  ;;  %v748_v51 = vmul.f32 0.2, %v596_v49  ;;  %v478_v52 = vpop.f32.mrf.mxu0  ;;  %v518_v53 = vpop.f32.mrf.mxu1 }
  0xb1   : > { %vm637_vm5 = vcmp.ge.f32.partialorder %v478_v52, 0.0  ;;  %v701_v54 = vmul.f32 0.2, %v478_v52  ;;  %vm653_vm6 = vcmp.ge.f32.partialorder %v518_v53, 0.0  ;;  %v717_v55 = vmul.f32 0.2, %v518_v53 }
  0xb2   : > { %v796_v56 = vsel %vm668_vm3, %v556_v48, %v732_v50  ;;  %v812_v57 = vsel %vm684_vm4, %v596_v49, %v748_v51 }
  0xb3   : > { %v860_v58 = vpack.c.bf16 %v796_v56, %v796_v56  ;;  %v876_v59 = vpack.c.bf16 %v812_v57, %v812_v57  ;;  %v765_v60 = vsel %vm637_vm5, %v478_v52, %v701_v54  ;;  %v781_v61 = vsel %vm653_vm6, %v518_v53, %v717_v55 }
  0xb4   : > { %v829_v62 = vpack.c.bf16 %v765_v60, %v765_v60  ;;  %v845_v63 = vpack.c.bf16 %v781_v61, %v781_v61 }
  0xb5   : > { %925 = vst.msk [vmem:[%s1358_s6 + $0x80] sm:$0xf] %vm892_vm2, %v860_v58 }
  0xb6   : > { %941 = vst.msk [vmem:[%s1358_s6 + $0xc0] sm:$0xf] %vm892_vm2, %v876_v59 }
  0xb7   : > { %894 = vst.msk [vmem:[%s1358_s6 + $0x4] sm:$0xf] %vm892_vm2, %v829_v62  ;;  %v558_v0 = vpop.f32.mrf.mxu2  ;;  %v598_v1 = vpop.f32.mrf.mxu3 }
  0xb8   : > { %910 = vst.msk [vmem:[%s1358_s6 + $0x44] sm:$0xf] %vm892_vm2, %v845_v63  ;;  %vm669_vm7 = vcmp.ge.f32.partialorder %v558_v0, 0.0  ;;  %v733_v2 = vmul.f32 0.2, %v558_v0  ;;  %vm685_vm8 = vcmp.ge.f32.partialorder %v598_v1, 0.0  ;;  %v481_v3 = vpop.f32.mrf.mxu0  ;;  %v521_v4 = vpop.f32.mrf.mxu1 }
  0xb9   : > { %v749_v5 = vmul.f32 0.2, %v598_v1  ;;  %vm638_vm9 = vcmp.ge.f32.partialorder %v481_v3, 0.0  ;;  %v702_v6 = vmul.f32 0.2, %v481_v3  ;;  %vm654_vm10 = vcmp.ge.f32.partialorder %v521_v4, 0.0 }
  0xba   : > { %v797_v7 = vsel %vm669_vm7, %v558_v0, %v733_v2  ;;  %v718_v8 = vmul.f32 0.2, %v521_v4 }
  0xbb   : > { %v861_v9 = vpack.c.bf16 %v797_v7, %v797_v7  ;;  %v813_v10 = vsel %vm685_vm8, %v598_v1, %v749_v5  ;;  %v766_v11 = vsel %vm638_vm9, %v481_v3, %v702_v6 }
  0xbc   : > { %v877_v12 = vpack.c.bf16 %v813_v10, %v813_v10  ;;  %v830_v13 = vpack.c.bf16 %v766_v11, %v766_v11  ;;  %v782_v14 = vsel %vm654_vm10, %v521_v4, %v718_v8 }
  0xbd   : > { %926 = vst.msk [vmem:[%s1358_s6 + $0x84] sm:$0xf] %vm892_vm2, %v861_v9  ;;  %v846_v15 = vpack.c.bf16 %v782_v14, %v782_v14 }
  0xbe   : > { %942 = vst.msk [vmem:[%s1358_s6 + $0xc4] sm:$0xf] %vm892_vm2, %v877_v12 }
  0xbf   : > { %895 = vst.msk [vmem:[%s1358_s6 + $0x8] sm:$0xf] %vm892_vm2, %v830_v13  ;;  %v561_v16 = vpop.f32.mrf.mxu2  ;;  %v601_v17 = vpop.f32.mrf.mxu3 }
  0xc0   : > { %911 = vst.msk [vmem:[%s1358_s6 + $0x48] sm:$0xf] %vm892_vm2, %v846_v15  ;;  %vm670_vm11 = vcmp.ge.f32.partialorder %v561_v16, 0.0  ;;  %v734_v18 = vmul.f32 0.2, %v561_v16  ;;  %vm686_vm12 = vcmp.ge.f32.partialorder %v601_v17, 0.0  ;;  %v483_v19 = vpop.f32.mrf.mxu0  ;;  %v523_v20 = vpop.f32.mrf.mxu1 }
  0xc1   : > { %v750_v21 = vmul.f32 0.2, %v601_v17  ;;  %vm639_vm13 = vcmp.ge.f32.partialorder %v483_v19, 0.0  ;;  %v703_v22 = vmul.f32 0.2, %v483_v19  ;;  %vm655_vm14 = vcmp.ge.f32.partialorder %v523_v20, 0.0 }
  0xc2   : > { %v798_v23 = vsel %vm670_vm11, %v561_v16, %v734_v18  ;;  %v719_v24 = vmul.f32 0.2, %v523_v20 }
  0xc3   : > { %v862_v25 = vpack.c.bf16 %v798_v23, %v798_v23  ;;  %v814_v26 = vsel %vm686_vm12, %v601_v17, %v750_v21  ;;  %v767_v27 = vsel %vm639_vm13, %v483_v19, %v703_v22 }
  0xc4   : > { %v878_v28 = vpack.c.bf16 %v814_v26, %v814_v26  ;;  %v831_v29 = vpack.c.bf16 %v767_v27, %v767_v27  ;;  %v783_v30 = vsel %vm655_vm14, %v523_v20, %v719_v24 }
  0xc5   : > { %927 = vst.msk [vmem:[%s1358_s6 + $0x88] sm:$0xf] %vm892_vm2, %v862_v25  ;;  %v847_v31 = vpack.c.bf16 %v783_v30, %v783_v30 }
  0xc6   : > { %943 = vst.msk [vmem:[%s1358_s6 + $0xc8] sm:$0xf] %vm892_vm2, %v878_v28 }
  0xc7   : > { %896 = vst.msk [vmem:[%s1358_s6 + $0xc] sm:$0xf] %vm892_vm2, %v831_v29  ;;  %v563_v32 = vpop.f32.mrf.mxu2  ;;  %v603_v33 = vpop.f32.mrf.mxu3 }
  0xc8   : > { %912 = vst.msk [vmem:[%s1358_s6 + $0x4c] sm:$0xf] %vm892_vm2, %v847_v31  ;;  %vm671_vm15 = vcmp.ge.f32.partialorder %v563_v32, 0.0  ;;  %v735_v34 = vmul.f32 0.2, %v563_v32  ;;  %vm687_vm0 = vcmp.ge.f32.partialorder %v603_v33, 0.0  ;;  %v486_v35 = vpop.f32.mrf.mxu0  ;;  %v526_v36 = vpop.f32.mrf.mxu1 }
  0xc9   : > { %v751_v37 = vmul.f32 0.2, %v603_v33  ;;  %vm640_vm1 = vcmp.ge.f32.partialorder %v486_v35, 0.0  ;;  %v704_v38 = vmul.f32 0.2, %v486_v35  ;;  %vm656_vm3 = vcmp.ge.f32.partialorder %v526_v36, 0.0 }
  0xca   : > { %v799_v39 = vsel %vm671_vm15, %v563_v32, %v735_v34  ;;  %v720_v40 = vmul.f32 0.2, %v526_v36 }
  0xcb   : > { %v863_v41 = vpack.c.bf16 %v799_v39, %v799_v39  ;;  %v815_v42 = vsel %vm687_vm0, %v603_v33, %v751_v37  ;;  %v768_v43 = vsel %vm640_vm1, %v486_v35, %v704_v38 }
  0xcc   : > { %v879_v44 = vpack.c.bf16 %v815_v42, %v815_v42  ;;  %v832_v45 = vpack.c.bf16 %v768_v43, %v768_v43  ;;  %v784_v46 = vsel %vm656_vm3, %v526_v36, %v720_v40 }
  0xcd   : > { %928 = vst.msk [vmem:[%s1358_s6 + $0x8c] sm:$0xf] %vm892_vm2, %v863_v41  ;;  %v848_v47 = vpack.c.bf16 %v784_v46, %v784_v46 }
  0xce   : > { %944 = vst.msk [vmem:[%s1358_s6 + $0xcc] sm:$0xf] %vm892_vm2, %v879_v44 }
  0xcf   : > { %897 = vst.msk [vmem:[%s1358_s6 + $0x10] sm:$0xf] %vm892_vm2, %v832_v45  ;;  %v566_v48 = vpop.f32.mrf.mxu2  ;;  %v606_v49 = vpop.f32.mrf.mxu3 }
  0xd0   : > { %913 = vst.msk [vmem:[%s1358_s6 + $0x50] sm:$0xf] %vm892_vm2, %v848_v47  ;;  %vm672_vm4 = vcmp.ge.f32.partialorder %v566_v48, 0.0  ;;  %v736_v50 = vmul.f32 0.2, %v566_v48  ;;  %vm688_vm5 = vcmp.ge.f32.partialorder %v606_v49, 0.0  ;;  %v488_v51 = vpop.f32.mrf.mxu0  ;;  %v528_v52 = vpop.f32.mrf.mxu1 }
  0xd1   : > { %v752_v53 = vmul.f32 0.2, %v606_v49  ;;  %vm641_vm6 = vcmp.ge.f32.partialorder %v488_v51, 0.0  ;;  %v705_v54 = vmul.f32 0.2, %v488_v51  ;;  %vm657_vm7 = vcmp.ge.f32.partialorder %v528_v52, 0.0 }
  0xd2   : > { %v800_v55 = vsel %vm672_vm4, %v566_v48, %v736_v50  ;;  %v721_v56 = vmul.f32 0.2, %v528_v52 }
  0xd3   : > { %v864_v57 = vpack.c.bf16 %v800_v55, %v800_v55  ;;  %v816_v58 = vsel %vm688_vm5, %v606_v49, %v752_v53  ;;  %v769_v59 = vsel %vm641_vm6, %v488_v51, %v705_v54 }
  0xd4   : > { %v880_v60 = vpack.c.bf16 %v816_v58, %v816_v58  ;;  %v833_v61 = vpack.c.bf16 %v769_v59, %v769_v59  ;;  %v785_v62 = vsel %vm657_vm7, %v528_v52, %v721_v56 }
  0xd5   : > { %929 = vst.msk [vmem:[%s1358_s6 + $0x90] sm:$0xf] %vm892_vm2, %v864_v57  ;;  %v849_v63 = vpack.c.bf16 %v785_v62, %v785_v62 }
  0xd6   : > { %945 = vst.msk [vmem:[%s1358_s6 + $0xd0] sm:$0xf] %vm892_vm2, %v880_v60 }
  0xd7   : > { %898 = vst.msk [vmem:[%s1358_s6 + $0x14] sm:$0xf] %vm892_vm2, %v833_v61  ;;  %v568_v0 = vpop.f32.mrf.mxu2  ;;  %v608_v1 = vpop.f32.mrf.mxu3 }
  0xd8   : > { %914 = vst.msk [vmem:[%s1358_s6 + $0x54] sm:$0xf] %vm892_vm2, %v849_v63  ;;  %vm673_vm8 = vcmp.ge.f32.partialorder %v568_v0, 0.0  ;;  %v737_v2 = vmul.f32 0.2, %v568_v0  ;;  %vm689_vm9 = vcmp.ge.f32.partialorder %v608_v1, 0.0  ;;  %v491_v3 = vpop.f32.mrf.mxu0  ;;  %v531_v4 = vpop.f32.mrf.mxu1 }
  0xd9   : > { %v753_v5 = vmul.f32 0.2, %v608_v1  ;;  %vm642_vm10 = vcmp.ge.f32.partialorder %v491_v3, 0.0  ;;  %v706_v6 = vmul.f32 0.2, %v491_v3  ;;  %vm658_vm11 = vcmp.ge.f32.partialorder %v531_v4, 0.0 }
  0xda   : > { %v801_v7 = vsel %vm673_vm8, %v568_v0, %v737_v2  ;;  %v722_v8 = vmul.f32 0.2, %v531_v4 }
  0xdb   : > { %v865_v9 = vpack.c.bf16 %v801_v7, %v801_v7  ;;  %v817_v10 = vsel %vm689_vm9, %v608_v1, %v753_v5  ;;  %v770_v11 = vsel %vm642_vm10, %v491_v3, %v706_v6 }
  0xdc   : > { %v881_v12 = vpack.c.bf16 %v817_v10, %v817_v10  ;;  %v834_v13 = vpack.c.bf16 %v770_v11, %v770_v11  ;;  %v786_v14 = vsel %vm658_vm11, %v531_v4, %v722_v8 }
  0xdd   : > { %930 = vst.msk [vmem:[%s1358_s6 + $0x94] sm:$0xf] %vm892_vm2, %v865_v9  ;;  %v850_v15 = vpack.c.bf16 %v786_v14, %v786_v14 }
  0xde   : > { %946 = vst.msk [vmem:[%s1358_s6 + $0xd4] sm:$0xf] %vm892_vm2, %v881_v12 }
  0xdf   : > { %899 = vst.msk [vmem:[%s1358_s6 + $0x18] sm:$0xf] %vm892_vm2, %v834_v13  ;;  %v571_v16 = vpop.f32.mrf.mxu2  ;;  %v611_v17 = vpop.f32.mrf.mxu3 }
  0xe0   : > { %915 = vst.msk [vmem:[%s1358_s6 + $0x58] sm:$0xf] %vm892_vm2, %v850_v15  ;;  %vm674_vm12 = vcmp.ge.f32.partialorder %v571_v16, 0.0  ;;  %v738_v18 = vmul.f32 0.2, %v571_v16  ;;  %vm690_vm13 = vcmp.ge.f32.partialorder %v611_v17, 0.0  ;;  %v493_v19 = vpop.f32.mrf.mxu0  ;;  %v533_v20 = vpop.f32.mrf.mxu1 }
  0xe1   : > { %v754_v21 = vmul.f32 0.2, %v611_v17  ;;  %vm643_vm14 = vcmp.ge.f32.partialorder %v493_v19, 0.0  ;;  %v707_v22 = vmul.f32 0.2, %v493_v19  ;;  %vm659_vm15 = vcmp.ge.f32.partialorder %v533_v20, 0.0 }
  0xe2   : > { %v802_v23 = vsel %vm674_vm12, %v571_v16, %v738_v18  ;;  %v723_v24 = vmul.f32 0.2, %v533_v20 }
  0xe3   : > { %v866_v25 = vpack.c.bf16 %v802_v23, %v802_v23  ;;  %v818_v26 = vsel %vm690_vm13, %v611_v17, %v754_v21  ;;  %v771_v27 = vsel %vm643_vm14, %v493_v19, %v707_v22 }
  0xe4   : > { %v882_v28 = vpack.c.bf16 %v818_v26, %v818_v26  ;;  %v835_v29 = vpack.c.bf16 %v771_v27, %v771_v27  ;;  %v787_v30 = vsel %vm659_vm15, %v533_v20, %v723_v24 }
  0xe5   : > { %931 = vst.msk [vmem:[%s1358_s6 + $0x98] sm:$0xf] %vm892_vm2, %v866_v25  ;;  %v851_v31 = vpack.c.bf16 %v787_v30, %v787_v30 }
  0xe6   : > { %947 = vst.msk [vmem:[%s1358_s6 + $0xd8] sm:$0xf] %vm892_vm2, %v882_v28 }
  0xe7   : > { %900 = vst.msk [vmem:[%s1358_s6 + $0x1c] sm:$0xf] %vm892_vm2, %v835_v29  ;;  %v573_v32 = vpop.f32.mrf.mxu2  ;;  %v613_v33 = vpop.f32.mrf.mxu3 }
  0xe8   : > { %916 = vst.msk [vmem:[%s1358_s6 + $0x5c] sm:$0xf] %vm892_vm2, %v851_v31  ;;  %vm675_vm0 = vcmp.ge.f32.partialorder %v573_v32, 0.0  ;;  %v739_v34 = vmul.f32 0.2, %v573_v32  ;;  %vm691_vm1 = vcmp.ge.f32.partialorder %v613_v33, 0.0  ;;  %v496_v35 = vpop.f32.mrf.mxu0  ;;  %v536_v36 = vpop.f32.mrf.mxu1 }
  0xe9   : > { %v755_v37 = vmul.f32 0.2, %v613_v33  ;;  %vm644_vm3 = vcmp.ge.f32.partialorder %v496_v35, 0.0  ;;  %v708_v38 = vmul.f32 0.2, %v496_v35  ;;  %vm660_vm4 = vcmp.ge.f32.partialorder %v536_v36, 0.0 }
  0xea   : > { %v803_v39 = vsel %vm675_vm0, %v573_v32, %v739_v34  ;;  %v724_v40 = vmul.f32 0.2, %v536_v36 }
  0xeb   : > { %v867_v41 = vpack.c.bf16 %v803_v39, %v803_v39  ;;  %v819_v42 = vsel %vm691_vm1, %v613_v33, %v755_v37  ;;  %v772_v43 = vsel %vm644_vm3, %v496_v35, %v708_v38 }
  0xec   : > { %v883_v44 = vpack.c.bf16 %v819_v42, %v819_v42  ;;  %v836_v45 = vpack.c.bf16 %v772_v43, %v772_v43  ;;  %v788_v46 = vsel %vm660_vm4, %v536_v36, %v724_v40 }
  0xed   : > { %932 = vst.msk [vmem:[%s1358_s6 + $0x9c] sm:$0xf] %vm892_vm2, %v867_v41  ;;  %v852_v47 = vpack.c.bf16 %v788_v46, %v788_v46 }
  0xee   : > { %948 = vst.msk [vmem:[%s1358_s6 + $0xdc] sm:$0xf] %vm892_vm2, %v883_v44 }
  0xef   : > { %901 = vst.msk [vmem:[%s1358_s6 + $0x20] sm:$0xf] %vm892_vm2, %v836_v45  ;;  %v576_v48 = vpop.f32.mrf.mxu2  ;;  %v616_v49 = vpop.f32.mrf.mxu3 }
  0xf0   : > { %917 = vst.msk [vmem:[%s1358_s6 + $0x60] sm:$0xf] %vm892_vm2, %v852_v47  ;;  %vm676_vm5 = vcmp.ge.f32.partialorder %v576_v48, 0.0  ;;  %v740_v50 = vmul.f32 0.2, %v576_v48  ;;  %vm692_vm6 = vcmp.ge.f32.partialorder %v616_v49, 0.0  ;;  %v498_v51 = vpop.f32.mrf.mxu0  ;;  %v538_v52 = vpop.f32.mrf.mxu1 }
  0xf1   : > { %v756_v53 = vmul.f32 0.2, %v616_v49  ;;  %vm645_vm7 = vcmp.ge.f32.partialorder %v498_v51, 0.0  ;;  %v709_v54 = vmul.f32 0.2, %v498_v51  ;;  %vm661_vm8 = vcmp.ge.f32.partialorder %v538_v52, 0.0 }
  0xf2   : > { %v804_v55 = vsel %vm676_vm5, %v576_v48, %v740_v50  ;;  %v725_v56 = vmul.f32 0.2, %v538_v52 }
  0xf3   : > { %v868_v57 = vpack.c.bf16 %v804_v55, %v804_v55  ;;  %v820_v58 = vsel %vm692_vm6, %v616_v49, %v756_v53  ;;  %v773_v59 = vsel %vm645_vm7, %v498_v51, %v709_v54 }
  0xf4   : > { %v884_v60 = vpack.c.bf16 %v820_v58, %v820_v58  ;;  %v837_v61 = vpack.c.bf16 %v773_v59, %v773_v59  ;;  %v789_v62 = vsel %vm661_vm8, %v538_v52, %v725_v56 }
  0xf5   : > { %933 = vst.msk [vmem:[%s1358_s6 + $0xa0] sm:$0xf] %vm892_vm2, %v868_v57  ;;  %v853_v63 = vpack.c.bf16 %v789_v62, %v789_v62 }
  0xf6   : > { %949 = vst.msk [vmem:[%s1358_s6 + $0xe0] sm:$0xf] %vm892_vm2, %v884_v60 }
  0xf7   : > { %902 = vst.msk [vmem:[%s1358_s6 + $0x24] sm:$0xf] %vm892_vm2, %v837_v61  ;;  %v578_v0 = vpop.f32.mrf.mxu2  ;;  %v618_v1 = vpop.f32.mrf.mxu3 }
  0xf8   : > { %918 = vst.msk [vmem:[%s1358_s6 + $0x64] sm:$0xf] %vm892_vm2, %v853_v63  ;;  %vm677_vm9 = vcmp.ge.f32.partialorder %v578_v0, 0.0  ;;  %v741_v2 = vmul.f32 0.2, %v578_v0  ;;  %vm693_vm10 = vcmp.ge.f32.partialorder %v618_v1, 0.0  ;;  %v501_v3 = vpop.f32.mrf.mxu0  ;;  %v541_v4 = vpop.f32.mrf.mxu1 }
  0xf9   : > { %v757_v5 = vmul.f32 0.2, %v618_v1  ;;  %vm646_vm11 = vcmp.ge.f32.partialorder %v501_v3, 0.0  ;;  %v710_v6 = vmul.f32 0.2, %v501_v3  ;;  %vm662_vm12 = vcmp.ge.f32.partialorder %v541_v4, 0.0 }
  0xfa   : > { %v805_v7 = vsel %vm677_vm9, %v578_v0, %v741_v2  ;;  %v726_v8 = vmul.f32 0.2, %v541_v4 }
  0xfb   : > { %v869_v9 = vpack.c.bf16 %v805_v7, %v805_v7  ;;  %v821_v10 = vsel %vm693_vm10, %v618_v1, %v757_v5  ;;  %v774_v11 = vsel %vm646_vm11, %v501_v3, %v710_v6 }
  0xfc   : > { %v885_v12 = vpack.c.bf16 %v821_v10, %v821_v10  ;;  %v838_v13 = vpack.c.bf16 %v774_v11, %v774_v11  ;;  %v790_v14 = vsel %vm662_vm12, %v541_v4, %v726_v8 }
  0xfd   : > { %934 = vst.msk [vmem:[%s1358_s6 + $0xa4] sm:$0xf] %vm892_vm2, %v869_v9  ;;  %v854_v15 = vpack.c.bf16 %v790_v14, %v790_v14 }
  0xfe   : > { %950 = vst.msk [vmem:[%s1358_s6 + $0xe4] sm:$0xf] %vm892_vm2, %v885_v12 }
  0xff   : > { %903 = vst.msk [vmem:[%s1358_s6 + $0x28] sm:$0xf] %vm892_vm2, %v838_v13  ;;  %v581_v16 = vpop.f32.mrf.mxu2  ;;  %v621_v17 = vpop.f32.mrf.mxu3 }
 0x100   : > { %919 = vst.msk [vmem:[%s1358_s6 + $0x68] sm:$0xf] %vm892_vm2, %v854_v15  ;;  %vm678_vm13 = vcmp.ge.f32.partialorder %v581_v16, 0.0  ;;  %v742_v18 = vmul.f32 0.2, %v581_v16  ;;  %vm694_vm14 = vcmp.ge.f32.partialorder %v621_v17, 0.0  ;;  %v503_v19 = vpop.f32.mrf.mxu0  ;;  %v543_v20 = vpop.f32.mrf.mxu1 }
 0x101   : > { %v758_v21 = vmul.f32 0.2, %v621_v17  ;;  %vm647_vm15 = vcmp.ge.f32.partialorder %v503_v19, 0.0  ;;  %v711_v22 = vmul.f32 0.2, %v503_v19  ;;  %vm663_vm0 = vcmp.ge.f32.partialorder %v543_v20, 0.0 }
 0x102   : > { %v806_v23 = vsel %vm678_vm13, %v581_v16, %v742_v18  ;;  %v727_v24 = vmul.f32 0.2, %v543_v20 }
 0x103   : > { %v870_v25 = vpack.c.bf16 %v806_v23, %v806_v23  ;;  %v822_v26 = vsel %vm694_vm14, %v621_v17, %v758_v21  ;;  %v775_v27 = vsel %vm647_vm15, %v503_v19, %v711_v22 }
 0x104   : > { %v886_v28 = vpack.c.bf16 %v822_v26, %v822_v26  ;;  %v839_v29 = vpack.c.bf16 %v775_v27, %v775_v27  ;;  %v791_v30 = vsel %vm663_vm0, %v543_v20, %v727_v24 }
 0x105   : > { %935 = vst.msk [vmem:[%s1358_s6 + $0xa8] sm:$0xf] %vm892_vm2, %v870_v25  ;;  %v855_v31 = vpack.c.bf16 %v791_v30, %v791_v30 }
 0x106   : > { %951 = vst.msk [vmem:[%s1358_s6 + $0xe8] sm:$0xf] %vm892_vm2, %v886_v28 }
 0x107   : > { %904 = vst.msk [vmem:[%s1358_s6 + $0x2c] sm:$0xf] %vm892_vm2, %v839_v29  ;;  %v583_v32 = vpop.f32.mrf.mxu2  ;;  %v623_v33 = vpop.f32.mrf.mxu3 }
 0x108   : > { %920 = vst.msk [vmem:[%s1358_s6 + $0x6c] sm:$0xf] %vm892_vm2, %v855_v31  ;;  %vm679_vm1 = vcmp.ge.f32.partialorder %v583_v32, 0.0  ;;  %v743_v34 = vmul.f32 0.2, %v583_v32  ;;  %vm695_vm3 = vcmp.ge.f32.partialorder %v623_v33, 0.0  ;;  %v506_v35 = vpop.f32.mrf.mxu0  ;;  %v546_v36 = vpop.f32.mrf.mxu1 }
 0x109   : > { %v759_v37 = vmul.f32 0.2, %v623_v33  ;;  %vm648_vm4 = vcmp.ge.f32.partialorder %v506_v35, 0.0  ;;  %v712_v38 = vmul.f32 0.2, %v506_v35  ;;  %vm664_vm5 = vcmp.ge.f32.partialorder %v546_v36, 0.0 }
 0x10a   : > { %v807_v39 = vsel %vm679_vm1, %v583_v32, %v743_v34  ;;  %v728_v40 = vmul.f32 0.2, %v546_v36 }
 0x10b   : > { %v871_v41 = vpack.c.bf16 %v807_v39, %v807_v39  ;;  %v823_v42 = vsel %vm695_vm3, %v623_v33, %v759_v37  ;;  %v776_v43 = vsel %vm648_vm4, %v506_v35, %v712_v38 }
 0x10c   : > { %v887_v44 = vpack.c.bf16 %v823_v42, %v823_v42  ;;  %v840_v45 = vpack.c.bf16 %v776_v43, %v776_v43  ;;  %v792_v46 = vsel %vm664_vm5, %v546_v36, %v728_v40 }
 0x10d   : > { %936 = vst.msk [vmem:[%s1358_s6 + $0xac] sm:$0xf] %vm892_vm2, %v871_v41  ;;  %v856_v47 = vpack.c.bf16 %v792_v46, %v792_v46 }
 0x10e   : > { %952 = vst.msk [vmem:[%s1358_s6 + $0xec] sm:$0xf] %vm892_vm2, %v887_v44 }
 0x10f   : > { %905 = vst.msk [vmem:[%s1358_s6 + $0x30] sm:$0xf] %vm892_vm2, %v840_v45  ;;  %v586_v48 = vpop.f32.mrf.mxu2  ;;  %v626_v49 = vpop.f32.mrf.mxu3 }
 0x110   : > { %921 = vst.msk [vmem:[%s1358_s6 + $0x70] sm:$0xf] %vm892_vm2, %v856_v47  ;;  %vm680_vm6 = vcmp.ge.f32.partialorder %v586_v48, 0.0  ;;  %v744_v50 = vmul.f32 0.2, %v586_v48  ;;  %vm696_vm7 = vcmp.ge.f32.partialorder %v626_v49, 0.0  ;;  %v508_v51 = vpop.f32.mrf.mxu0  ;;  %v548_v52 = vpop.f32.mrf.mxu1 }
 0x111   : > { %v760_v53 = vmul.f32 0.2, %v626_v49  ;;  %vm649_vm8 = vcmp.ge.f32.partialorder %v508_v51, 0.0  ;;  %v713_v54 = vmul.f32 0.2, %v508_v51  ;;  %vm665_vm9 = vcmp.ge.f32.partialorder %v548_v52, 0.0 }
 0x112   : > { %v808_v55 = vsel %vm680_vm6, %v586_v48, %v744_v50  ;;  %v729_v56 = vmul.f32 0.2, %v548_v52 }
 0x113   : > { %v872_v57 = vpack.c.bf16 %v808_v55, %v808_v55  ;;  %v824_v58 = vsel %vm696_vm7, %v626_v49, %v760_v53  ;;  %v777_v59 = vsel %vm649_vm8, %v508_v51, %v713_v54 }
 0x114   : > { %v888_v60 = vpack.c.bf16 %v824_v58, %v824_v58  ;;  %v841_v61 = vpack.c.bf16 %v777_v59, %v777_v59  ;;  %v793_v62 = vsel %vm665_vm9, %v548_v52, %v729_v56 }
 0x115   : > { %937 = vst.msk [vmem:[%s1358_s6 + $0xb0] sm:$0xf] %vm892_vm2, %v872_v57  ;;  %v857_v63 = vpack.c.bf16 %v793_v62, %v793_v62 }
 0x116   : > { %953 = vst.msk [vmem:[%s1358_s6 + $0xf0] sm:$0xf] %vm892_vm2, %v888_v60 }
 0x117   : > { %906 = vst.msk [vmem:[%s1358_s6 + $0x34] sm:$0xf] %vm892_vm2, %v841_v61  ;;  %v588_v0 = vpop.f32.mrf.mxu2  ;;  %v628_v1 = vpop.f32.mrf.mxu3 }
 0x118   : > { %922 = vst.msk [vmem:[%s1358_s6 + $0x74] sm:$0xf] %vm892_vm2, %v857_v63  ;;  %vm681_vm10 = vcmp.ge.f32.partialorder %v588_v0, 0.0  ;;  %v745_v2 = vmul.f32 0.2, %v588_v0  ;;  %vm697_vm11 = vcmp.ge.f32.partialorder %v628_v1, 0.0  ;;  %v511_v3 = vpop.f32.mrf.mxu0  ;;  %v551_v4 = vpop.f32.mrf.mxu1 }
 0x119   : > { %v761_v5 = vmul.f32 0.2, %v628_v1  ;;  %vm650_vm12 = vcmp.ge.f32.partialorder %v511_v3, 0.0  ;;  %v714_v6 = vmul.f32 0.2, %v511_v3  ;;  %vm666_vm13 = vcmp.ge.f32.partialorder %v551_v4, 0.0 }
 0x11a   : > { %v809_v7 = vsel %vm681_vm10, %v588_v0, %v745_v2  ;;  %v730_v8 = vmul.f32 0.2, %v551_v4 }
 0x11b   : > { %v873_v9 = vpack.c.bf16 %v809_v7, %v809_v7  ;;  %v825_v10 = vsel %vm697_vm11, %v628_v1, %v761_v5  ;;  %v778_v11 = vsel %vm650_vm12, %v511_v3, %v714_v6 }
 0x11c   : > { %v889_v12 = vpack.c.bf16 %v825_v10, %v825_v10  ;;  %v842_v13 = vpack.c.bf16 %v778_v11, %v778_v11  ;;  %v794_v14 = vsel %vm666_vm13, %v551_v4, %v730_v8 }
 0x11d   : > { %938 = vst.msk [vmem:[%s1358_s6 + $0xb4] sm:$0xf] %vm892_vm2, %v873_v9  ;;  %v858_v15 = vpack.c.bf16 %v794_v14, %v794_v14 }
 0x11e   : > { %954 = vst.msk [vmem:[%s1358_s6 + $0xf4] sm:$0xf] %vm892_vm2, %v889_v12 }
 0x11f   : > { %907 = vst.msk [vmem:[%s1358_s6 + $0x38] sm:$0xf] %vm892_vm2, %v842_v13  ;;  %v591_v16 = vpop.f32.mrf.mxu2  ;;  %v631_v17 = vpop.f32.mrf.mxu3 }
 0x120   : > { %923 = vst.msk [vmem:[%s1358_s6 + $0x78] sm:$0xf] %vm892_vm2, %v858_v15  ;;  %vm682_vm14 = vcmp.ge.f32.partialorder %v591_v16, 0.0  ;;  %v746_v18 = vmul.f32 0.2, %v591_v16  ;;  %vm698_vm15 = vcmp.ge.f32.partialorder %v631_v17, 0.0  ;;  %v513_v19 = vpop.f32.mrf.mxu0  ;;  %v553_v20 = vpop.f32.mrf.mxu1 }
 0x121   : > { %v762_v21 = vmul.f32 0.2, %v631_v17  ;;  %vm651_vm0 = vcmp.ge.f32.partialorder %v513_v19, 0.0  ;;  %v715_v22 = vmul.f32 0.2, %v513_v19  ;;  %vm667_vm1 = vcmp.ge.f32.partialorder %v553_v20, 0.0 }
 0x122   : > { %v810_v23 = vsel %vm682_vm14, %v591_v16, %v746_v18  ;;  %v731_v24 = vmul.f32 0.2, %v553_v20 }
 0x123   : > { %v874_v25 = vpack.c.bf16 %v810_v23, %v810_v23  ;;  %v826_v26 = vsel %vm698_vm15, %v631_v17, %v762_v21  ;;  %v779_v27 = vsel %vm651_vm0, %v513_v19, %v715_v22 }
 0x124   : > { %v890_v28 = vpack.c.bf16 %v826_v26, %v826_v26  ;;  %v843_v29 = vpack.c.bf16 %v779_v27, %v779_v27  ;;  %v795_v30 = vsel %vm667_vm1, %v553_v20, %v731_v24 }
 0x125   : > { %939 = vst.msk [vmem:[%s1358_s6 + $0xb8] sm:$0xf] %vm892_vm2, %v874_v25  ;;  %v859_v31 = vpack.c.bf16 %v795_v30, %v795_v30 }
 0x126   : > { %955 = vst.msk [vmem:[%s1358_s6 + $0xf8] sm:$0xf] %vm892_vm2, %v890_v28 }
 0x127   : > { %908 = vst.msk [vmem:[%s1358_s6 + $0x3c] sm:$0xf] %vm892_vm2, %v843_v29  ;;  %v593_v32 = vpop.f32.mrf.mxu2  ;;  %v633_v33 = vpop.f32.mrf.mxu3 }
 0x128   : > { %924 = vst.msk [vmem:[%s1358_s6 + $0x7c] sm:$0xf] %vm892_vm2, %v859_v31  ;;  %vm683_vm3 = vcmp.ge.f32.partialorder %v593_v32, 0.0  ;;  %v747_v34 = vmul.f32 0.2, %v593_v32  ;;  %vm699_vm4 = vcmp.ge.f32.partialorder %v633_v33, 0.0 }
 0x129   : > { %v763_v35 = vmul.f32 0.2, %v633_v33 }
 0x12a   : > { %v811_v36 = vsel %vm683_vm3, %v593_v32, %v747_v34 }
 0x12b   : > { %v875_v37 = vpack.c.bf16 %v811_v36, %v811_v36  ;;  %v827_v38 = vsel %vm699_vm4, %v633_v33, %v763_v35 }
 0x12c   : > { %v891_v39 = vpack.c.bf16 %v827_v38, %v827_v38 }
 0x12d   : > { %940 = vst.msk [vmem:[%s1358_s6 + $0xbc] sm:$0xf] %vm892_vm2, %v875_v37 }
 0x12e   : > { %956 = vst.msk [vmem:[%s1358_s6 + $0xfc] sm:$0xf] %vm892_vm2, %v891_v39 }
 0x12f PF: > { %s12_s9 = sadd.s32 1, %s1262_s9  }
 0x130   : > { %p9_p4 = scmp.ge.s32.totalorder %s12_s9, 6  }
 0x132   :  { %11 = sbr.rel (!%p9_p4) target bundleno = 1 (0x1), region = 58 }

// kernel: discriminator_forward.9
= control target key start
LH: loop header
LB: loop body
LE: loop exit
PB: predicated region body
PF: predicated region fallthrough
CT: control target
= control target key end

     0   :  { %s951_s12 = smov 0   ;;  %s1170_s0 = inlined_call_operand.vmem [shape: bf16[512,256], index: 0, kind: input, shape index: {}]   ;;  %s1171_s1 = inlined_call_operand.vmem [shape: bf16[256,32], index: 1, kind: input, shape index: {}]   ;;  %s1172_s2 = inlined_call_operand.vmem [shape: bf16[512,32], index: 2, kind: output, shape index: {0}]   ;;  %s1173_s3 = inlined_call_operand.vmem [shape: f32[4,2,32], index: 3, kind: output, shape index: {1}]  }
   0x1 LB: > { %s957_s13 = sadd.s32 4294967295, %s929_s12   ;;  %p729_p0 = scmp.ge.s32.totalorder %s929_s12, 1  ;;  %s929_s12 = sphi %s951_s12, %s14_s12  }
   0x2   : > { %p142_p1 = scmp.lt.s32.totalorder %s929_s12, 5 }
   0x4   : > { %p143_p2 = pnand %p729_p0, %p142_p1 }
   0x5   : > { %s730_s26 = sshll.u32 (!%p143_p2), %s957_s13, 4  ;;  %p184_p4 = scmp.lt.s32.totalorder (!%p143_p2), %s957_s13, 3 }
   0x6   : > { %146 = sbr.rel (%p143_p2) target bundleno = 263 (0x107), region = 28  ;;  %p172_p3 = scmp.lt.s32.totalorder (!%p143_p2), %s730_s26, 63 }
   0xb   : > { %v890_v0 = vld [vmem:[%s1171_s1 + $0x38] sm:$0xff]  ;;  %v889_v2 = vld [vmem:[%s1171_s1 + $0x30] sm:$0xff]  ;;  %v888_v4 = vld [vmem:[%s1171_s1 + $0x28] sm:$0xff]  ;;  %s1175_s26 = smov (!%p172_p3, %s730_s26), 63  ;;  %vm526_vm0 = vcmask 257024   ;;  %vm543_vm1 = vcmask 261120  }
   0xc   : > { %v898_v1 = vld [vmem:[%s1171_s1 + $0x78] sm:$0xff]  ;;  %412 = vmatpush.bf16.msra.mxu0 %v890_v0  ;;  %v897_v3 = vld [vmem:[%s1171_s1 + $0x70] sm:$0xff]  ;;  %899 = vmatpush.bf16.msra.mxu2 %v890_v0  ;;  %v896_v5 = vld [vmem:[%s1171_s1 + $0x68] sm:$0xff]  ;;  %s866_s14 = sshll.u32 %s1175_s26, 3  ;;  %s734_s27 = sshll.u32 %s1175_s26, 2  ;;  %vm634_vm2 = vcmask 1040384  }
   0xd   : > { %461 = vmatpush.bf16.msra.mxu1 %v898_v1  ;;  %907 = vmatpush.bf16.msra.mxu3 %v898_v1  ;;  %v887_v6 = vld [vmem:[%s1171_s1 + $0x20] sm:$0xff]  ;;  %v886_v8 = vld [vmem:[%s1171_s1 + $0x18] sm:$0xff]  ;;  %v885_v10 = vld [vmem:[%s1171_s1 + $0x10] sm:$0xff]  ;;  %s1010_s21 = scalar_lea.vmem %s1170_s0, %s866_s14  ;;  %s1054_s30 = scalar_lea.vmem %s1172_s2, %s734_s27  ;;  %vm636_vm3 = vcmask 254976  }
   0xe   : > { %v895_v7 = vld [vmem:[%s1171_s1 + $0x60] sm:$0xff]  ;;  %v894_v9 = vld [vmem:[%s1171_s1 + $0x58] sm:$0xff]  ;;  %v893_v11 = vld [vmem:[%s1171_s1 + $0x50] sm:$0xff]  ;;  %s1177_s13 = smov (!%p184_p4, %s957_s13), 3 }
   0xf   : > { %v884_v12 = vld [vmem:[%s1171_s1 + $0x8] sm:$0xff]  ;;  %v883_v14 = vld [vmem:[%s1171_s1] sm:$0xff]  ;;  %v746_v28 = vld [vmem:[%s1010_s21 + $0x10] sm:$0xf]  ;;  %s735_s26 = sshll.u32 %s1177_s13, 1 }
  0x10   : > { %413 = vmatpush.bf16.msra.mxu0 %v889_v2  ;;  %900 = vmatpush.bf16.msra.mxu2 %v889_v2  ;;  %v892_v13 = vld [vmem:[%s1171_s1 + $0x48] sm:$0xff]  ;;  %v891_v15 = vld [vmem:[%s1171_s1 + $0x40] sm:$0xff]  ;;  %v870_v29 = vld [vmem:[%s1010_s21 + $0x14] sm:$0xf0]  ;;  %s187_s6 = scalar_lea.vmem %s1173_s3, %s735_s26 }
  0x11   : > { %462 = vmatpush.bf16.msra.mxu1 %v897_v3  ;;  %908 = vmatpush.bf16.msra.mxu3 %v897_v3  ;;  %v738_v16 = vld [vmem:[%s1010_s21] sm:$0xf]  ;;  %v868_v17 = vld [vmem:[%s1010_s21 + $0x4] sm:$0xf0]  ;;  %v867_v18 = vld [vmem:[%s1010_s21 + $0x4] sm:$0xf]  ;;  %v747_v36 = vor.u32 %v870_v29, %v746_v28 }
  0x12   : > { %v740_v19 = vld [vmem:[%s1010_s21 + $0x8] sm:$0xf0]  ;;  %v770_v20 = vld [vmem:[%s1010_s21 + $0x40] sm:$0xf]  ;;  %v876_v21 = vld [vmem:[%s1010_s21 + $0x44] sm:$0xf0]  ;;  %v739_v24 = vor.u32 %v868_v17, %v738_v16 }
  0x13   : > { %v875_v22 = vld [vmem:[%s1010_s21 + $0x44] sm:$0xf]  ;;  %v772_v23 = vld [vmem:[%s1010_s21 + $0x48] sm:$0xf0]  ;;  %v743_v25 = vor.u32 %v867_v18, %v740_v19  ;;  %v771_v26 = vor.u32 %v876_v21, %v770_v20  ;;  %v869_v30 = vld [vmem:[%s1010_s21 + $0x14] sm:$0xf] }
  0x14   : > { %414 = vmatpush.bf16.msra.mxu0 %v888_v4  ;;  %901 = vmatpush.bf16.msra.mxu2 %v888_v4  ;;  %v775_v27 = vor.u32 %v875_v22, %v772_v23  ;;  %v748_v31 = vld [vmem:[%s1010_s21 + $0x18] sm:$0xf0]  ;;  %v778_v32 = vld [vmem:[%s1010_s21 + $0x50] sm:$0xf]  ;;  %v878_v33 = vld [vmem:[%s1010_s21 + $0x54] sm:$0xf0] }
  0x15   : > { %463 = vmatpush.bf16.msra.mxu1 %v896_v5  ;;  %909 = vmatpush.bf16.msra.mxu3 %v896_v5  ;;  %v877_v34 = vld [vmem:[%s1010_s21 + $0x54] sm:$0xf]  ;;  %v780_v35 = vld [vmem:[%s1010_s21 + $0x58] sm:$0xf0]  ;;  %v751_v37 = vor.u32 %v869_v30, %v748_v31  ;;  %v779_v38 = vor.u32 %v878_v33, %v778_v32  ;;  %v754_v40 = vld [vmem:[%s1010_s21 + $0x20] sm:$0xf] }
  0x16   : > { %v783_v39 = vor.u32 %v877_v34, %v780_v35  ;;  %v872_v41 = vld [vmem:[%s1010_s21 + $0x24] sm:$0xf0]  ;;  %v871_v42 = vld [vmem:[%s1010_s21 + $0x24] sm:$0xf]  ;;  %v756_v43 = vld [vmem:[%s1010_s21 + $0x28] sm:$0xf0] }
  0x17   : > { %v786_v44 = vld [vmem:[%s1010_s21 + $0x60] sm:$0xf]  ;;  %v880_v45 = vld [vmem:[%s1010_s21 + $0x64] sm:$0xf0]  ;;  %v879_v46 = vld [vmem:[%s1010_s21 + $0x64] sm:$0xf]  ;;  %v755_v48 = vor.u32 %v872_v41, %v754_v40  ;;  %v759_v49 = vor.u32 %v871_v42, %v756_v43 }
  0x18   : > { %415 = vmatpush.bf16.msra.mxu0 %v887_v6  ;;  %902 = vmatpush.bf16.msra.mxu2 %v887_v6  ;;  %v788_v47 = vld [vmem:[%s1010_s21 + $0x68] sm:$0xf0]  ;;  %v787_v50 = vor.u32 %v880_v45, %v786_v44  ;;  %v762_v52 = vld [vmem:[%s1010_s21 + $0x30] sm:$0xf]  ;;  %v874_v53 = vld [vmem:[%s1010_s21 + $0x34] sm:$0xf0] }
  0x19   : > { %464 = vmatpush.bf16.msra.mxu1 %v895_v7  ;;  %910 = vmatpush.bf16.msra.mxu3 %v895_v7  ;;  %v791_v51 = vor.u32 %v879_v46, %v788_v47  ;;  %v873_v54 = vld [vmem:[%s1010_s21 + $0x34] sm:$0xf]  ;;  %v764_v55 = vld [vmem:[%s1010_s21 + $0x38] sm:$0xf0]  ;;  %v794_v56 = vld [vmem:[%s1010_s21 + $0x70] sm:$0xf]  ;;  %v763_v60 = vor.u32 %v874_v53, %v762_v52 }
  0x1a   : > { %v882_v57 = vld [vmem:[%s1010_s21 + $0x74] sm:$0xf0]  ;;  %v881_v58 = vld [vmem:[%s1010_s21 + $0x74] sm:$0xf]  ;;  %v796_v59 = vld [vmem:[%s1010_s21 + $0x78] sm:$0xf0]  ;;  %v767_v61 = vor.u32 %v873_v54, %v764_v55 }
  0x1b   : > { %v795_v62 = vor.u32 %v882_v57, %v794_v56  ;;  %v799_v63 = vor.u32 %v881_v58, %v796_v59 }
  0x1c   : > { %416 = vmatpush.bf16.msra.mxu0 %v886_v8  ;;  %903 = vmatpush.bf16.msra.mxu2 %v886_v8 }
  0x1d   : > { %465 = vmatpush.bf16.msra.mxu1 %v894_v9  ;;  %911 = vmatpush.bf16.msra.mxu3 %v894_v9 }
  0x20   : > { %417 = vmatpush.bf16.msra.mxu0 %v885_v10  ;;  %904 = vmatpush.bf16.msra.mxu2 %v885_v10 }
  0x21   : > { %466 = vmatpush.bf16.msra.mxu1 %v893_v11  ;;  %912 = vmatpush.bf16.msra.mxu3 %v893_v11 }
  0x24   : > { %418 = vmatpush.bf16.msra.mxu0 %v884_v12  ;;  %905 = vmatpush.bf16.msra.mxu2 %v884_v12 }
  0x25   : > { %467 = vmatpush.bf16.msra.mxu1 %v892_v13  ;;  %913 = vmatpush.bf16.msra.mxu3 %v892_v13 }
  0x28   : > { %419 = vmatpush.bf16.msra.mxu0 %v883_v14  ;;  %906 = vmatpush.bf16.msra.mxu2 %v883_v14 }
  0x29   : > { %468 = vmatpush.bf16.msra.mxu1 %v891_v15  ;;  %914 = vmatpush.bf16.msra.mxu3 %v891_v15 }
  0x2b   : > { %420 = vmatmul.bf16.vlgmr.msra.gmra.mxu0 %v739_v24  ;;  %440 = vmatmul.bf16.vlgmr.msra.gmra.mxu2 %v771_v26 }
  0x2c   : > { %469 = vmatmul.bf16.vlgmr.msra.gmra.mxu1 %v743_v25  ;;  %489 = vmatmul.bf16.vlgmr.msra.gmra.mxu3 %v775_v27 }
  0x3b   : > { %425 = vmatmul.bf16.gmra.mxu0 %v747_v36  ;;  %445 = vmatmul.bf16.gmra.mxu2 %v779_v38 }
  0x3c   : > { %474 = vmatmul.bf16.gmra.mxu1 %v751_v37  ;;  %494 = vmatmul.bf16.gmra.mxu3 %v783_v39 }
  0x4b   : > { %430 = vmatmul.bf16.gmra.mxu0 %v755_v48  ;;  %450 = vmatmul.bf16.gmra.mxu2 %v787_v50 }
  0x4c   : > { %479 = vmatmul.bf16.gmra.mxu1 %v759_v49  ;;  %499 = vmatmul.bf16.gmra.mxu3 %v791_v51 }
  0x5b   : > { %435 = vmatmul.bf16.gmra.mxu0 %v763_v60  ;;  %455 = vmatmul.bf16.gmra.mxu2 %v795_v62 }
  0x5c   : > { %484 = vmatmul.bf16.gmra.mxu1 %v767_v61  ;;  %504 = vmatmul.bf16.gmra.mxu3 %v799_v63 }
  0xa8   : > { %v421_v0 = vpop.f32.mrf.mxu0 }
  0xa9   : > { %v470_v1 = vpop.f32.mrf.mxu1 }
  0xaa   : > { %v471_v2 = vadd.f32 %v470_v1, %v421_v0 }
  0xac   : > { %v510_v3 = vpack.c.bf16 %v471_v2, %v471_v2  ;;  %v581_v45 = vmul.f32 %v471_v2, %v471_v2  ;;  %v544_v48 = vsel %vm543_vm1, %v471_v2, 0.0 }
  0xae   : > { %527 = vst.msk [vmem:[%s1054_s30] sm:$0xf] %vm526_vm0, %v510_v3  ;;  %v441_v4 = vpop.f32.mrf.mxu2  ;;  %v597_v54 = vsel %vm543_vm1, %v581_v45, 0.0 }
  0xaf   : > { %v490_v5 = vpop.f32.mrf.mxu3 }
  0xb0   : > { %v423_v6 = vpop.f32.mrf.mxu0  ;;  %v1058_v8 = vadd.f32 %v490_v5, %v441_v4 }
  0xb1   : > { %v472_v7 = vpop.f32.mrf.mxu1 }
  0xb2   : > { %v473_v9 = vadd.f32 %v472_v7, %v423_v6  ;;  %v518_v10 = vpack.c.bf16 %v1058_v8, %v1058_v8 }
  0xb4   : > { %v511_v11 = vpack.c.bf16 %v473_v9, %v473_v9  ;;  %535 = vst.msk [vmem:[%s1054_s30 + $0x20] sm:$0xf] %vm526_vm0, %v518_v10  ;;  %v582_v43 = vmul.f32 %v473_v9, %v473_v9  ;;  %v545_v46 = vsel %vm543_vm1, %v473_v9, 0.0 }
  0xb5   : > { %v546_v55 = vadd.f32 %v545_v46, %v544_v48 }
  0xb6   : > { %528 = vst.msk [vmem:[%s1054_s30 + $0x4] sm:$0xf] %vm526_vm0, %v511_v11  ;;  %v443_v12 = vpop.f32.mrf.mxu2  ;;  %v598_v49 = vsel %vm543_vm1, %v582_v43, 0.0 }
  0xb7   : > { %v492_v13 = vpop.f32.mrf.mxu3  ;;  %v599_v63 = vadd.f32 %v598_v49, %v597_v54 }
  0xb8   : > { %v426_v14 = vpop.f32.mrf.mxu0  ;;  %v1066_v16 = vadd.f32 %v492_v13, %v443_v12 }
  0xb9   : > { %v475_v15 = vpop.f32.mrf.mxu1 }
  0xba   : > { %v476_v17 = vadd.f32 %v475_v15, %v426_v14  ;;  %v519_v18 = vpack.c.bf16 %v1066_v16, %v1066_v16 }
  0xbc   : > { %v512_v19 = vpack.c.bf16 %v476_v17, %v476_v17  ;;  %536 = vst.msk [vmem:[%s1054_s30 + $0x24] sm:$0xf] %vm526_vm0, %v519_v18  ;;  %v583_v47 = vmul.f32 %v476_v17, %v476_v17  ;;  %v547_v50 = vsel %vm543_vm1, %v476_v17, 0.0 }
  0xbd   : > { %v548_v0 = vadd.f32 %v547_v50, %v546_v55 }
  0xbe   : > { %529 = vst.msk [vmem:[%s1054_s30 + $0x8] sm:$0xf] %vm526_vm0, %v512_v19  ;;  %v446_v20 = vpop.f32.mrf.mxu2  ;;  %v600_v59 = vsel %vm543_vm1, %v583_v47, 0.0 }
  0xbf   : > { %v495_v21 = vpop.f32.mrf.mxu3  ;;  %v601_v6 = vadd.f32 %v600_v59, %v599_v63 }
  0xc0   : > { %v428_v22 = vpop.f32.mrf.mxu0  ;;  %v1074_v24 = vadd.f32 %v495_v21, %v446_v20 }
  0xc1   : > { %v477_v23 = vpop.f32.mrf.mxu1 }
  0xc2   : > { %v478_v25 = vadd.f32 %v477_v23, %v428_v22  ;;  %v520_v26 = vpack.c.bf16 %v1074_v24, %v1074_v24  ;;  %v591_v45 = vmul.f32 %v1074_v24, %v1074_v24 }
  0xc4   : > { %v513_v27 = vpack.c.bf16 %v478_v25, %v478_v25  ;;  %537 = vst.msk [vmem:[%s1054_s30 + $0x28] sm:$0xf] %vm526_vm0, %v520_v26  ;;  %v584_v51 = vmul.f32 %v478_v25, %v478_v25  ;;  %v549_v60 = vsel %vm543_vm1, %v478_v25, 0.0  ;;  %v616_v55 = vsel %vm543_vm1, %v591_v45, 0.0 }
  0xc5   : > { %v550_v7 = vadd.f32 %v549_v60, %v548_v0 }
  0xc6   : > { %530 = vst.msk [vmem:[%s1054_s30 + $0xc] sm:$0xf] %vm526_vm0, %v513_v27  ;;  %v448_v28 = vpop.f32.mrf.mxu2  ;;  %v602_v2 = vsel %vm543_vm1, %v584_v51, 0.0  ;;  %v563_v51 = vsel %vm543_vm1, %v1074_v24, 0.0 }
  0xc7   : > { %v497_v29 = vpop.f32.mrf.mxu3  ;;  %v603_v12 = vadd.f32 %v602_v2, %v601_v6 }
  0xc8   : > { %v431_v30 = vpop.f32.mrf.mxu0  ;;  %v1082_v32 = vadd.f32 %v497_v29, %v448_v28 }
  0xc9   : > { %v480_v31 = vpop.f32.mrf.mxu1 }
  0xca   : > { %v481_v33 = vadd.f32 %v480_v31, %v431_v30  ;;  %v521_v34 = vpack.c.bf16 %v1082_v32, %v1082_v32  ;;  %v589_v30 = vmul.f32 %v1058_v8, %v1058_v8 }
  0xcc   : > { %v514_v35 = vpack.c.bf16 %v481_v33, %v481_v33  ;;  %538 = vst.msk [vmem:[%s1054_s30 + $0x2c] sm:$0xf] %vm526_vm0, %v521_v34  ;;  %v585_v61 = vmul.f32 %v481_v33, %v481_v33  ;;  %v551_v3 = vsel %vm543_vm1, %v481_v33, 0.0  ;;  %v612_v43 = vsel %vm543_vm1, %v589_v30, 0.0 }
  0xcd   : > { %v552_v13 = vadd.f32 %v551_v3, %v550_v7 }
  0xce   : > { %531 = vst.msk [vmem:[%s1054_s30 + $0x10] sm:$0xf] %vm526_vm0, %v514_v35  ;;  %v451_v36 = vpop.f32.mrf.mxu2  ;;  %v604_v9 = vsel %vm543_vm1, %v585_v61, 0.0 }
  0xcf   : > { %v500_v37 = vpop.f32.mrf.mxu3  ;;  %v605_v19 = vadd.f32 %v604_v9, %v603_v12 }
  0xd0   : > { %v433_v38 = vpop.f32.mrf.mxu0  ;;  %v1090_v40 = vadd.f32 %v500_v37, %v451_v36  ;;  %v559_v37 = vsel %vm543_vm1, %v1058_v8, 0.0 }
  0xd1   : > { %v482_v39 = vpop.f32.mrf.mxu1 }
  0xd2   : > { %v483_v41 = vadd.f32 %v482_v39, %v433_v38  ;;  %v522_v42 = vpack.c.bf16 %v1090_v40, %v1090_v40  ;;  %v590_v38 = vmul.f32 %v1066_v16, %v1066_v16  ;;  %v567_v61 = vsel %vm543_vm1, %v1090_v40, 0.0 }
  0xd4   : > { %v515_v44 = vpack.c.bf16 %v483_v41, %v483_v41  ;;  %539 = vst.msk [vmem:[%s1054_s30 + $0x30] sm:$0xf] %vm526_vm0, %v522_v42  ;;  %v586_v4 = vmul.f32 %v483_v41, %v483_v41  ;;  %v553_v10 = vsel %vm543_vm1, %v483_v41, 0.0  ;;  %v614_v50 = vsel %vm543_vm1, %v590_v38, 0.0 }
  0xd5   : > { %v554_v20 = vadd.f32 %v553_v10, %v552_v13 }
  0xd6   : > { %532 = vst.msk [vmem:[%s1054_s30 + $0x14] sm:$0xf] %vm526_vm0, %v515_v44  ;;  %v453_v52 = vpop.f32.mrf.mxu2  ;;  %v606_v14 = vsel %vm543_vm1, %v586_v4, 0.0  ;;  %v561_v44 = vsel %vm543_vm1, %v1066_v16, 0.0 }
  0xd7   : > { %v502_v53 = vpop.f32.mrf.mxu3  ;;  %v607_v27 = vadd.f32 %v606_v14, %v605_v19 }
  0xd8   : > { %v436_v56 = vpop.f32.mrf.mxu0  ;;  %v1103_v58 = vadd.f32 %v502_v53, %v453_v52  ;;  %v592_v52 = vmul.f32 %v1082_v32, %v1082_v32 }
  0xd9   : > { %v485_v57 = vpop.f32.mrf.mxu1 }
  0xda   : > { %v486_v62 = vadd.f32 %v485_v57, %v436_v56  ;;  %v523_v1 = vpack.c.bf16 %v1103_v58, %v1103_v58  ;;  %v565_v56 = vsel %vm543_vm1, %v1082_v32, 0.0  ;;  %v593_v57 = vmul.f32 %v1090_v40, %v1090_v40 }
  0xdb   : > { %v618_v24 = vsel %vm543_vm1, %v592_v52, 0.0  ;;  %v569_v32 = vsel %vm543_vm1, %v1103_v58, 0.0 }
  0xdc   : > { %v516_v5 = vpack.c.bf16 %v486_v62, %v486_v62  ;;  %540 = vst.msk [vmem:[%s1054_s30 + $0x34] sm:$0xf] %vm526_vm0, %v523_v1  ;;  %v587_v11 = vmul.f32 %v486_v62, %v486_v62  ;;  %v555_v15 = vsel %vm543_vm1, %v486_v62, 0.0  ;;  %v594_v62 = vmul.f32 %v1103_v58, %v1103_v58 }
  0xdd   : > { %v556_v28 = vadd.f32 %v555_v15, %v554_v20  ;;  %v620_v1 = vsel %vm543_vm1, %v593_v57, 0.0 }
  0xde   : > { %533 = vst.msk [vmem:[%s1054_s30 + $0x18] sm:$0xf] %vm526_vm0, %v516_v5  ;;  %v456_v17 = vpop.f32.mrf.mxu2  ;;  %v608_v25 = vsel %vm543_vm1, %v587_v11, 0.0  ;;  %v622_v5 = vsel %vm543_vm1, %v594_v62, 0.0 }
  0xdf   : > { %v505_v18 = vpop.f32.mrf.mxu3  ;;  %v609_v35 = vadd.f32 %v608_v25, %v607_v27 }
  0xe0   : > { %v438_v21 = vpop.f32.mrf.mxu0  ;;  %v506_v23 = vadd.f32 %v505_v18, %v456_v17 }
  0xe1   : > { %v487_v22 = vpop.f32.mrf.mxu1 }
  0xe2   : > { %v488_v26 = vadd.f32 %v487_v22, %v438_v21  ;;  %v524_v29 = vpack.c.bf16 %v506_v23, %v506_v23  ;;  %v595_v2 = vmul.f32 %v506_v23, %v506_v23  ;;  %v571_v6 = vsel %vm543_vm1, %v506_v23, 0.0 }
  0xe4   : > { %v517_v31 = vpack.c.bf16 %v488_v26, %v488_v26  ;;  %v557_v33 = vsel %vm543_vm1, %v488_v26, 0.0  ;;  %v588_v34 = vmul.f32 %v488_v26, %v488_v26  ;;  %541 = vst.msk [vmem:[%s1054_s30 + $0x38] sm:$0xf] %vm526_vm0, %v524_v29  ;;  %v624_v10 = vsel %vm543_vm1, %v595_v2, 0.0 }
  0xe5   : > { %v558_v36 = vadd.f32 %v557_v33, %v556_v28 }
  0xe6   : > { %534 = vst.msk [vmem:[%s1054_s30 + $0x1c] sm:$0xf] %vm526_vm0, %v517_v31  ;;  %v610_v39 = vsel %vm543_vm1, %v588_v34, 0.0  ;;  %v458_v46 = vpop.f32.mrf.mxu2 }
  0xe7   : > { %v560_v41 = vadd.f32 %v559_v37, %v558_v36  ;;  %v611_v42 = vadd.f32 %v610_v39, %v609_v35  ;;  %v507_v8 = vpop.f32.mrf.mxu3 }
  0xe8   : > { %v508_v49 = vadd.f32 %v507_v8, %v458_v46 }
  0xe9   : > { %v562_v47 = vadd.f32 %v561_v44, %v560_v41  ;;  %v613_v48 = vadd.f32 %v612_v43, %v611_v42 }
  0xea   : > { %v525_v16 = vpack.c.bf16 %v508_v49, %v508_v49  ;;  %v596_v40 = vmul.f32 %v508_v49, %v508_v49  ;;  %v573_v11 = vsel %vm543_vm1, %v508_v49, 0.0 }
  0xeb   : > { %v564_v53 = vadd.f32 %v563_v51, %v562_v47  ;;  %v615_v54 = vadd.f32 %v614_v50, %v613_v48 }
  0xec   : > { %542 = vst.msk [vmem:[%s1054_s30 + $0x3c] sm:$0xf] %vm526_vm0, %v525_v16  ;;  %v626_v58 = vsel %vm543_vm1, %v596_v40, 0.0 }
  0xed   : > { %v617_v59 = vadd.f32 %v616_v55, %v615_v54  ;;  %v566_v60 = vadd.f32 %v565_v56, %v564_v53 }
  0xef   : > { %v568_v63 = vadd.f32 %v567_v61, %v566_v60  ;;  %v619_v0 = vadd.f32 %v618_v24, %v617_v59 }
  0xf1   : > { %v570_v3 = vadd.f32 %v569_v32, %v568_v63  ;;  %v621_v4 = vadd.f32 %v620_v1, %v619_v0 }
  0xf3   : > { %v572_v7 = vadd.f32 %v571_v6, %v570_v3  ;;  %v623_v9 = vadd.f32 %v622_v5, %v621_v4 }
  0xf5   : > { %v625_v12 = vadd.f32 %v624_v10, %v623_v9  ;;  %v574_v13 = vadd.f32 %v573_v11, %v572_v7 }
  0xf7   : > { %v575_v14 = vrot.slane %v574_v13, 4  ;;  %v627_v15 = vadd.f32 %v626_v58, %v625_v12 }
  0xf9   : > { %v576_v17 = vadd.f32 %v575_v14, %v574_v13  ;;  %v628_v18 = vrot.slane %v627_v15, 4 }
  0xfb   : > { %v577_v19 = vrot.slane %v576_v17, 2  ;;  %v629_v20 = vadd.f32 %v628_v18, %v627_v15 }
  0xfd   : > { %v578_v21 = vadd.f32 %v577_v19, %v576_v17  ;;  %v630_v22 = vrot.slane %v629_v20, 2 }
  0xff   : > { %v579_v23 = vrot.slane %v578_v21, 1  ;;  %v631_v25 = vadd.f32 %v630_v22, %v629_v20 }
 0x101   : > { %v632_v26 = vrot.slane %v631_v25, 1  ;;  %v580_v27 = vadd.f32 %v579_v23, %v578_v21 }
 0x103   : > { %v633_v28 = vadd.f32 %v632_v26, %v631_v25 }
 0x105   : > { %v635_v29 = vsel %vm634_vm2, %v580_v27, %v633_v28 }
 0x106   : > { %637 = vst.msk [vmem:[%s187_s6] sm:$0x3] %vm636_vm3, %v635_v29 }
 0x107 PF: > { %s14_s12 = sadd.s32 1, %s929_s12  }
 0x108   : > { %p11_p5 = scmp.ge.s32.totalorder %s14_s12, 6  }
 0x10a   :  { %13 = sbr.rel (!%p11_p5) target bundleno = 1 (0x1), region = 70 }

// kernel: discriminator_forward.10
= control target key start
LH: loop header
LB: loop body
LE: loop exit
PB: predicated region body
PF: predicated region fallthrough
CT: control target
= control target key end

     0   :  { %s471_s12 = smov 0   ;;  %s581_s0 = inlined_call_operand.vmem [shape: bf16[512,32], index: 0, kind: input, shape index: {}]   ;;  %s582_s1 = inlined_call_operand.vmem [shape: f32[1,32], index: 1, kind: input, shape index: {}]   ;;  %s583_s2 = inlined_call_operand.vmem [shape: f32[1,32], index: 2, kind: input, shape index: {}]   ;;  %s584_s3 = inlined_call_operand.vmem [shape: bf16[512,32], index: 3, kind: output, shape index: {}]  }
   0x1 LB: > { %s383_s13 = sadd.s32 4294967295, %s449_s12   ;;  %p387_p0 = scmp.ge.s32.totalorder %s449_s12, 1  ;;  %s449_s12 = sphi %s471_s12, %s13_s12  }
   0x2   : > { %p138_p1 = scmp.lt.s32.totalorder %s449_s12, 5 }
   0x4   : > { %p139_p2 = pnand %p387_p0, %p138_p1 }
   0x5   : > { %s388_s14 = sshll.u32 (!%p139_p2), %s383_s13, 4 }
   0x6   : > { %142 = sbr.rel (%p139_p2) target bundleno = 49 (0x31), region = 32  ;;  %p163_p3 = scmp.lt.s32.totalorder (!%p139_p2), %s388_s14, 63 }
   0xb   : > { %s586_s14 = smov (!%p163_p3, %s388_s14), 63  ;;  %v492_v0 = vld [vmem:[%s582_s1] ss:$0 sm:$0xff]  ;;  %vm310_vm0 = vcmask 257024  }
   0xc   : > { %s389_s15 = sshll.u32 %s586_s14, 2  ;;  %v500_v5 = vld [vmem:[%s583_s2] ss:$0 sm:$0xff] }
   0xd   : > { %s487_s18 = scalar_lea.vmem %s581_s0, %s389_s15  ;;  %s524_s25 = scalar_lea.vmem %s584_s3, %s389_s15 }
   0xe   : > { %v395_v1 = vld [vmem:[%s487_s18] sm:$0xff]   ;;  %v426_v2 = vld [vmem:[%s487_s18 + $0x8] sm:$0xff]   ;;  %v427_v3 = vld [vmem:[%s487_s18 + $0x10] sm:$0xff]  }
   0xf   : > { %v396_v4 = vunpack.c.l.bf16 %v395_v1  ;;  %v397_v6 = vunpack.c.h.bf16 %v395_v1  ;;  %v400_v7 = vunpack.c.l.bf16 %v426_v2  ;;  %v401_v8 = vunpack.c.h.bf16 %v426_v2  ;;  %v428_v9 = vld [vmem:[%s487_s18 + $0x18] sm:$0xff]   ;;  %v429_v41 = vld [vmem:[%s487_s18 + $0x20] sm:$0xff]   ;;  %v430_v45 = vld [vmem:[%s487_s18 + $0x28] sm:$0xff]  }
  0x10   : > { %v404_v10 = vunpack.c.l.bf16 %v427_v3  ;;  %v405_v11 = vunpack.c.h.bf16 %v427_v3  ;;  %v408_v12 = vunpack.c.l.bf16 %v428_v9  ;;  %v409_v13 = vunpack.c.h.bf16 %v428_v9  ;;  %v431_v46 = vld [vmem:[%s487_s18 + $0x30] sm:$0xff]   ;;  %v432_v61 = vld [vmem:[%s487_s18 + $0x38] sm:$0xff]  }
  0x11   : > { %v210_v14 = vmul.f32 %v492_v0, %v396_v4  ;;  %v211_v15 = vmul.f32 %v492_v0, %v397_v6  ;;  %v212_v16 = vmul.f32 %v492_v0, %v400_v7  ;;  %v213_v17 = vmul.f32 %v492_v0, %v401_v8 }
  0x12   : > { %v214_v18 = vmul.f32 %v492_v0, %v404_v10  ;;  %v215_v19 = vmul.f32 %v492_v0, %v405_v11  ;;  %v216_v20 = vmul.f32 %v492_v0, %v408_v12  ;;  %v217_v21 = vmul.f32 %v492_v0, %v409_v13 }
  0x13   : > { %v230_v22 = vadd.f32 %v500_v5, %v210_v14  ;;  %v231_v23 = vadd.f32 %v500_v5, %v211_v15  ;;  %v232_v24 = vadd.f32 %v500_v5, %v212_v16  ;;  %v233_v25 = vadd.f32 %v500_v5, %v213_v17 }
  0x14   : > { %v234_v26 = vadd.f32 %v500_v5, %v214_v18  ;;  %v235_v27 = vadd.f32 %v500_v5, %v215_v19  ;;  %v236_v28 = vadd.f32 %v500_v5, %v216_v20  ;;  %v237_v29 = vadd.f32 %v500_v5, %v217_v21 }
  0x15   : > { %vm246_vm1 = vcmp.ge.f32.partialorder %v230_v22, 0.0  ;;  %v262_v30 = vmul.f32 0.2, %v230_v22  ;;  %vm247_vm2 = vcmp.ge.f32.partialorder %v231_v23, 0.0  ;;  %v263_v31 = vmul.f32 0.2, %v231_v23 }
  0x16   : > { %vm248_vm3 = vcmp.ge.f32.partialorder %v232_v24, 0.0  ;;  %v264_v32 = vmul.f32 0.2, %v232_v24  ;;  %vm249_vm4 = vcmp.ge.f32.partialorder %v233_v25, 0.0  ;;  %v265_v33 = vmul.f32 0.2, %v233_v25 }
  0x17   : > { %v278_v34 = vsel %vm246_vm1, %v230_v22, %v262_v30  ;;  %v279_v35 = vsel %vm247_vm2, %v231_v23, %v263_v31  ;;  %vm250_vm5 = vcmp.ge.f32.partialorder %v234_v26, 0.0  ;;  %v266_v36 = vmul.f32 0.2, %v234_v26 }
  0x18   : > { %v294_v37 = vpack.c.bf16 %v278_v34, %v278_v34  ;;  %v295_v38 = vpack.c.bf16 %v279_v35, %v279_v35  ;;  %v280_v39 = vsel %vm248_vm3, %v232_v24, %v264_v32  ;;  %v281_v40 = vsel %vm249_vm4, %v233_v25, %v265_v33 }
  0x19   : > { %v296_v42 = vpack.c.bf16 %v280_v39, %v280_v39  ;;  %v297_v43 = vpack.c.bf16 %v281_v40, %v281_v40  ;;  %v282_v44 = vsel %vm250_vm5, %v234_v26, %v266_v36  ;;  %vm251_vm6 = vcmp.ge.f32.partialorder %v235_v27, 0.0 }
  0x1a   : > { %311 = vst.msk [vmem:[%s524_s25] sm:$0xf] %vm310_vm0, %v294_v37  ;;  %v298_v47 = vpack.c.bf16 %v282_v44, %v282_v44  ;;  %v267_v48 = vmul.f32 0.2, %v235_v27  ;;  %vm252_vm7 = vcmp.ge.f32.partialorder %v236_v28, 0.0  ;;  %vm253_vm8 = vcmp.ge.f32.partialorder %v237_v29, 0.0 }
  0x1b   : > { %312 = vst.msk [vmem:[%s524_s25 + $0x4] sm:$0xf] %vm310_vm0, %v295_v38  ;;  %v268_v49 = vmul.f32 0.2, %v236_v28  ;;  %v269_v50 = vmul.f32 0.2, %v237_v29  ;;  %v412_v51 = vunpack.c.l.bf16 %v429_v41  ;;  %v413_v52 = vunpack.c.h.bf16 %v429_v41 }
  0x1c   : > { %313 = vst.msk [vmem:[%s524_s25 + $0x8] sm:$0xf] %vm310_vm0, %v296_v42  ;;  %v283_v53 = vsel %vm251_vm6, %v235_v27, %v267_v48  ;;  %v416_v54 = vunpack.c.l.bf16 %v430_v45  ;;  %v417_v55 = vunpack.c.h.bf16 %v430_v45  ;;  %v420_v56 = vunpack.c.l.bf16 %v431_v46 }
  0x1d   : > { %314 = vst.msk [vmem:[%s524_s25 + $0xc] sm:$0xf] %vm310_vm0, %v297_v43  ;;  %v299_v57 = vpack.c.bf16 %v283_v53, %v283_v53  ;;  %v284_v58 = vsel %vm252_vm7, %v236_v28, %v268_v49  ;;  %v285_v59 = vsel %vm253_vm8, %v237_v29, %v269_v50  ;;  %v218_v60 = vmul.f32 %v492_v0, %v412_v51 }
  0x1e   : > { %315 = vst.msk [vmem:[%s524_s25 + $0x10] sm:$0xf] %vm310_vm0, %v298_v47  ;;  %v300_v62 = vpack.c.bf16 %v284_v58, %v284_v58  ;;  %v301_v63 = vpack.c.bf16 %v285_v59, %v285_v59  ;;  %v219_v1 = vmul.f32 %v492_v0, %v413_v52  ;;  %v220_v2 = vmul.f32 %v492_v0, %v416_v54 }
  0x1f   : > { %316 = vst.msk [vmem:[%s524_s25 + $0x14] sm:$0xf] %vm310_vm0, %v299_v57  ;;  %v238_v3 = vadd.f32 %v500_v5, %v218_v60  ;;  %v221_v4 = vmul.f32 %v492_v0, %v417_v55  ;;  %v222_v6 = vmul.f32 %v492_v0, %v420_v56  ;;  %v421_v7 = vunpack.c.h.bf16 %v431_v46 }
  0x20   : > { %317 = vst.msk [vmem:[%s524_s25 + $0x18] sm:$0xf] %vm310_vm0, %v300_v62  ;;  %v239_v8 = vadd.f32 %v500_v5, %v219_v1  ;;  %v240_v9 = vadd.f32 %v500_v5, %v220_v2  ;;  %v424_v10 = vunpack.c.l.bf16 %v432_v61  ;;  %v425_v11 = vunpack.c.h.bf16 %v432_v61 }
  0x21   : > { %318 = vst.msk [vmem:[%s524_s25 + $0x1c] sm:$0xf] %vm310_vm0, %v301_v63  ;;  %vm254_vm9 = vcmp.ge.f32.partialorder %v238_v3, 0.0  ;;  %v270_v12 = vmul.f32 0.2, %v238_v3  ;;  %v241_v13 = vadd.f32 %v500_v5, %v221_v4  ;;  %v242_v14 = vadd.f32 %v500_v5, %v222_v6 }
  0x22   : > { %vm255_vm10 = vcmp.ge.f32.partialorder %v239_v8, 0.0  ;;  %v271_v15 = vmul.f32 0.2, %v239_v8  ;;  %vm256_vm11 = vcmp.ge.f32.partialorder %v240_v9, 0.0  ;;  %v272_v16 = vmul.f32 0.2, %v240_v9 }
  0x23   : > { %v286_v17 = vsel %vm254_vm9, %v238_v3, %v270_v12  ;;  %vm257_vm12 = vcmp.ge.f32.partialorder %v241_v13, 0.0  ;;  %v273_v18 = vmul.f32 0.2, %v241_v13  ;;  %vm258_vm13 = vcmp.ge.f32.partialorder %v242_v14, 0.0 }
  0x24   : > { %v302_v19 = vpack.c.bf16 %v286_v17, %v286_v17  ;;  %v287_v20 = vsel %vm255_vm10, %v239_v8, %v271_v15  ;;  %v288_v21 = vsel %vm256_vm11, %v240_v9, %v272_v16  ;;  %v274_v22 = vmul.f32 0.2, %v242_v14 }
  0x25   : > { %v303_v23 = vpack.c.bf16 %v287_v20, %v287_v20  ;;  %v304_v24 = vpack.c.bf16 %v288_v21, %v288_v21  ;;  %v289_v25 = vsel %vm257_vm12, %v241_v13, %v273_v18  ;;  %v223_v26 = vmul.f32 %v492_v0, %v421_v7 }
  0x26   : > { %319 = vst.msk [vmem:[%s524_s25 + $0x20] sm:$0xf] %vm310_vm0, %v302_v19  ;;  %v305_v27 = vpack.c.bf16 %v289_v25, %v289_v25  ;;  %v290_v28 = vsel %vm258_vm13, %v242_v14, %v274_v22  ;;  %v224_v29 = vmul.f32 %v492_v0, %v424_v10  ;;  %v225_v30 = vmul.f32 %v492_v0, %v425_v11 }
  0x27   : > { %320 = vst.msk [vmem:[%s524_s25 + $0x24] sm:$0xf] %vm310_vm0, %v303_v23  ;;  %v306_v31 = vpack.c.bf16 %v290_v28, %v290_v28  ;;  %v243_v32 = vadd.f32 %v500_v5, %v223_v26 }
  0x28   : > { %321 = vst.msk [vmem:[%s524_s25 + $0x28] sm:$0xf] %vm310_vm0, %v304_v24  ;;  %v244_v33 = vadd.f32 %v500_v5, %v224_v29  ;;  %v245_v34 = vadd.f32 %v500_v5, %v225_v30 }
  0x29   : > { %322 = vst.msk [vmem:[%s524_s25 + $0x2c] sm:$0xf] %vm310_vm0, %v305_v27  ;;  %vm259_vm14 = vcmp.ge.f32.partialorder %v243_v32, 0.0  ;;  %v275_v35 = vmul.f32 0.2, %v243_v32 }
  0x2a   : > { %323 = vst.msk [vmem:[%s524_s25 + $0x30] sm:$0xf] %vm310_vm0, %v306_v31  ;;  %vm260_vm15 = vcmp.ge.f32.partialorder %v244_v33, 0.0  ;;  %v276_v0 = vmul.f32 0.2, %v244_v33  ;;  %vm261_vm1 = vcmp.ge.f32.partialorder %v245_v34, 0.0 }
  0x2b   : > { %v291_v36 = vsel %vm259_vm14, %v243_v32, %v275_v35  ;;  %v277_v37 = vmul.f32 0.2, %v245_v34 }
  0x2c   : > { %v307_v38 = vpack.c.bf16 %v291_v36, %v291_v36  ;;  %v292_v39 = vsel %vm260_vm15, %v244_v33, %v276_v0 }
  0x2d   : > { %v308_v40 = vpack.c.bf16 %v292_v39, %v292_v39  ;;  %v293_v41 = vsel %vm261_vm1, %v245_v34, %v277_v37 }
  0x2e   : > { %324 = vst.msk [vmem:[%s524_s25 + $0x34] sm:$0xf] %vm310_vm0, %v307_v38  ;;  %v309_v5 = vpack.c.bf16 %v293_v41, %v293_v41 }
  0x2f   : > { %325 = vst.msk [vmem:[%s524_s25 + $0x38] sm:$0xf] %vm310_vm0, %v308_v40 }
  0x30   : > { %326 = vst.msk [vmem:[%s524_s25 + $0x3c] sm:$0xf] %vm310_vm0, %v309_v5 }
  0x31 PF: > { %s13_s12 = sadd.s32 1, %s449_s12  }
  0x32   : > { %p10_p4 = scmp.ge.s32.totalorder %s13_s12, 6  }
  0x34   :  { %12 = sbr.rel (!%p10_p4) target bundleno = 1 (0x1), region = 62 }

// kernel: discriminator_forward.11
= control target key start
LH: loop header
LB: loop body
LE: loop exit
PB: predicated region body
PF: predicated region fallthrough
CT: control target
= control target key end

     0   :  { %s949_s12 = smov 0   ;;  %s1110_s0 = inlined_call_operand.vmem [shape: bf16[128,512], index: 0, kind: input, shape index: {}]   ;;  %s1111_s1 = inlined_call_operand.vmem [shape: bf16[512,64], index: 1, kind: input, shape index: {}]   ;;  %s1112_s2 = inlined_call_operand.vmem [shape: bf16[128,64], index: 2, kind: output, shape index: {0}]   ;;  %s1113_s3 = inlined_call_operand.vmem [shape: f32[4,2,64], index: 3, kind: output, shape index: {1}]  }
   0x1 LB: > { %s955_s13 = sadd.s32 4294967295, %s927_s12   ;;  %p703_p0 = scmp.ge.s32.totalorder %s927_s12, 1  ;;  %s927_s12 = sphi %s949_s12, %s14_s12  }
   0x2   : > { %p142_p1 = scmp.lt.s32.totalorder %s927_s12, 5 }
   0x4   : > { %p143_p2 = pnand %p703_p0, %p142_p1 }
   0x5   : > { %s704_s11 = sshll.u32 (!%p143_p2), %s955_s13, 2  ;;  %p184_p4 = scmp.lt.s32.totalorder (!%p143_p2), %s955_s13, 3 }
   0x6   : > { %146 = sbr.rel (%p143_p2) target bundleno = 224 (0xe0), region = 28  ;;  %p172_p3 = scmp.lt.s32.totalorder (!%p143_p2), %s704_s11, 15 }
   0xb   : > { %v888_v0 = vld [vmem:[%s1111_s1 + $0x38] sm:$0xff]  ;;  %v887_v4 = vld [vmem:[%s1111_s1 + $0x30] sm:$0xff]  ;;  %v886_v8 = vld [vmem:[%s1111_s1 + $0x28] sm:$0xff]  ;;  %s1115_s11 = smov (!%p172_p3, %s704_s11), 15  ;;  %vm572_vm0 = vcmask 519168   ;;  %vm577_vm1 = vcmask 523264  }
   0xc   : > { %v896_v1 = vld [vmem:[%s1111_s1 + $0x78] sm:$0xff]  ;;  %492 = vmatpush.bf16.msra.mxu0 %v888_v0  ;;  %v895_v5 = vld [vmem:[%s1111_s1 + $0x70] sm:$0xff]  ;;  %v894_v9 = vld [vmem:[%s1111_s1 + $0x68] sm:$0xff]  ;;  %s872_s14 = sshll.u32 %s1115_s11, 4  ;;  %s708_s7 = sshll.u32 %s1115_s11, 2  ;;  %vm608_vm2 = vcmask 1040384  }
   0xd   : > { %v904_v2 = vld [vmem:[%s1111_s1 + $0xb8] sm:$0xff]  ;;  %511 = vmatpush.bf16.msra.mxu1 %v896_v1  ;;  %v903_v6 = vld [vmem:[%s1111_s1 + $0xb0] sm:$0xff]  ;;  %v902_v10 = vld [vmem:[%s1111_s1 + $0xa8] sm:$0xff]  ;;  %s1044_s21 = scalar_lea.vmem %s1110_s0, %s872_s14  ;;  %s1084_s10 = scalar_lea.vmem %s1112_s2, %s708_s7  ;;  %vm610_vm3 = vcmask 517120  }
   0xe   : > { %v912_v3 = vld [vmem:[%s1111_s1 + $0xf8] sm:$0xff]  ;;  %530 = vmatpush.bf16.msra.mxu2 %v904_v2  ;;  %v911_v7 = vld [vmem:[%s1111_s1 + $0xf0] sm:$0xff]  ;;  %v910_v11 = vld [vmem:[%s1111_s1 + $0xe8] sm:$0xff]  ;;  %s1117_s13 = smov (!%p184_p4, %s955_s13), 3 }
   0xf   : > { %549 = vmatpush.bf16.msra.mxu3 %v912_v3  ;;  %v885_v12 = vld [vmem:[%s1111_s1 + $0x20] sm:$0xff]  ;;  %v884_v16 = vld [vmem:[%s1111_s1 + $0x18] sm:$0xff]  ;;  %v883_v20 = vld [vmem:[%s1111_s1 + $0x10] sm:$0xff]  ;;  %s709_s11 = sshll.u32 %s1117_s13, 1 }
  0x10   : > { %493 = vmatpush.bf16.msra.mxu0 %v887_v4  ;;  %v893_v13 = vld [vmem:[%s1111_s1 + $0x60] sm:$0xff]  ;;  %v892_v17 = vld [vmem:[%s1111_s1 + $0x58] sm:$0xff]  ;;  %v891_v21 = vld [vmem:[%s1111_s1 + $0x50] sm:$0xff]  ;;  %s187_s16 = scalar_lea.vmem %s1113_s3, %s709_s11 }
  0x11   : > { %512 = vmatpush.bf16.msra.mxu1 %v895_v5  ;;  %v901_v14 = vld [vmem:[%s1111_s1 + $0xa0] sm:$0xff]  ;;  %v900_v18 = vld [vmem:[%s1111_s1 + $0x98] sm:$0xff]  ;;  %v899_v22 = vld [vmem:[%s1111_s1 + $0x90] sm:$0xff] }
  0x12   : > { %531 = vmatpush.bf16.msra.mxu2 %v903_v6  ;;  %v909_v15 = vld [vmem:[%s1111_s1 + $0xe0] sm:$0xff]  ;;  %v908_v19 = vld [vmem:[%s1111_s1 + $0xd8] sm:$0xff]  ;;  %v907_v23 = vld [vmem:[%s1111_s1 + $0xd0] sm:$0xff] }
  0x13   : > { %550 = vmatpush.bf16.msra.mxu3 %v911_v7  ;;  %v882_v24 = vld [vmem:[%s1111_s1 + $0x8] sm:$0xff]  ;;  %v881_v28 = vld [vmem:[%s1111_s1] sm:$0xff]  ;;  %v875_v33 = vld [vmem:[%s1044_s21 + $0xc] sm:$0xf0] }
  0x14   : > { %494 = vmatpush.bf16.msra.mxu0 %v886_v8  ;;  %v890_v25 = vld [vmem:[%s1111_s1 + $0x48] sm:$0xff]  ;;  %v889_v29 = vld [vmem:[%s1111_s1 + $0x40] sm:$0xff]  ;;  %v714_v35 = vld [vmem:[%s1044_s21 + $0x10] sm:$0xf0] }
  0x15   : > { %513 = vmatpush.bf16.msra.mxu1 %v894_v9  ;;  %v898_v26 = vld [vmem:[%s1111_s1 + $0x88] sm:$0xff]  ;;  %v897_v30 = vld [vmem:[%s1111_s1 + $0x80] sm:$0xff]  ;;  %v876_v37 = vld [vmem:[%s1044_s21 + $0x14] sm:$0xf0] }
  0x16   : > { %532 = vmatpush.bf16.msra.mxu2 %v902_v10  ;;  %v906_v27 = vld [vmem:[%s1111_s1 + $0xc8] sm:$0xff]  ;;  %v905_v31 = vld [vmem:[%s1111_s1 + $0xc0] sm:$0xff]  ;;  %v722_v39 = vld [vmem:[%s1044_s21 + $0x18] sm:$0xf0] }
  0x17   : > { %551 = vmatpush.bf16.msra.mxu3 %v910_v11  ;;  %v712_v32 = vld [vmem:[%s1044_s21] sm:$0xf]  ;;  %v873_v34 = vld [vmem:[%s1044_s21 + $0x4] sm:$0xf]  ;;  %v720_v36 = vld [vmem:[%s1044_s21 + $0x8] sm:$0xf] }
  0x18   : > { %495 = vmatpush.bf16.msra.mxu0 %v885_v12  ;;  %v874_v38 = vld [vmem:[%s1044_s21 + $0xc] sm:$0xf]  ;;  %v713_v40 = vor.u32 %v875_v33, %v712_v32  ;;  %v717_v41 = vor.u32 %v873_v34, %v714_v35  ;;  %v721_v42 = vor.u32 %v876_v37, %v720_v36  ;;  %v728_v44 = vld [vmem:[%s1044_s21 + $0x20] sm:$0xf]  ;;  %v879_v45 = vld [vmem:[%s1044_s21 + $0x2c] sm:$0xf0] }
  0x19   : > { %514 = vmatpush.bf16.msra.mxu1 %v893_v13  ;;  %v725_v43 = vor.u32 %v874_v38, %v722_v39  ;;  %v877_v46 = vld [vmem:[%s1044_s21 + $0x24] sm:$0xf]  ;;  %v730_v47 = vld [vmem:[%s1044_s21 + $0x30] sm:$0xf0]  ;;  %v736_v48 = vld [vmem:[%s1044_s21 + $0x28] sm:$0xf]  ;;  %v729_v52 = vor.u32 %v879_v45, %v728_v44 }
  0x1a   : > { %533 = vmatpush.bf16.msra.mxu2 %v901_v14  ;;  %v880_v49 = vld [vmem:[%s1044_s21 + $0x34] sm:$0xf0]  ;;  %v878_v50 = vld [vmem:[%s1044_s21 + $0x2c] sm:$0xf]  ;;  %v738_v51 = vld [vmem:[%s1044_s21 + $0x38] sm:$0xf0]  ;;  %v733_v53 = vor.u32 %v877_v46, %v730_v47 }
  0x1b   : > { %552 = vmatpush.bf16.msra.mxu3 %v909_v15  ;;  %v737_v54 = vor.u32 %v880_v49, %v736_v48  ;;  %v741_v55 = vor.u32 %v878_v50, %v738_v51 }
  0x1c   : > { %496 = vmatpush.bf16.msra.mxu0 %v884_v16 }
  0x1d   : > { %515 = vmatpush.bf16.msra.mxu1 %v892_v17 }
  0x1e   : > { %534 = vmatpush.bf16.msra.mxu2 %v900_v18 }
  0x1f   : > { %553 = vmatpush.bf16.msra.mxu3 %v908_v19 }
  0x20   : > { %497 = vmatpush.bf16.msra.mxu0 %v883_v20 }
  0x21   : > { %516 = vmatpush.bf16.msra.mxu1 %v891_v21 }
  0x22   : > { %535 = vmatpush.bf16.msra.mxu2 %v899_v22 }
  0x23   : > { %554 = vmatpush.bf16.msra.mxu3 %v907_v23 }
  0x24   : > { %498 = vmatpush.bf16.msra.mxu0 %v882_v24 }
  0x25   : > { %517 = vmatpush.bf16.msra.mxu1 %v890_v25 }
  0x26   : > { %536 = vmatpush.bf16.msra.mxu2 %v898_v26 }
  0x27   : > { %555 = vmatpush.bf16.msra.mxu3 %v906_v27 }
  0x28   : > { %499 = vmatpush.bf16.msra.mxu0 %v881_v28 }
  0x29   : > { %518 = vmatpush.bf16.msra.mxu1 %v889_v29 }
  0x2a   : > { %537 = vmatpush.bf16.msra.mxu2 %v897_v30 }
  0x2b   : > { %556 = vmatpush.bf16.msra.mxu3 %v905_v31  ;;  %500 = vmatmul.bf16.vlgmr.msra.gmra.mxu0 %v713_v40 }
  0x2c   : > { %519 = vmatmul.bf16.vlgmr.msra.gmra.mxu1 %v717_v41 }
  0x2d   : > { %538 = vmatmul.bf16.vlgmr.msra.gmra.mxu2 %v721_v42 }
  0x2e   : > { %557 = vmatmul.bf16.vlgmr.msra.gmra.mxu3 %v725_v43 }
  0x3b   : > { %505 = vmatmul.bf16.gmra.mxu0 %v729_v52 }
  0x3c   : > { %524 = vmatmul.bf16.gmra.mxu1 %v733_v53 }
  0x3d   : > { %543 = vmatmul.bf16.gmra.mxu2 %v737_v54 }
  0x3e   : > { %562 = vmatmul.bf16.gmra.mxu3 %v741_v55 }
  0xa8   : > { %v501_v56 = vpop.f32.mrf.mxu0 }
  0xa9   : > { %v520_v57 = vpop.f32.mrf.mxu1 }
  0xaa   : > { %v521_v58 = vadd.f32 %v520_v57, %v501_v56 }
  0xb0   : > { %v539_v59 = vpop.f32.mrf.mxu2  ;;  %v503_v62 = vpop.f32.mrf.mxu0 }
  0xb1   : > { %v558_v60 = vpop.f32.mrf.mxu3  ;;  %v540_v61 = vadd.f32 %v539_v59, %v521_v58  ;;  %v522_v63 = vpop.f32.mrf.mxu1 }
  0xb2   : > { %v523_v2 = vadd.f32 %v522_v63, %v503_v62 }
  0xb3   : > { %v559_v0 = vadd.f32 %v558_v60, %v540_v61 }
  0xb5   : > { %v568_v1 = vpack.c.bf16 %v559_v0, %v559_v0  ;;  %v591_v19 = vmul.f32 %v559_v0, %v559_v0  ;;  %v578_v24 = vsel %vm577_vm1, %v559_v0, 0.0 }
  0xb7   : > { %573 = vst.msk [vmem:[%s1084_s10] sm:$0xf] %vm572_vm0, %v568_v1  ;;  %v595_v30 = vsel %vm577_vm1, %v591_v19, 0.0 }
  0xb8   : > { %v541_v3 = vpop.f32.mrf.mxu2  ;;  %v506_v6 = vpop.f32.mrf.mxu0 }
  0xb9   : > { %v560_v4 = vpop.f32.mrf.mxu3  ;;  %v542_v5 = vadd.f32 %v541_v3, %v523_v2  ;;  %v525_v7 = vpop.f32.mrf.mxu1 }
  0xba   : > { %v526_v10 = vadd.f32 %v525_v7, %v506_v6 }
  0xbb   : > { %v561_v8 = vadd.f32 %v560_v4, %v542_v5 }
  0xbd   : > { %v569_v9 = vpack.c.bf16 %v561_v8, %v561_v8  ;;  %v592_v17 = vmul.f32 %v561_v8, %v561_v8  ;;  %v579_v20 = vsel %vm577_vm1, %v561_v8, 0.0 }
  0xbe   : > { %v580_v28 = vadd.f32 %v579_v20, %v578_v24 }
  0xbf   : > { %574 = vst.msk [vmem:[%s1084_s10 + $0x4] sm:$0xf] %vm572_vm0, %v569_v9  ;;  %v596_v25 = vsel %vm577_vm1, %v592_v17, 0.0 }
  0xc0   : > { %v544_v11 = vpop.f32.mrf.mxu2  ;;  %v508_v15 = vpop.f32.mrf.mxu0  ;;  %v597_v33 = vadd.f32 %v596_v25, %v595_v30 }
  0xc1   : > { %v563_v12 = vpop.f32.mrf.mxu3  ;;  %v545_v13 = vadd.f32 %v544_v11, %v526_v10  ;;  %v527_v16 = vpop.f32.mrf.mxu1 }
  0xc2   : > { %v528_v22 = vadd.f32 %v527_v16, %v508_v15 }
  0xc3   : > { %v564_v14 = vadd.f32 %v563_v12, %v545_v13 }
  0xc5   : > { %v570_v18 = vpack.c.bf16 %v564_v14, %v564_v14  ;;  %v593_v21 = vmul.f32 %v564_v14, %v564_v14  ;;  %v581_v26 = vsel %vm577_vm1, %v564_v14, 0.0 }
  0xc6   : > { %v582_v34 = vadd.f32 %v581_v26, %v580_v28 }
  0xc7   : > { %575 = vst.msk [vmem:[%s1084_s10 + $0x8] sm:$0xf] %vm572_vm0, %v570_v18  ;;  %v598_v31 = vsel %vm577_vm1, %v593_v21, 0.0 }
  0xc8   : > { %v546_v23 = vpop.f32.mrf.mxu2  ;;  %v599_v38 = vadd.f32 %v598_v31, %v597_v33 }
  0xc9   : > { %v547_v27 = vadd.f32 %v546_v23, %v528_v22  ;;  %v565_v29 = vpop.f32.mrf.mxu3 }
  0xcb   : > { %v566_v32 = vadd.f32 %v565_v29, %v547_v27 }
  0xcd   : > { %v571_v35 = vpack.c.bf16 %v566_v32, %v566_v32  ;;  %v583_v36 = vsel %vm577_vm1, %v566_v32, 0.0  ;;  %v594_v37 = vmul.f32 %v566_v32, %v566_v32 }
  0xce   : > { %v584_v39 = vadd.f32 %v583_v36, %v582_v34 }
  0xcf   : > { %576 = vst.msk [vmem:[%s1084_s10 + $0xc] sm:$0xf] %vm572_vm0, %v571_v35  ;;  %v600_v40 = vsel %vm577_vm1, %v594_v37, 0.0 }
  0xd0   : > { %v585_v41 = vrot.slane %v584_v39, 4  ;;  %v601_v42 = vadd.f32 %v600_v40, %v599_v38 }
  0xd2   : > { %v586_v43 = vadd.f32 %v585_v41, %v584_v39  ;;  %v602_v44 = vrot.slane %v601_v42, 4 }
  0xd4   : > { %v587_v45 = vrot.slane %v586_v43, 2  ;;  %v603_v46 = vadd.f32 %v602_v44, %v601_v42 }
  0xd6   : > { %v588_v47 = vadd.f32 %v587_v45, %v586_v43  ;;  %v604_v48 = vrot.slane %v603_v46, 2 }
  0xd8   : > { %v589_v49 = vrot.slane %v588_v47, 1  ;;  %v605_v50 = vadd.f32 %v604_v48, %v603_v46 }
  0xda   : > { %v606_v51 = vrot.slane %v605_v50, 1  ;;  %v590_v52 = vadd.f32 %v589_v49, %v588_v47 }
  0xdc   : > { %v607_v53 = vadd.f32 %v606_v51, %v605_v50 }
  0xde   : > { %v609_v54 = vsel %vm608_vm2, %v590_v52, %v607_v53 }
  0xdf   : > { %611 = vst.msk [vmem:[%s187_s16] sm:$0x3] %vm610_vm3, %v609_v54 }
  0xe0 PF: > { %s14_s12 = sadd.s32 1, %s927_s12  }
  0xe1   : > { %p11_p5 = scmp.ge.s32.totalorder %s14_s12, 6  }
  0xe3   :  { %13 = sbr.rel (!%p11_p5) target bundleno = 1 (0x1), region = 70 }

// kernel: discriminator_forward.12
= control target key start
LH: loop header
LB: loop body
LE: loop exit
PB: predicated region body
PF: predicated region fallthrough
CT: control target
= control target key end

     0   :  { %s333_s12 = smov 0   ;;  %s356_s0 = inlined_call_operand.vmem [shape: bf16[128,64], index: 0, kind: input, shape index: {}]   ;;  %s357_s1 = inlined_call_operand.vmem [shape: f32[1,64], index: 1, kind: input, shape index: {}]   ;;  %s358_s2 = inlined_call_operand.vmem [shape: f32[1,64], index: 2, kind: input, shape index: {}]   ;;  %s359_s3 = inlined_call_operand.vmem [shape: bf16[128,64], index: 3, kind: output, shape index: {}]  }
   0x1 LB: > { %s275_s13 = sadd.s32 4294967295, %s311_s12   ;;  %p279_p0 = scmp.ge.s32.totalorder %s311_s12, 1  ;;  %s311_s12 = sphi %s333_s12, %s13_s12  }
   0x2   : > { %p138_p1 = scmp.lt.s32.totalorder %s311_s12, 5 }
   0x4   : > { %p139_p2 = pnand %p279_p0, %p138_p1 }
   0x5   : > { %s280_s14 = sshll.u32 (!%p139_p2), %s275_s13, 2 }
   0x6   : > { %142 = sbr.rel (%p139_p2) target bundleno = 30 (0x1e), region = 32  ;;  %p163_p3 = scmp.lt.s32.totalorder (!%p139_p2), %s280_s14, 15 }
   0xb   : > { %s361_s14 = smov (!%p163_p3, %s280_s14), 15  ;;  %v303_v0 = vld [vmem:[%s357_s1] ss:$0 sm:$0xff]  ;;  %vm214_vm4 = vcmask 519168  }
   0xc   : > { %s281_s15 = sshll.u32 %s361_s14, 2  ;;  %v304_v7 = vld [vmem:[%s358_s2] ss:$0 sm:$0xff] }
   0xd   : > { %s166_s18 = scalar_lea.vmem %s356_s0, %s281_s15  ;;  %s172_s25 = scalar_lea.vmem %s359_s3, %s281_s15 }
   0xe   : > { %v287_v1 = vld [vmem:[%s166_s18] sm:$0xff]   ;;  %v294_v2 = vld [vmem:[%s166_s18 + $0x8] sm:$0xff]  }
   0xf   : > { %v288_v3 = vunpack.c.l.bf16 %v287_v1  ;;  %v289_v4 = vunpack.c.h.bf16 %v287_v1  ;;  %v292_v5 = vunpack.c.l.bf16 %v294_v2  ;;  %v293_v6 = vunpack.c.h.bf16 %v294_v2 }
  0x11   : > { %v186_v8 = vmul.f32 %v303_v0, %v288_v3  ;;  %v187_v9 = vmul.f32 %v303_v0, %v289_v4  ;;  %v188_v10 = vmul.f32 %v303_v0, %v292_v5  ;;  %v189_v11 = vmul.f32 %v303_v0, %v293_v6 }
  0x13   : > { %v194_v12 = vadd.f32 %v304_v7, %v186_v8  ;;  %v195_v13 = vadd.f32 %v304_v7, %v187_v9  ;;  %v196_v14 = vadd.f32 %v304_v7, %v188_v10  ;;  %v197_v15 = vadd.f32 %v304_v7, %v189_v11 }
  0x15   : > { %vm198_vm0 = vcmp.ge.f32.partialorder %v194_v12, 0.0  ;;  %v202_v16 = vmul.f32 0.2, %v194_v12  ;;  %vm199_vm1 = vcmp.ge.f32.partialorder %v195_v13, 0.0  ;;  %v203_v17 = vmul.f32 0.2, %v195_v13 }
  0x16   : > { %vm200_vm2 = vcmp.ge.f32.partialorder %v196_v14, 0.0  ;;  %v204_v18 = vmul.f32 0.2, %v196_v14  ;;  %vm201_vm3 = vcmp.ge.f32.partialorder %v197_v15, 0.0  ;;  %v205_v19 = vmul.f32 0.2, %v197_v15 }
  0x17   : > { %v206_v20 = vsel %vm198_vm0, %v194_v12, %v202_v16  ;;  %v207_v21 = vsel %vm199_vm1, %v195_v13, %v203_v17 }
  0x18   : > { %v210_v22 = vpack.c.bf16 %v206_v20, %v206_v20  ;;  %v211_v23 = vpack.c.bf16 %v207_v21, %v207_v21  ;;  %v208_v24 = vsel %vm200_vm2, %v196_v14, %v204_v18  ;;  %v209_v25 = vsel %vm201_vm3, %v197_v15, %v205_v19 }
  0x19   : > { %v212_v26 = vpack.c.bf16 %v208_v24, %v208_v24  ;;  %v213_v27 = vpack.c.bf16 %v209_v25, %v209_v25 }
  0x1a   : > { %215 = vst.msk [vmem:[%s172_s25] sm:$0xf] %vm214_vm4, %v210_v22 }
  0x1b   : > { %216 = vst.msk [vmem:[%s172_s25 + $0x4] sm:$0xf] %vm214_vm4, %v211_v23 }
  0x1c   : > { %217 = vst.msk [vmem:[%s172_s25 + $0x8] sm:$0xf] %vm214_vm4, %v212_v26 }
  0x1d   : > { %218 = vst.msk [vmem:[%s172_s25 + $0xc] sm:$0xf] %vm214_vm4, %v213_v27 }
  0x1e PF: > { %s13_s12 = sadd.s32 1, %s311_s12  }
  0x1f   : > { %p10_p4 = scmp.ge.s32.totalorder %s13_s12, 6  }
  0x21   :  { %12 = sbr.rel (!%p10_p4) target bundleno = 1 (0x1), region = 62 }

// kernel: discriminator_forward.13
= control target key start
LH: loop header
LB: loop body
LE: loop exit
PB: predicated region body
PF: predicated region fallthrough
CT: control target
= control target key end

     0   :  { %s1298_s12 = smov 0   ;;  %s1525_s0 = inlined_call_operand.vmem [shape: bf16[32,1024], index: 0, kind: input, shape index: {}]   ;;  %s1526_s1 = inlined_call_operand.vmem [shape: bf16[1024,128], index: 1, kind: input, shape index: {}]   ;;  %s1527_s2 = inlined_call_operand.vmem [shape: bf16[32,128], index: 2, kind: output, shape index: {0}]   ;;  %s1528_s3 = inlined_call_operand.vmem [shape: f32[4,2,128], index: 3, kind: output, shape index: {1}]  }
   0x1 LB: > { %s930_s13 = sadd.s32 4294967295, %s1276_s12   ;;  %p934_p0 = scmp.ge.s32.totalorder %s1276_s12, 1  ;;  %s1276_s12 = sphi %s1298_s12, %s14_s12  }
   0x2   : > { %p140_p1 = scmp.lt.s32.totalorder %s1276_s12, 5 }
   0x4   : > { %p141_p2 = pnand %p934_p0, %p140_p1 }
   0x5   : > { %p167_p3 = scmp.lt.s32.totalorder (!%p141_p2), %s930_s13, 3 }
   0x6   : > { %144 = sbr.rel (%p141_p2) target bundleno = 229 (0xe5), region = 28 }
   0xb   : > { %v1205_v0 = vld [vmem:[%s1526_s1 + $0x38] sm:$0xff]  ;;  %v1204_v4 = vld [vmem:[%s1526_s1 + $0x30] sm:$0xff]  ;;  %v1203_v8 = vld [vmem:[%s1526_s1 + $0x28] sm:$0xff]  ;;  %s1530_s13 = smov (!%p167_p3, %s930_s13), 3  ;;  %vm843_vm0 = vcmask 1040384  }
   0xc   : > { %v1213_v1 = vld [vmem:[%s1526_s1 + $0x78] sm:$0xff]  ;;  %724 = vmatpush.bf16.msra.mxu0 %v1205_v0  ;;  %v1212_v5 = vld [vmem:[%s1526_s1 + $0x70] sm:$0xff]  ;;  %v1211_v9 = vld [vmem:[%s1526_s1 + $0x68] sm:$0xff]  ;;  %s1197_s29 = sshll.u32 %s1530_s13, 5  ;;  %s937_s23 = sshll.u32 %s1530_s13, 2 }
   0xd   : > { %v1221_v2 = vld [vmem:[%s1526_s1 + $0xb8] sm:$0xff]  ;;  %737 = vmatpush.bf16.msra.mxu1 %v1213_v1  ;;  %v1220_v6 = vld [vmem:[%s1526_s1 + $0xb0] sm:$0xff]  ;;  %v1219_v10 = vld [vmem:[%s1526_s1 + $0xa8] sm:$0xff]  ;;  %s1388_s15 = scalar_lea.vmem %s1525_s0, %s1197_s29  ;;  %s175_s26 = scalar_lea.vmem %s1527_s2, %s937_s23 }
   0xe   : > { %v1229_v3 = vld [vmem:[%s1526_s1 + $0xf8] sm:$0xff]  ;;  %750 = vmatpush.bf16.msra.mxu2 %v1221_v2  ;;  %v1228_v7 = vld [vmem:[%s1526_s1 + $0xf0] sm:$0xff]  ;;  %v1227_v11 = vld [vmem:[%s1526_s1 + $0xe8] sm:$0xff]  ;;  %s938_s27 = sshll.u32 %s1530_s13, 1 }
   0xf   : > { %763 = vmatpush.bf16.msra.mxu3 %v1229_v3  ;;  %v1202_v12 = vld [vmem:[%s1526_s1 + $0x20] sm:$0xff]  ;;  %v1201_v16 = vld [vmem:[%s1526_s1 + $0x18] sm:$0xff]  ;;  %v1200_v20 = vld [vmem:[%s1526_s1 + $0x10] sm:$0xff]  ;;  %s179_s30 = scalar_lea.vmem %s1528_s3, %s938_s27 }
  0x10   : > { %725 = vmatpush.bf16.msra.mxu0 %v1204_v4  ;;  %v1210_v13 = vld [vmem:[%s1526_s1 + $0x60] sm:$0xff]  ;;  %v1209_v17 = vld [vmem:[%s1526_s1 + $0x58] sm:$0xff]  ;;  %v1208_v21 = vld [vmem:[%s1526_s1 + $0x50] sm:$0xff] }
  0x11   : > { %738 = vmatpush.bf16.msra.mxu1 %v1212_v5  ;;  %v1218_v14 = vld [vmem:[%s1526_s1 + $0xa0] sm:$0xff]  ;;  %v1217_v18 = vld [vmem:[%s1526_s1 + $0x98] sm:$0xff]  ;;  %v1216_v22 = vld [vmem:[%s1526_s1 + $0x90] sm:$0xff] }
  0x12   : > { %751 = vmatpush.bf16.msra.mxu2 %v1220_v6  ;;  %v1226_v15 = vld [vmem:[%s1526_s1 + $0xe0] sm:$0xff]  ;;  %v1225_v19 = vld [vmem:[%s1526_s1 + $0xd8] sm:$0xff]  ;;  %v1224_v23 = vld [vmem:[%s1526_s1 + $0xd0] sm:$0xff] }
  0x13   : > { %764 = vmatpush.bf16.msra.mxu3 %v1228_v7  ;;  %v1199_v24 = vld [vmem:[%s1526_s1 + $0x8] sm:$0xff]  ;;  %v180_v29 = vld [vmem:[%s1388_s15] sm:$0xff]  ;;  %v1237_v38 = vld [vmem:[%s1526_s1 + $0x138] sm:$0xff] }
  0x14   : > { %726 = vmatpush.bf16.msra.mxu0 %v1203_v8  ;;  %v1207_v25 = vld [vmem:[%s1526_s1 + $0x48] sm:$0xff]  ;;  %v1198_v30 = vld [vmem:[%s1526_s1] sm:$0xff]  ;;  %v316_v33 = vunpack.c.l.b16 %v180_v29  ;;  %v317_v37 = vunpack.c.h.b16 %v180_v29  ;;  %v1245_v39 = vld [vmem:[%s1526_s1 + $0x178] sm:$0xff] }
  0x15   : > { %739 = vmatpush.bf16.msra.mxu1 %v1211_v9  ;;  %v1215_v26 = vld [vmem:[%s1526_s1 + $0x88] sm:$0xff]  ;;  %v1206_v31 = vld [vmem:[%s1526_s1 + $0x40] sm:$0xff]  ;;  %v1253_v40 = vld [vmem:[%s1526_s1 + $0x1b8] sm:$0xff] }
  0x16   : > { %752 = vmatpush.bf16.msra.mxu2 %v1219_v10  ;;  %v1223_v27 = vld [vmem:[%s1526_s1 + $0xc8] sm:$0xff]  ;;  %v1214_v34 = vld [vmem:[%s1526_s1 + $0x80] sm:$0xff]  ;;  %v1261_v41 = vld [vmem:[%s1526_s1 + $0x1f8] sm:$0xff]  ;;  %v324_v43 = vpack.c.b16 %v316_v33, %v316_v33  ;;  %v325_v45 = vpack.c.b16 %v317_v37, %v317_v37 }
  0x17   : > { %765 = vmatpush.bf16.msra.mxu3 %v1227_v11  ;;  %v181_v28 = vld [vmem:[%s1388_s15 + $0x8] sm:$0xff]  ;;  %v1222_v35 = vld [vmem:[%s1526_s1 + $0xc0] sm:$0xff]  ;;  %v1236_v46 = vld [vmem:[%s1526_s1 + $0x130] sm:$0xff] }
  0x18   : > { %727 = vmatpush.bf16.msra.mxu0 %v1202_v12  ;;  %v318_v32 = vunpack.c.l.b16 %v181_v28  ;;  %v319_v36 = vunpack.c.h.b16 %v181_v28  ;;  %v1244_v47 = vld [vmem:[%s1526_s1 + $0x170] sm:$0xff]  ;;  %v1235_v50 = vld [vmem:[%s1526_s1 + $0x128] sm:$0xff]  ;;  %v1234_v54 = vld [vmem:[%s1526_s1 + $0x120] sm:$0xff] }
  0x19   : > { %740 = vmatpush.bf16.msra.mxu1 %v1210_v13  ;;  %v1252_v48 = vld [vmem:[%s1526_s1 + $0x1b0] sm:$0xff]  ;;  %v1243_v51 = vld [vmem:[%s1526_s1 + $0x168] sm:$0xff]  ;;  %v1242_v55 = vld [vmem:[%s1526_s1 + $0x160] sm:$0xff] }
  0x1a   : > { %753 = vmatpush.bf16.msra.mxu2 %v1218_v14  ;;  %v326_v42 = vpack.c.b16 %v318_v32, %v318_v32  ;;  %v327_v44 = vpack.c.b16 %v319_v36, %v319_v36  ;;  %v1260_v49 = vld [vmem:[%s1526_s1 + $0x1f0] sm:$0xff]  ;;  %v1251_v52 = vld [vmem:[%s1526_s1 + $0x1a8] sm:$0xff]  ;;  %v1250_v56 = vld [vmem:[%s1526_s1 + $0x1a0] sm:$0xff] }
  0x1b   : > { %766 = vmatpush.bf16.msra.mxu3 %v1226_v15  ;;  %v1259_v53 = vld [vmem:[%s1526_s1 + $0x1e8] sm:$0xff]  ;;  %v1258_v57 = vld [vmem:[%s1526_s1 + $0x1e0] sm:$0xff]  ;;  %v1233_v58 = vld [vmem:[%s1526_s1 + $0x118] sm:$0xff] }
  0x1c   : > { %728 = vmatpush.bf16.msra.mxu0 %v1201_v16  ;;  %v1241_v59 = vld [vmem:[%s1526_s1 + $0x158] sm:$0xff]  ;;  %v1232_v62 = vld [vmem:[%s1526_s1 + $0x110] sm:$0xff]  ;;  %v1231_v2 = vld [vmem:[%s1526_s1 + $0x108] sm:$0xff] }
  0x1d   : > { %741 = vmatpush.bf16.msra.mxu1 %v1209_v17  ;;  %v1249_v60 = vld [vmem:[%s1526_s1 + $0x198] sm:$0xff]  ;;  %v1240_v63 = vld [vmem:[%s1526_s1 + $0x150] sm:$0xff]  ;;  %v1239_v3 = vld [vmem:[%s1526_s1 + $0x148] sm:$0xff] }
  0x1e   : > { %754 = vmatpush.bf16.msra.mxu2 %v1217_v18  ;;  %v1257_v61 = vld [vmem:[%s1526_s1 + $0x1d8] sm:$0xff]  ;;  %v1248_v0 = vld [vmem:[%s1526_s1 + $0x190] sm:$0xff]  ;;  %v1247_v5 = vld [vmem:[%s1526_s1 + $0x188] sm:$0xff] }
  0x1f   : > { %767 = vmatpush.bf16.msra.mxu3 %v1225_v19  ;;  %v1256_v1 = vld [vmem:[%s1526_s1 + $0x1d0] sm:$0xff]  ;;  %v1255_v6 = vld [vmem:[%s1526_s1 + $0x1c8] sm:$0xff]  ;;  %v183_v7 = vld [vmem:[%s1388_s15 + $0x18] sm:$0xff] }
  0x20   : > { %729 = vmatpush.bf16.msra.mxu0 %v1200_v20  ;;  %v182_v4 = vld [vmem:[%s1388_s15 + $0x10] sm:$0xff]  ;;  %v1230_v10 = vld [vmem:[%s1526_s1 + $0x100] sm:$0xff]  ;;  %v322_v12 = vunpack.c.l.b16 %v183_v7  ;;  %v323_v13 = vunpack.c.h.b16 %v183_v7 }
  0x21   : > { %742 = vmatpush.bf16.msra.mxu1 %v1208_v21  ;;  %v320_v8 = vunpack.c.l.b16 %v182_v4  ;;  %v321_v9 = vunpack.c.h.b16 %v182_v4  ;;  %v1238_v11 = vld [vmem:[%s1526_s1 + $0x140] sm:$0xff] }
  0x22   : > { %755 = vmatpush.bf16.msra.mxu2 %v1216_v22  ;;  %v1246_v14 = vld [vmem:[%s1526_s1 + $0x180] sm:$0xff]  ;;  %v330_v18 = vpack.c.b16 %v322_v12, %v322_v12  ;;  %v331_v19 = vpack.c.b16 %v323_v13, %v323_v13 }
  0x23   : > { %768 = vmatpush.bf16.msra.mxu3 %v1224_v23  ;;  %v1254_v15 = vld [vmem:[%s1526_s1 + $0x1c0] sm:$0xff]  ;;  %v328_v16 = vpack.c.b16 %v320_v8, %v320_v8  ;;  %v329_v17 = vpack.c.b16 %v321_v9, %v321_v9 }
  0x24   : > { %730 = vmatpush.bf16.msra.mxu0 %v1199_v24 }
  0x25   : > { %743 = vmatpush.bf16.msra.mxu1 %v1207_v25 }
  0x26   : > { %756 = vmatpush.bf16.msra.mxu2 %v1215_v26 }
  0x27   : > { %769 = vmatpush.bf16.msra.mxu3 %v1223_v27 }
  0x28   : > { %731 = vmatpush.bf16.msra.mxu0 %v1198_v30 }
  0x29   : > { %744 = vmatpush.bf16.msra.mxu1 %v1206_v31 }
  0x2a   : > { %757 = vmatpush.bf16.msra.mxu2 %v1214_v34 }
  0x2b   : > { %770 = vmatpush.bf16.msra.mxu3 %v1222_v35  ;;  %732 = vmatmul.bf16.vlgmr.msra.gmra.mxu0 %v324_v43 }
  0x2c   : > { %776 = vmatpush.bf16.msrb.mxu0 %v1237_v38  ;;  %745 = vmatmul.bf16.vlgmr.msra.gmra.mxu1 %v325_v45 }
  0x2d   : > { %789 = vmatpush.bf16.msrb.mxu1 %v1245_v39  ;;  %758 = vmatmul.bf16.vlgmr.msra.gmra.mxu2 %v326_v42 }
  0x2e   : > { %802 = vmatpush.bf16.msrb.mxu2 %v1253_v40  ;;  %771 = vmatmul.bf16.vlgmr.msra.gmra.mxu3 %v327_v44 }
  0x2f   : > { %815 = vmatpush.bf16.msrb.mxu3 %v1261_v41 }
  0x30   : > { %777 = vmatpush.bf16.msrb.mxu0 %v1236_v46 }
  0x31   : > { %790 = vmatpush.bf16.msrb.mxu1 %v1244_v47 }
  0x32   : > { %803 = vmatpush.bf16.msrb.mxu2 %v1252_v48 }
  0x33   : > { %816 = vmatpush.bf16.msrb.mxu3 %v1260_v49 }
  0x34   : > { %778 = vmatpush.bf16.msrb.mxu0 %v1235_v50 }
  0x35   : > { %791 = vmatpush.bf16.msrb.mxu1 %v1243_v51 }
  0x36   : > { %804 = vmatpush.bf16.msrb.mxu2 %v1251_v52 }
  0x37   : > { %817 = vmatpush.bf16.msrb.mxu3 %v1259_v53 }
  0x38   : > { %779 = vmatpush.bf16.msrb.mxu0 %v1234_v54 }
  0x39   : > { %792 = vmatpush.bf16.msrb.mxu1 %v1242_v55 }
  0x3a   : > { %805 = vmatpush.bf16.msrb.mxu2 %v1250_v56 }
  0x3b   : > { %818 = vmatpush.bf16.msrb.mxu3 %v1258_v57 }
  0x3c   : > { %780 = vmatpush.bf16.msrb.mxu0 %v1233_v58 }
  0x3d   : > { %793 = vmatpush.bf16.msrb.mxu1 %v1241_v59 }
  0x3e   : > { %806 = vmatpush.bf16.msrb.mxu2 %v1249_v60 }
  0x3f   : > { %819 = vmatpush.bf16.msrb.mxu3 %v1257_v61 }
  0x40   : > { %781 = vmatpush.bf16.msrb.mxu0 %v1232_v62 }
  0x41   : > { %794 = vmatpush.bf16.msrb.mxu1 %v1240_v63 }
  0x42   : > { %807 = vmatpush.bf16.msrb.mxu2 %v1248_v0 }
  0x43   : > { %820 = vmatpush.bf16.msrb.mxu3 %v1256_v1 }
  0x44   : > { %782 = vmatpush.bf16.msrb.mxu0 %v1231_v2 }
  0x45   : > { %795 = vmatpush.bf16.msrb.mxu1 %v1239_v3 }
  0x46   : > { %808 = vmatpush.bf16.msrb.mxu2 %v1247_v5 }
  0x47   : > { %821 = vmatpush.bf16.msrb.mxu3 %v1255_v6 }
  0x48   : > { %783 = vmatpush.bf16.msrb.mxu0 %v1230_v10 }
  0x49   : > { %796 = vmatpush.bf16.msrb.mxu1 %v1238_v11 }
  0x4a   : > { %809 = vmatpush.bf16.msrb.mxu2 %v1246_v14 }
  0x4b   : > { %822 = vmatpush.bf16.msrb.mxu3 %v1254_v15  ;;  %784 = vmatmul.bf16.vlgmr.msrb.gmra.mxu0 %v328_v16 }
  0x4c   : > { %797 = vmatmul.bf16.vlgmr.msrb.gmra.mxu1 %v329_v17 }
  0x4d   : > { %810 = vmatmul.bf16.vlgmr.msrb.gmra.mxu2 %v330_v18 }
  0x4e   : > { %823 = vmatmul.bf16.vlgmr.msrb.gmra.mxu3 %v331_v19 }
  0xa8   : > { %v733_v20 = vpop.f32.mrf.mxu0 }
  0xa9   : > { %v746_v21 = vpop.f32.mrf.mxu1 }
  0xaa   : > { %v747_v28 = vadd.f32 %v746_v21, %v733_v20 }
  0xb0   : > { %v759_v22 = vpop.f32.mrf.mxu2  ;;  %v735_v24 = vpop.f32.mrf.mxu0 }
  0xb1   : > { %v772_v23 = vpop.f32.mrf.mxu3  ;;  %v748_v25 = vpop.f32.mrf.mxu1  ;;  %v760_v29 = vadd.f32 %v759_v22, %v747_v28 }
  0xb3   : > { %v773_v30 = vadd.f32 %v772_v23, %v760_v29 }
  0xb8   : > { %v761_v26 = vpop.f32.mrf.mxu2 }
  0xb9   : > { %v774_v27 = vpop.f32.mrf.mxu3 }
  0xc8   : > { %v785_v31 = vpop.f32.mrf.mxu0 }
  0xc9   : > { %v798_v32 = vpop.f32.mrf.mxu1  ;;  %v786_v33 = vadd.f32 %v785_v31, %v773_v30 }
  0xcb   : > { %v799_v34 = vadd.f32 %v798_v32, %v786_v33 }
  0xd0   : > { %v811_v35 = vpop.f32.mrf.mxu2  ;;  %v787_v38 = vpop.f32.mrf.mxu0 }
  0xd1   : > { %v824_v36 = vpop.f32.mrf.mxu3  ;;  %v812_v37 = vadd.f32 %v811_v35, %v799_v34  ;;  %v800_v39 = vpop.f32.mrf.mxu1 }
  0xd3   : > { %v825_v40 = vadd.f32 %v824_v36, %v812_v37 }
  0xd5   : > { %v828_v41 = vpack.c.bf16 %v825_v40, %v825_v40  ;;  %v830_v42 = vrot.slane %v825_v40, 4  ;;  %v836_v43 = vmul.f32 %v825_v40, %v825_v40 }
  0xd7   : > { %829 = vst [vmem:[%s175_s26] sm:$0xf] %v828_v41  ;;  %v831_v44 = vadd.f32 %v830_v42, %v825_v40  ;;  %v837_v45 = vrot.slane %v836_v43, 4 }
  0xd8   : > { %v813_v46 = vpop.f32.mrf.mxu2 }
  0xd9   : > { %v826_v47 = vpop.f32.mrf.mxu3  ;;  %v832_v48 = vrot.slane %v831_v44, 2  ;;  %v838_v49 = vadd.f32 %v837_v45, %v836_v43 }
  0xdb   : > { %v833_v50 = vadd.f32 %v832_v48, %v831_v44  ;;  %v839_v51 = vrot.slane %v838_v49, 2 }
  0xdd   : > { %v834_v52 = vrot.slane %v833_v50, 1  ;;  %v840_v53 = vadd.f32 %v839_v51, %v838_v49 }
  0xdf   : > { %v841_v54 = vrot.slane %v840_v53, 1  ;;  %v835_v55 = vadd.f32 %v834_v52, %v833_v50 }
  0xe1   : > { %v842_v56 = vadd.f32 %v841_v54, %v840_v53 }
  0xe3   : > { %v844_v57 = vsel %vm843_vm0, %v835_v55, %v842_v56 }
  0xe4   : > { %845 = vst [vmem:[%s179_s30] sm:$0x3] %v844_v57 }
  0xe5 PF: > { %s14_s12 = sadd.s32 1, %s1276_s12  }
  0xe6   : > { %p11_p4 = scmp.ge.s32.totalorder %s14_s12, 6  }
  0xe8   :  { %13 = sbr.rel (!%p11_p4) target bundleno = 1 (0x1), region = 70 }

// kernel: discriminator_forward.14
= control target key start
LH: loop header
LB: loop body
LE: loop exit
PB: predicated region body
PF: predicated region fallthrough
CT: control target
= control target key end

     0   :  { %s259_s12 = smov 0   ;;  %s295_s0 = inlined_call_operand.vmem [shape: bf16[32,128], index: 0, kind: input, shape index: {}]   ;;  %s296_s1 = inlined_call_operand.vmem [shape: f32[1,128], index: 1, kind: input, shape index: {}]   ;;  %s297_s2 = inlined_call_operand.vmem [shape: f32[1,128], index: 2, kind: input, shape index: {}]   ;;  %s298_s3 = inlined_call_operand.vmem [shape: bf16[32,128], index: 3, kind: output, shape index: {}]  }
   0x1 LB: > { %s236_s13 = sadd.s32 4294967295, %s261_s12   ;;  %p240_p0 = scmp.ge.s32.totalorder %s261_s12, 1  ;;  %s261_s12 = sphi %s259_s12, %s13_s12  }
   0x2   : > { %p136_p1 = scmp.lt.s32.totalorder %s261_s12, 5 }
   0x4   : > { %p137_p2 = pnand %p240_p0, %p136_p1 }
   0x5   : > { %p158_p3 = scmp.lt.s32.totalorder (!%p137_p2), %s236_s13, 3 }
   0x6   : > { %140 = sbr.rel (%p137_p2) target bundleno = 27 (0x1b), region = 32 }
   0xb   : > { %s300_s13 = smov (!%p158_p3, %s236_s13), 3  ;;  %v253_v0 = vld [vmem:[%s296_s1] ss:$0 sm:$0xff] }
   0xc   : > { %s241_s14 = sshll.u32 %s300_s13, 2  ;;  %v254_v3 = vld [vmem:[%s297_s2] ss:$0 sm:$0xff] }
   0xd   : > { %s161_s17 = scalar_lea.vmem %s295_s0, %s241_s14  ;;  %s165_s24 = scalar_lea.vmem %s298_s3, %s241_s14 }
   0xe   : > { %v166_v1 = vld [vmem:[%s161_s17] sm:$0xf] }
   0xf   : > { %v167_v2 = vunpack.c.l.bf16 %v166_v1 }
  0x11   : > { %v172_v4 = vmul.f32 %v253_v0, %v167_v2 }
  0x13   : > { %v177_v5 = vadd.f32 %v254_v3, %v172_v4 }
  0x15   : > { %vm178_vm0 = vcmp.ge.f32.partialorder %v177_v5, 0.0  ;;  %v179_v6 = vmul.f32 0.2, %v177_v5 }
  0x17   : > { %v180_v7 = vsel %vm178_vm0, %v177_v5, %v179_v6 }
  0x18   : > { %v181_v8 = vpack.c.bf16 %v180_v7, %v180_v7 }
  0x1a   : > { %182 = vst [vmem:[%s165_s24] sm:$0xf] %v181_v8 }
  0x1b PF: > { %s13_s12 = sadd.s32 1, %s261_s12  }
  0x1c   : > { %p10_p4 = scmp.ge.s32.totalorder %s13_s12, 6  }
  0x1e   :  { %12 = sbr.rel (!%p10_p4) target bundleno = 1 (0x1), region = 62 }

// kernel: discriminator_forward.15
= control target key start
LH: loop header
LB: loop body
LE: loop exit
PB: predicated region body
PF: predicated region fallthrough
CT: control target
= control target key end

     0   :  { %vm1311_vm0 = vcmask 7168   ;;  %s2385_s1 = inlined_call_operand.vmem [shape: bf16[2048,1], index: 1, kind: input, shape index: {}]   ;;  %s2386_s0 = inlined_call_operand.vmem [shape: bf16[8,2048], index: 0, kind: input, shape index: {}]   ;;  %s2387_s2 = inlined_call_operand.vmem [shape: f32[8,1], index: 2, kind: output, shape index: {}]  }
   0x1   :  { %v1836_v0 = vld [vmem:[%s2385_s1 + $0x38] sm:$0xff]  ;;  %v1835_v4 = vld [vmem:[%s2385_s1 + $0x30] sm:$0xff]  ;;  %v1834_v8 = vld [vmem:[%s2385_s1 + $0x28] sm:$0xff] }
   0x2   :  { %v1844_v1 = vld [vmem:[%s2385_s1 + $0x78] sm:$0xff]  ;;  %1099 = vmatpush.bf16.msra.mxu0 %v1836_v0  ;;  %v1843_v5 = vld [vmem:[%s2385_s1 + $0x70] sm:$0xff]  ;;  %v1842_v9 = vld [vmem:[%s2385_s1 + $0x68] sm:$0xff] }
   0x3   :  { %v1852_v2 = vld [vmem:[%s2385_s1 + $0xb8] sm:$0xff]  ;;  %1112 = vmatpush.bf16.msra.mxu1 %v1844_v1  ;;  %v1851_v6 = vld [vmem:[%s2385_s1 + $0xb0] sm:$0xff]  ;;  %v1850_v10 = vld [vmem:[%s2385_s1 + $0xa8] sm:$0xff] }
   0x4   :  { %v1860_v3 = vld [vmem:[%s2385_s1 + $0xf8] sm:$0xff]  ;;  %1125 = vmatpush.bf16.msra.mxu2 %v1852_v2  ;;  %v1859_v7 = vld [vmem:[%s2385_s1 + $0xf0] sm:$0xff]  ;;  %v1858_v11 = vld [vmem:[%s2385_s1 + $0xe8] sm:$0xff] }
   0x5   :  { %1138 = vmatpush.bf16.msra.mxu3 %v1860_v3  ;;  %v1833_v12 = vld [vmem:[%s2385_s1 + $0x20] sm:$0xff]  ;;  %v1832_v16 = vld [vmem:[%s2385_s1 + $0x18] sm:$0xff]  ;;  %v1831_v20 = vld [vmem:[%s2385_s1 + $0x10] sm:$0xff] }
   0x6   :  { %1100 = vmatpush.bf16.msra.mxu0 %v1835_v4  ;;  %v1841_v13 = vld [vmem:[%s2385_s1 + $0x60] sm:$0xff]  ;;  %v1840_v17 = vld [vmem:[%s2385_s1 + $0x58] sm:$0xff]  ;;  %v1839_v21 = vld [vmem:[%s2385_s1 + $0x50] sm:$0xff] }
   0x7   :  { %1113 = vmatpush.bf16.msra.mxu1 %v1843_v5  ;;  %v1849_v14 = vld [vmem:[%s2385_s1 + $0xa0] sm:$0xff]  ;;  %v1848_v18 = vld [vmem:[%s2385_s1 + $0x98] sm:$0xff]  ;;  %v1847_v22 = vld [vmem:[%s2385_s1 + $0x90] sm:$0xff] }
   0x8   :  { %1126 = vmatpush.bf16.msra.mxu2 %v1851_v6  ;;  %v1857_v15 = vld [vmem:[%s2385_s1 + $0xe0] sm:$0xff]  ;;  %v1856_v19 = vld [vmem:[%s2385_s1 + $0xd8] sm:$0xff]  ;;  %v1855_v23 = vld [vmem:[%s2385_s1 + $0xd0] sm:$0xff] }
   0x9   :  { %1139 = vmatpush.bf16.msra.mxu3 %v1859_v7  ;;  %v1830_v24 = vld [vmem:[%s2385_s1 + $0x8] sm:$0xff]  ;;  %v11_v29 = vld [vmem:[%s2386_s0] sm:$0xff]  ;;  %v1868_v38 = vld [vmem:[%s2385_s1 + $0x138] sm:$0xff] }
   0xa   :  { %1101 = vmatpush.bf16.msra.mxu0 %v1834_v8  ;;  %v1838_v25 = vld [vmem:[%s2385_s1 + $0x48] sm:$0xff]  ;;  %v1829_v30 = vld [vmem:[%s2385_s1] sm:$0xff]  ;;  %v283_v33 = vunpack.c.l.b16 %v11_v29  ;;  %v284_v37 = vunpack.c.h.b16 %v11_v29  ;;  %v1876_v39 = vld [vmem:[%s2385_s1 + $0x178] sm:$0xff] }
   0xb   :  { %1114 = vmatpush.bf16.msra.mxu1 %v1842_v9  ;;  %v1846_v26 = vld [vmem:[%s2385_s1 + $0x88] sm:$0xff]  ;;  %v1837_v31 = vld [vmem:[%s2385_s1 + $0x40] sm:$0xff]  ;;  %v1884_v40 = vld [vmem:[%s2385_s1 + $0x1b8] sm:$0xff] }
   0xc   :  { %1127 = vmatpush.bf16.msra.mxu2 %v1850_v10  ;;  %v1854_v27 = vld [vmem:[%s2385_s1 + $0xc8] sm:$0xff]  ;;  %v1845_v34 = vld [vmem:[%s2385_s1 + $0x80] sm:$0xff]  ;;  %v1892_v41 = vld [vmem:[%s2385_s1 + $0x1f8] sm:$0xff]  ;;  %v299_v43 = vpack.c.b16 %v283_v33, %v283_v33  ;;  %v300_v45 = vpack.c.b16 %v284_v37, %v284_v37 }
   0xd   :  { %1140 = vmatpush.bf16.msra.mxu3 %v1858_v11  ;;  %v12_v28 = vld [vmem:[%s2386_s0 + $0x8] sm:$0xff]  ;;  %v1853_v35 = vld [vmem:[%s2385_s1 + $0xc0] sm:$0xff]  ;;  %v1867_v46 = vld [vmem:[%s2385_s1 + $0x130] sm:$0xff] }
   0xe   :  { %1102 = vmatpush.bf16.msra.mxu0 %v1833_v12  ;;  %v285_v32 = vunpack.c.l.b16 %v12_v28  ;;  %v286_v36 = vunpack.c.h.b16 %v12_v28  ;;  %v1875_v47 = vld [vmem:[%s2385_s1 + $0x170] sm:$0xff]  ;;  %v1866_v50 = vld [vmem:[%s2385_s1 + $0x128] sm:$0xff]  ;;  %v1865_v54 = vld [vmem:[%s2385_s1 + $0x120] sm:$0xff] }
   0xf   :  { %1115 = vmatpush.bf16.msra.mxu1 %v1841_v13  ;;  %v1883_v48 = vld [vmem:[%s2385_s1 + $0x1b0] sm:$0xff]  ;;  %v1874_v51 = vld [vmem:[%s2385_s1 + $0x168] sm:$0xff]  ;;  %v1873_v55 = vld [vmem:[%s2385_s1 + $0x160] sm:$0xff] }
  0x10   :  { %1128 = vmatpush.bf16.msra.mxu2 %v1849_v14  ;;  %v301_v42 = vpack.c.b16 %v285_v32, %v285_v32  ;;  %v302_v44 = vpack.c.b16 %v286_v36, %v286_v36  ;;  %v1891_v49 = vld [vmem:[%s2385_s1 + $0x1f0] sm:$0xff]  ;;  %v1882_v52 = vld [vmem:[%s2385_s1 + $0x1a8] sm:$0xff]  ;;  %v1881_v56 = vld [vmem:[%s2385_s1 + $0x1a0] sm:$0xff] }
  0x11   :  { %1141 = vmatpush.bf16.msra.mxu3 %v1857_v15  ;;  %v1890_v53 = vld [vmem:[%s2385_s1 + $0x1e8] sm:$0xff]  ;;  %v1889_v57 = vld [vmem:[%s2385_s1 + $0x1e0] sm:$0xff]  ;;  %v1864_v58 = vld [vmem:[%s2385_s1 + $0x118] sm:$0xff] }
  0x12   :  { %1103 = vmatpush.bf16.msra.mxu0 %v1832_v16  ;;  %v1872_v59 = vld [vmem:[%s2385_s1 + $0x158] sm:$0xff]  ;;  %v1863_v62 = vld [vmem:[%s2385_s1 + $0x110] sm:$0xff]  ;;  %v1862_v2 = vld [vmem:[%s2385_s1 + $0x108] sm:$0xff] }
  0x13   :  { %1116 = vmatpush.bf16.msra.mxu1 %v1840_v17  ;;  %v1880_v60 = vld [vmem:[%s2385_s1 + $0x198] sm:$0xff]  ;;  %v1871_v63 = vld [vmem:[%s2385_s1 + $0x150] sm:$0xff]  ;;  %v1870_v3 = vld [vmem:[%s2385_s1 + $0x148] sm:$0xff] }
  0x14   :  { %1129 = vmatpush.bf16.msra.mxu2 %v1848_v18  ;;  %v1888_v61 = vld [vmem:[%s2385_s1 + $0x1d8] sm:$0xff]  ;;  %v1879_v0 = vld [vmem:[%s2385_s1 + $0x190] sm:$0xff]  ;;  %v1878_v4 = vld [vmem:[%s2385_s1 + $0x188] sm:$0xff] }
  0x15   :  { %1142 = vmatpush.bf16.msra.mxu3 %v1856_v19  ;;  %v1887_v1 = vld [vmem:[%s2385_s1 + $0x1d0] sm:$0xff]  ;;  %v1886_v5 = vld [vmem:[%s2385_s1 + $0x1c8] sm:$0xff]  ;;  %v14_v6 = vld [vmem:[%s2386_s0 + $0x18] sm:$0xff] }
  0x16   :  { %1104 = vmatpush.bf16.msra.mxu0 %v1831_v20  ;;  %v13_v7 = vld [vmem:[%s2386_s0 + $0x10] sm:$0xff]  ;;  %v1861_v8 = vld [vmem:[%s2385_s1 + $0x100] sm:$0xff]  ;;  %v289_v10 = vunpack.c.l.b16 %v14_v6  ;;  %v290_v14 = vunpack.c.h.b16 %v14_v6  ;;  %v1900_v16 = vld [vmem:[%s2385_s1 + $0x238] sm:$0xff] }
  0x17   :  { %1117 = vmatpush.bf16.msra.mxu1 %v1839_v21  ;;  %v1869_v9 = vld [vmem:[%s2385_s1 + $0x140] sm:$0xff]  ;;  %v287_v11 = vunpack.c.l.b16 %v13_v7  ;;  %v288_v15 = vunpack.c.h.b16 %v13_v7  ;;  %v1908_v17 = vld [vmem:[%s2385_s1 + $0x278] sm:$0xff]  ;;  %v1898_v28 = vld [vmem:[%s2385_s1 + $0x228] sm:$0xff] }
  0x18   :  { %1130 = vmatpush.bf16.msra.mxu2 %v1847_v22  ;;  %v1877_v12 = vld [vmem:[%s2385_s1 + $0x180] sm:$0xff]  ;;  %v1916_v18 = vld [vmem:[%s2385_s1 + $0x2b8] sm:$0xff]  ;;  %v305_v20 = vpack.c.b16 %v289_v10, %v289_v10  ;;  %v306_v22 = vpack.c.b16 %v290_v14, %v290_v14  ;;  %v1906_v29 = vld [vmem:[%s2385_s1 + $0x268] sm:$0xff] }
  0x19   :  { %1143 = vmatpush.bf16.msra.mxu3 %v1855_v23  ;;  %v1885_v13 = vld [vmem:[%s2385_s1 + $0x1c0] sm:$0xff]  ;;  %v1924_v19 = vld [vmem:[%s2385_s1 + $0x2f8] sm:$0xff]  ;;  %v303_v21 = vpack.c.b16 %v287_v11, %v287_v11  ;;  %v304_v23 = vpack.c.b16 %v288_v15, %v288_v15  ;;  %v1930_v6 = vld [vmem:[%s2385_s1 + $0x328] sm:$0xff] }
  0x1a   :  { %1105 = vmatpush.bf16.msra.mxu0 %v1830_v24  ;;  %v1899_v24 = vld [vmem:[%s2385_s1 + $0x230] sm:$0xff]  ;;  %v1897_v32 = vld [vmem:[%s2385_s1 + $0x220] sm:$0xff]  ;;  %v1896_v36 = vld [vmem:[%s2385_s1 + $0x218] sm:$0xff] }
  0x1b   :  { %1118 = vmatpush.bf16.msra.mxu1 %v1838_v25  ;;  %v1907_v25 = vld [vmem:[%s2385_s1 + $0x270] sm:$0xff]  ;;  %v1905_v33 = vld [vmem:[%s2385_s1 + $0x260] sm:$0xff]  ;;  %v1904_v37 = vld [vmem:[%s2385_s1 + $0x258] sm:$0xff] }
  0x1c   :  { %1131 = vmatpush.bf16.msra.mxu2 %v1846_v26  ;;  %v1915_v26 = vld [vmem:[%s2385_s1 + $0x2b0] sm:$0xff]  ;;  %v1938_v7 = vld [vmem:[%s2385_s1 + $0x368] sm:$0xff]  ;;  %v1929_v10 = vld [vmem:[%s2385_s1 + $0x320] sm:$0xff] }
  0x1d   :  { %1144 = vmatpush.bf16.msra.mxu3 %v1854_v27  ;;  %v1923_v27 = vld [vmem:[%s2385_s1 + $0x2f0] sm:$0xff]  ;;  %v1937_v11 = vld [vmem:[%s2385_s1 + $0x360] sm:$0xff]  ;;  %v1928_v14 = vld [vmem:[%s2385_s1 + $0x318] sm:$0xff] }
  0x1e   :  { %1106 = vmatpush.bf16.msra.mxu0 %v1829_v30  ;;  %v1914_v30 = vld [vmem:[%s2385_s1 + $0x2a8] sm:$0xff]  ;;  %v1936_v15 = vld [vmem:[%s2385_s1 + $0x358] sm:$0xff] }
  0x1f   :  { %1119 = vmatpush.bf16.msra.mxu1 %v1837_v31  ;;  %v1922_v31 = vld [vmem:[%s2385_s1 + $0x2e8] sm:$0xff] }
  0x20   :  { %1132 = vmatpush.bf16.msra.mxu2 %v1845_v34  ;;  %v1913_v34 = vld [vmem:[%s2385_s1 + $0x2a0] sm:$0xff] }
  0x21   :  { %1145 = vmatpush.bf16.msra.mxu3 %v1853_v35  ;;  %1107 = vmatmul.bf16.vlgmr.msra.gmra.mxu0 %v299_v43  ;;  %v1921_v35 = vld [vmem:[%s2385_s1 + $0x2e0] sm:$0xff]  ;;  %v1919_v43 = vld [vmem:[%s2385_s1 + $0x2d0] sm:$0xff] }
  0x22   :  { %1151 = vmatpush.bf16.msrb.mxu0 %v1868_v38  ;;  %1120 = vmatmul.bf16.vlgmr.msra.gmra.mxu1 %v300_v45  ;;  %v1912_v38 = vld [vmem:[%s2385_s1 + $0x298] sm:$0xff]  ;;  %v1902_v45 = vld [vmem:[%s2385_s1 + $0x248] sm:$0xff] }
  0x23   :  { %1164 = vmatpush.bf16.msrb.mxu1 %v1876_v39  ;;  %1133 = vmatmul.bf16.vlgmr.msra.gmra.mxu2 %v301_v42  ;;  %v1920_v39 = vld [vmem:[%s2385_s1 + $0x2d8] sm:$0xff]  ;;  %v1911_v42 = vld [vmem:[%s2385_s1 + $0x290] sm:$0xff] }
  0x24   :  { %1177 = vmatpush.bf16.msrb.mxu2 %v1884_v40  ;;  %1146 = vmatmul.bf16.vlgmr.msra.gmra.mxu3 %v302_v44  ;;  %v1895_v40 = vld [vmem:[%s2385_s1 + $0x210] sm:$0xff]  ;;  %v1894_v44 = vld [vmem:[%s2385_s1 + $0x208] sm:$0xff] }
  0x25   :  { %1190 = vmatpush.bf16.msrb.mxu3 %v1892_v41  ;;  %v1903_v41 = vld [vmem:[%s2385_s1 + $0x250] sm:$0xff] }
  0x26   :  { %1152 = vmatpush.bf16.msrb.mxu0 %v1867_v46  ;;  %v1910_v46 = vld [vmem:[%s2385_s1 + $0x288] sm:$0xff] }
  0x27   :  { %1165 = vmatpush.bf16.msrb.mxu1 %v1875_v47  ;;  %v1918_v47 = vld [vmem:[%s2385_s1 + $0x2c8] sm:$0xff] }
  0x28   :  { %1178 = vmatpush.bf16.msrb.mxu2 %v1883_v48  ;;  %v15_v48 = vld [vmem:[%s2386_s0 + $0x20] sm:$0xff] }
  0x29   :  { %1191 = vmatpush.bf16.msrb.mxu3 %v1891_v49  ;;  %v16_v49 = vld [vmem:[%s2386_s0 + $0x28] sm:$0xff] }
  0x2a   :  { %1153 = vmatpush.bf16.msrb.mxu0 %v1866_v50  ;;  %v1893_v50 = vld [vmem:[%s2385_s1 + $0x200] sm:$0xff] }
  0x2b   :  { %1166 = vmatpush.bf16.msrb.mxu1 %v1874_v51  ;;  %v1901_v51 = vld [vmem:[%s2385_s1 + $0x240] sm:$0xff] }
  0x2c   :  { %1179 = vmatpush.bf16.msrb.mxu2 %v1882_v52  ;;  %v291_v52 = vunpack.c.l.b16 %v15_v48 }
  0x2d   :  { %1192 = vmatpush.bf16.msrb.mxu3 %v1890_v53  ;;  %v293_v53 = vunpack.c.l.b16 %v16_v49 }
  0x2e   :  { %1154 = vmatpush.bf16.msrb.mxu0 %v1865_v54  ;;  %v1909_v54 = vld [vmem:[%s2385_s1 + $0x280] sm:$0xff] }
  0x2f   :  { %1167 = vmatpush.bf16.msrb.mxu1 %v1873_v55  ;;  %v1917_v55 = vld [vmem:[%s2385_s1 + $0x2c0] sm:$0xff] }
  0x30   :  { %1180 = vmatpush.bf16.msrb.mxu2 %v1881_v56  ;;  %v292_v56 = vunpack.c.h.b16 %v15_v48 }
  0x31   :  { %1193 = vmatpush.bf16.msrb.mxu3 %v1889_v57  ;;  %v294_v57 = vunpack.c.h.b16 %v16_v49 }
  0x32   :  { %1155 = vmatpush.bf16.msrb.mxu0 %v1864_v58  ;;  %v1932_v58 = vld [vmem:[%s2385_s1 + $0x338] sm:$0xff] }
  0x33   :  { %1168 = vmatpush.bf16.msrb.mxu1 %v1872_v59  ;;  %v1940_v59 = vld [vmem:[%s2385_s1 + $0x378] sm:$0xff] }
  0x34   :  { %1181 = vmatpush.bf16.msrb.mxu2 %v1880_v60  ;;  %v1948_v60 = vld [vmem:[%s2385_s1 + $0x3b8] sm:$0xff] }
  0x35   :  { %1194 = vmatpush.bf16.msrb.mxu3 %v1888_v61  ;;  %v1956_v61 = vld [vmem:[%s2385_s1 + $0x3f8] sm:$0xff] }
  0x36   :  { %1156 = vmatpush.bf16.msrb.mxu0 %v1863_v62  ;;  %v307_v62 = vpack.c.b16 %v291_v52, %v291_v52 }
  0x37   :  { %1169 = vmatpush.bf16.msrb.mxu1 %v1871_v63  ;;  %v309_v63 = vpack.c.b16 %v293_v53, %v293_v53 }
  0x38   :  { %1182 = vmatpush.bf16.msrb.mxu2 %v1879_v0  ;;  %v308_v0 = vpack.c.b16 %v292_v56, %v292_v56 }
  0x39   :  { %1195 = vmatpush.bf16.msrb.mxu3 %v1887_v1  ;;  %v310_v1 = vpack.c.b16 %v294_v57, %v294_v57 }
  0x3a   :  { %1157 = vmatpush.bf16.msrb.mxu0 %v1862_v2  ;;  %v1931_v2 = vld [vmem:[%s2385_s1 + $0x330] sm:$0xff] }
  0x3b   :  { %1170 = vmatpush.bf16.msrb.mxu1 %v1870_v3  ;;  %v1939_v3 = vld [vmem:[%s2385_s1 + $0x370] sm:$0xff] }
  0x3c   :  { %1183 = vmatpush.bf16.msrb.mxu2 %v1878_v4  ;;  %v1947_v4 = vld [vmem:[%s2385_s1 + $0x3b0] sm:$0xff] }
  0x3d   :  { %1196 = vmatpush.bf16.msrb.mxu3 %v1886_v5  ;;  %v1955_v5 = vld [vmem:[%s2385_s1 + $0x3f0] sm:$0xff] }
  0x3e   :  { %1158 = vmatpush.bf16.msrb.mxu0 %v1861_v8  ;;  %v1946_v8 = vld [vmem:[%s2385_s1 + $0x3a8] sm:$0xff] }
  0x3f   :  { %1171 = vmatpush.bf16.msrb.mxu1 %v1869_v9  ;;  %v1954_v9 = vld [vmem:[%s2385_s1 + $0x3e8] sm:$0xff] }
  0x40   :  { %1184 = vmatpush.bf16.msrb.mxu2 %v1877_v12  ;;  %v1945_v12 = vld [vmem:[%s2385_s1 + $0x3a0] sm:$0xff] }
  0x41   :  { %1197 = vmatpush.bf16.msrb.mxu3 %v1885_v13  ;;  %1159 = vmatmul.bf16.vlgmr.msrb.gmra.mxu0 %v303_v21  ;;  %v1953_v13 = vld [vmem:[%s2385_s1 + $0x3e0] sm:$0xff]  ;;  %v1951_v21 = vld [vmem:[%s2385_s1 + $0x3d0] sm:$0xff] }
  0x42   :  { %1203 = vmatpush.bf16.msra.mxu0 %v1900_v16  ;;  %1172 = vmatmul.bf16.vlgmr.msrb.gmra.mxu1 %v304_v23  ;;  %v1944_v16 = vld [vmem:[%s2385_s1 + $0x398] sm:$0xff]  ;;  %v1934_v23 = vld [vmem:[%s2385_s1 + $0x348] sm:$0xff] }
  0x43   :  { %1216 = vmatpush.bf16.msra.mxu1 %v1908_v17  ;;  %1185 = vmatmul.bf16.vlgmr.msrb.gmra.mxu2 %v305_v20  ;;  %v1952_v17 = vld [vmem:[%s2385_s1 + $0x3d8] sm:$0xff]  ;;  %v1943_v20 = vld [vmem:[%s2385_s1 + $0x390] sm:$0xff] }
  0x44   :  { %1229 = vmatpush.bf16.msra.mxu2 %v1916_v18  ;;  %1198 = vmatmul.bf16.vlgmr.msrb.gmra.mxu3 %v306_v22  ;;  %v1927_v18 = vld [vmem:[%s2385_s1 + $0x310] sm:$0xff]  ;;  %v1926_v22 = vld [vmem:[%s2385_s1 + $0x308] sm:$0xff] }
  0x45   :  { %1242 = vmatpush.bf16.msra.mxu3 %v1924_v19  ;;  %v1935_v19 = vld [vmem:[%s2385_s1 + $0x350] sm:$0xff] }
  0x46   :  { %1204 = vmatpush.bf16.msra.mxu0 %v1899_v24  ;;  %v17_v24 = vld [vmem:[%s2386_s0 + $0x30] sm:$0xff] }
  0x47   :  { %1217 = vmatpush.bf16.msra.mxu1 %v1907_v25  ;;  %v1942_v25 = vld [vmem:[%s2385_s1 + $0x388] sm:$0xff] }
  0x48   :  { %1230 = vmatpush.bf16.msra.mxu2 %v1915_v26  ;;  %v1950_v26 = vld [vmem:[%s2385_s1 + $0x3c8] sm:$0xff] }
  0x49   :  { %1243 = vmatpush.bf16.msra.mxu3 %v1923_v27  ;;  %v18_v27 = vld [vmem:[%s2386_s0 + $0x38] sm:$0xff] }
  0x4a   :  { %1205 = vmatpush.bf16.msra.mxu0 %v1898_v28  ;;  %v295_v28 = vunpack.c.l.b16 %v17_v24 }
  0x4b   :  { %1218 = vmatpush.bf16.msra.mxu1 %v1906_v29  ;;  %v296_v29 = vunpack.c.h.b16 %v17_v24 }
  0x4c   :  { %1231 = vmatpush.bf16.msra.mxu2 %v1914_v30  ;;  %v1925_v30 = vld [vmem:[%s2385_s1 + $0x300] sm:$0xff] }
  0x4d   :  { %1244 = vmatpush.bf16.msra.mxu3 %v1922_v31  ;;  %v1933_v31 = vld [vmem:[%s2385_s1 + $0x340] sm:$0xff] }
  0x4e   :  { %1206 = vmatpush.bf16.msra.mxu0 %v1897_v32  ;;  %v297_v32 = vunpack.c.l.b16 %v18_v27 }
  0x4f   :  { %1219 = vmatpush.bf16.msra.mxu1 %v1905_v33  ;;  %v298_v33 = vunpack.c.h.b16 %v18_v27 }
  0x50   :  { %1232 = vmatpush.bf16.msra.mxu2 %v1913_v34  ;;  %v1941_v34 = vld [vmem:[%s2385_s1 + $0x380] sm:$0xff] }
  0x51   :  { %1245 = vmatpush.bf16.msra.mxu3 %v1921_v35  ;;  %v1949_v35 = vld [vmem:[%s2385_s1 + $0x3c0] sm:$0xff] }
  0x52   :  { %1207 = vmatpush.bf16.msra.mxu0 %v1896_v36  ;;  %v311_v36 = vpack.c.b16 %v295_v28, %v295_v28 }
  0x53   :  { %1220 = vmatpush.bf16.msra.mxu1 %v1904_v37  ;;  %v312_v37 = vpack.c.b16 %v296_v29, %v296_v29 }
  0x54   :  { %1233 = vmatpush.bf16.msra.mxu2 %v1912_v38  ;;  %v313_v38 = vpack.c.b16 %v297_v32, %v297_v32 }
  0x55   :  { %1246 = vmatpush.bf16.msra.mxu3 %v1920_v39  ;;  %v314_v39 = vpack.c.b16 %v298_v33, %v298_v33 }
  0x56   :  { %1208 = vmatpush.bf16.msra.mxu0 %v1895_v40 }
  0x57   :  { %1221 = vmatpush.bf16.msra.mxu1 %v1903_v41 }
  0x58   :  { %1234 = vmatpush.bf16.msra.mxu2 %v1911_v42 }
  0x59   :  { %1247 = vmatpush.bf16.msra.mxu3 %v1919_v43 }
  0x5a   :  { %1209 = vmatpush.bf16.msra.mxu0 %v1894_v44 }
  0x5b   :  { %1222 = vmatpush.bf16.msra.mxu1 %v1902_v45 }
  0x5c   :  { %1235 = vmatpush.bf16.msra.mxu2 %v1910_v46 }
  0x5d   :  { %1248 = vmatpush.bf16.msra.mxu3 %v1918_v47 }
  0x5e   :  { %1210 = vmatpush.bf16.msra.mxu0 %v1893_v50 }
  0x5f   :  { %1223 = vmatpush.bf16.msra.mxu1 %v1901_v51 }
  0x60   :  { %1236 = vmatpush.bf16.msra.mxu2 %v1909_v54 }
  0x61   :  { %1249 = vmatpush.bf16.msra.mxu3 %v1917_v55  ;;  %1211 = vmatmul.bf16.vlgmr.msra.gmra.mxu0 %v307_v62 }
  0x62   :  { %1255 = vmatpush.bf16.msrb.mxu0 %v1932_v58  ;;  %1224 = vmatmul.bf16.vlgmr.msra.gmra.mxu1 %v308_v0 }
  0x63   :  { %1268 = vmatpush.bf16.msrb.mxu1 %v1940_v59  ;;  %1237 = vmatmul.bf16.vlgmr.msra.gmra.mxu2 %v309_v63 }
  0x64   :  { %1281 = vmatpush.bf16.msrb.mxu2 %v1948_v60  ;;  %1250 = vmatmul.bf16.vlgmr.msra.gmra.mxu3 %v310_v1 }
  0x65   :  { %1294 = vmatpush.bf16.msrb.mxu3 %v1956_v61 }
  0x66   :  { %1256 = vmatpush.bf16.msrb.mxu0 %v1931_v2 }
  0x67   :  { %1269 = vmatpush.bf16.msrb.mxu1 %v1939_v3 }
  0x68   :  { %1282 = vmatpush.bf16.msrb.mxu2 %v1947_v4 }
  0x69   :  { %1295 = vmatpush.bf16.msrb.mxu3 %v1955_v5 }
  0x6a   :  { %1257 = vmatpush.bf16.msrb.mxu0 %v1930_v6 }
  0x6b   :  { %1270 = vmatpush.bf16.msrb.mxu1 %v1938_v7 }
  0x6c   :  { %1283 = vmatpush.bf16.msrb.mxu2 %v1946_v8 }
  0x6d   :  { %1296 = vmatpush.bf16.msrb.mxu3 %v1954_v9 }
  0x6e   :  { %1258 = vmatpush.bf16.msrb.mxu0 %v1929_v10 }
  0x6f   :  { %1271 = vmatpush.bf16.msrb.mxu1 %v1937_v11 }
  0x70   :  { %1284 = vmatpush.bf16.msrb.mxu2 %v1945_v12 }
  0x71   :  { %1297 = vmatpush.bf16.msrb.mxu3 %v1953_v13 }
  0x72   :  { %1259 = vmatpush.bf16.msrb.mxu0 %v1928_v14 }
  0x73   :  { %1272 = vmatpush.bf16.msrb.mxu1 %v1936_v15 }
  0x74   :  { %1285 = vmatpush.bf16.msrb.mxu2 %v1944_v16 }
  0x75   :  { %1298 = vmatpush.bf16.msrb.mxu3 %v1952_v17 }
  0x76   :  { %1260 = vmatpush.bf16.msrb.mxu0 %v1927_v18 }
  0x77   :  { %1273 = vmatpush.bf16.msrb.mxu1 %v1935_v19 }
  0x78   :  { %1286 = vmatpush.bf16.msrb.mxu2 %v1943_v20 }
  0x79   :  { %1299 = vmatpush.bf16.msrb.mxu3 %v1951_v21 }
  0x7a   :  { %1261 = vmatpush.bf16.msrb.mxu0 %v1926_v22 }
  0x7b   :  { %1274 = vmatpush.bf16.msrb.mxu1 %v1934_v23 }
  0x7c   :  { %1287 = vmatpush.bf16.msrb.mxu2 %v1942_v25 }
  0x7d   :  { %1300 = vmatpush.bf16.msrb.mxu3 %v1950_v26 }
  0x7e   :  { %1262 = vmatpush.bf16.msrb.mxu0 %v1925_v30 }
  0x7f   :  { %1275 = vmatpush.bf16.msrb.mxu1 %v1933_v31 }
  0x80   :  { %1288 = vmatpush.bf16.msrb.mxu2 %v1941_v34 }
  0x81   :  { %1301 = vmatpush.bf16.msrb.mxu3 %v1949_v35  ;;  %1263 = vmatmul.bf16.vlgmr.msrb.gmra.mxu0 %v311_v36 }
  0x82   :  { %1276 = vmatmul.bf16.vlgmr.msrb.gmra.mxu1 %v312_v37 }
  0x83   :  { %1289 = vmatmul.bf16.vlgmr.msrb.gmra.mxu2 %v313_v38 }
  0x84   :  { %1302 = vmatmul.bf16.vlgmr.msrb.gmra.mxu3 %v314_v39 }
  0x9e   :  { %v1108_v40 = vpop.f32.mrf.mxu0 }
  0x9f   :  { %v1121_v41 = vpop.f32.mrf.mxu1 }
  0xa0   :  { %v1122_v42 = vadd.f32 %v1121_v41, %v1108_v40 }
  0xa6   :  { %v1134_v43 = vpop.f32.mrf.mxu2  ;;  %v1110_v46 = vpop.f32.mrf.mxu0 }
  0xa7   :  { %v1135_v44 = vadd.f32 %v1134_v43, %v1122_v42  ;;  %v1147_v45 = vpop.f32.mrf.mxu3  ;;  %v1123_v48 = vpop.f32.mrf.mxu1 }
  0xa9   :  { %v1148_v47 = vadd.f32 %v1147_v45, %v1135_v44 }
  0xae   :  { %v1136_v49 = vpop.f32.mrf.mxu2 }
  0xaf   :  { %v1149_v50 = vpop.f32.mrf.mxu3 }
  0xbe   :  { %v1160_v51 = vpop.f32.mrf.mxu0 }
  0xbf   :  { %v1173_v52 = vpop.f32.mrf.mxu1  ;;  %v1161_v61 = vadd.f32 %v1160_v51, %v1148_v47 }
  0xc1   :  { %v1174_v1 = vadd.f32 %v1173_v52, %v1161_v61 }
  0xc6   :  { %v1186_v53 = vpop.f32.mrf.mxu2  ;;  %v1162_v55 = vpop.f32.mrf.mxu0 }
  0xc7   :  { %v1199_v54 = vpop.f32.mrf.mxu3  ;;  %v1175_v56 = vpop.f32.mrf.mxu1  ;;  %v1187_v3 = vadd.f32 %v1186_v53, %v1174_v1 }
  0xc9   :  { %v1200_v6 = vadd.f32 %v1199_v54, %v1187_v3 }
  0xce   :  { %v1188_v57 = vpop.f32.mrf.mxu2 }
  0xcf   :  { %v1201_v58 = vpop.f32.mrf.mxu3 }
  0xde   :  { %v1212_v59 = vpop.f32.mrf.mxu0 }
  0xdf   :  { %v1225_v60 = vpop.f32.mrf.mxu1  ;;  %v1213_v7 = vadd.f32 %v1212_v59, %v1200_v6 }
  0xe1   :  { %v1226_v8 = vadd.f32 %v1225_v60, %v1213_v7 }
  0xe6   :  { %v1238_v62 = vpop.f32.mrf.mxu2  ;;  %v1214_v0 = vpop.f32.mrf.mxu0 }
  0xe7   :  { %v1251_v63 = vpop.f32.mrf.mxu3  ;;  %v1227_v2 = vpop.f32.mrf.mxu1  ;;  %v1239_v9 = vadd.f32 %v1238_v62, %v1226_v8 }
  0xe9   :  { %v1252_v10 = vadd.f32 %v1251_v63, %v1239_v9 }
  0xee   :  { %v1240_v4 = vpop.f32.mrf.mxu2 }
  0xef   :  { %v1253_v5 = vpop.f32.mrf.mxu3 }
  0xfe   :  { %v1264_v11 = vpop.f32.mrf.mxu0 }
  0xff   :  { %v1277_v12 = vpop.f32.mrf.mxu1  ;;  %v1265_v13 = vadd.f32 %v1264_v11, %v1252_v10 }
 0x101   :  { %v1278_v14 = vadd.f32 %v1277_v12, %v1265_v13 }
 0x106   :  { %v1290_v15 = vpop.f32.mrf.mxu2  ;;  %v1266_v18 = vpop.f32.mrf.mxu0 }
 0x107   :  { %v1303_v16 = vpop.f32.mrf.mxu3  ;;  %v1291_v17 = vadd.f32 %v1290_v15, %v1278_v14  ;;  %v1279_v19 = vpop.f32.mrf.mxu1 }
 0x109   :  { %v1304_v20 = vadd.f32 %v1303_v16, %v1291_v17 }
 0x10b   :  { %v1307_v21 = vmul.f32 0.5, %v1304_v20 }
 0x10d   :  { %1957 = vtanh.f32 %v1307_v21 }
 0x10e   :  { %v1292_v22 = vpop.f32.mrf.mxu2 }
 0x10f   :  { %v1305_v23 = vpop.f32.mrf.mxu3 }
 0x113   :  { %v1958_v24 = vpop.eup %1957 }
 0x114   :  { %v1309_v25 = vadd.f32 1.0, %v1958_v24 }
 0x116   :  { %v1310_v26 = vmul.f32 0.5, %v1309_v25 }
 0x118   :  { %1312 = vst.msk [vmem:[%s2387_s2] sm:$0xff] %vm1311_vm0, %v1310_v26 }

</bundles_post_ra>
